<compile_context>
chip_gen: v7x
topology: tpu7x:2x2x1
jax: 0.10.0
libtpu: 0.0.40
codegen_flags: <defaults>
</compile_context>

<pallas_src>
import functools

import numpy as np
import jax
import jax.numpy as jnp
from jax.experimental import pallas as pl
from jax.experimental.pallas import tpu as pltpu


# ------------------------------- fused kernel --------------------------------


def _fused_upsample_kernel(x_ref, w1_ref, b1_ref, wc1_ref, bc1_ref, w2_ref, b2_ref,
                           o_ref, xpad_ref, zpad_ref, *, alpha1, alpha2):
    """Whole OurUpSample forward for one image, all intermediates in VMEM.

    x_ref  : (1, H, W, Cin)            NHWC input tile
    w1_ref : (3, 3, Cin, nc*r^2)       conv1 weights (BN folded)
    b1_ref : (1, nc*r^2)               conv1 bias (BN folded)
    wc1_ref: (nc*r^2, r^2*C1)          1x1-conv weights, pixel-shuffle folded (block diag)
    bc1_ref: (1, r^2*C1)               1x1-conv bias, tiled per subpixel
    w2_ref : (3, 3, r^2*C1, r^2*Cout)  3x3-conv weights, sub-pixel decomposed
    b2_ref : (1, r^2*Cout)             3x3-conv bias, tiled per subpixel
    o_ref  : (1, H*W, r^2*Cout)        out[0, h*W+w, (i*r+j)*Cout+o] = y[r*h+i, r*w+j, o]
    xpad_ref, zpad_ref: VMEM scratch for zero-padded tiles.
    """
    H = x_ref.shape[1]
    W = x_ref.shape[2]
    cin = x_ref.shape[3]
    c1 = w1_ref.shape[-1]        # nc * r^2
    c_mid = wc1_ref.shape[-1]    # r^2 * C1
    c_out = w2_ref.shape[-1]     # r^2 * Cout
    HW = H * W

    # ---- in-kernel zero padding of the input ---------------------------------
    xpad_ref[...] = jnp.zeros_like(xpad_ref)
    xpad_ref[1:H + 1, 1:W + 1, :] = x_ref[0]

    # ---- conv1 3x3 (BN scale/shift folded into w/b) + ReLU --------------------
    # 9 accumulating MXU pushes (K=Cin).  The slice+reshape is layout preserving
    # (W is a multiple of 8, lane dim = Cin stays last), so no relayout happens.
    acc1 = jnp.zeros((HW, c1), jnp.float32)
    for kh in range(3):
        for kw in range(3):
            patch = xpad_ref[kh:kh + H, kw:kw + W, :].reshape(HW, cin)
            acc1 = acc1 + jnp.dot(patch, w1_ref[kh, kw],
                                  preferred_element_type=jnp.float32)
    y1 = jnp.maximum(acc1 + b1_ref[...], 0.0)          # (HW, nc*r^2)

    # ---- pixel shuffle folded into the 1x1 conv (one matmul) + PReLU ----------
    z = jnp.dot(y1, wc1_ref[...], preferred_element_type=jnp.float32) + bc1_ref[...]
    z = jnp.where(z >= 0.0, z, alpha1 * z)             # (HW, r^2*C1), subpixel-major

    # ---- zero pad z (on the low-res grid) for the sub-pixel 3x3 conv ----------
    zpad_ref[...] = jnp.zeros_like(zpad_ref)
    zpad_ref[1:H + 1, 1:W + 1, :] = z.reshape(H, W, c_mid)

    # ---- conv2 3x3 on the upscaled grid, sub-pixel decomposed + PReLU ---------
    acc2 = jnp.zeros((HW, c_out), jnp.float32)
    for th in range(3):
        for tw in range(3):
            patch = zpad_ref[th:th + H, tw:tw + W, :].reshape(HW, c_mid)
            acc2 = acc2 + jnp.dot(patch, w2_ref[th, tw],
                                  preferred_element_type=jnp.float32)
    out = acc2 + b2_ref[...]
    out = jnp.where(out >= 0.0, out, alpha2 * out)
    o_ref[...] = out.reshape(1, HW, c_out).astype(o_ref.dtype)


# ------------------- host-side weight packing (pure NumPy) --------------------


def _pack_params(params, r):
    """Fold BN into conv1, pixel-shuffle into co1, sub-pixel decompose co2.

    Pure NumPy: packing is one-time host work and emits zero XLA ops.
    """
    rr = r * r
    f32 = np.float32

    w1 = np.asarray(params["w1"], f32)                   # (3,3,cin, nc*rr)
    b1 = np.asarray(params["b1"], f32)
    gamma = np.asarray(params["bn_gamma"], f32)
    beta = np.asarray(params["bn_beta"], f32)
    mean = np.asarray(params["bn_mean"], f32)
    var = np.asarray(params["bn_var"], f32)
    nc = gamma.shape[0]
    c1 = w1.shape[-1]

    # Inference BatchNorm folded through the shuffle: conv1 output channel
    # k = c*rr + (i*r+j) gets scale[c]/shift[c] with c = k // rr.
    scale = gamma / np.sqrt(var + 1e-5)
    shift = beta - mean * scale
    scale_k = np.repeat(scale, rr)
    shift_k = np.repeat(shift, rr)
    w1f = (w1 * scale_k).astype(f32)                      # broadcast over last dim
    b1f = (b1 * scale_k + shift_k).reshape(1, c1).astype(f32)

    # Pixel shuffle folded into the 1x1 conv:
    #   B[c*rr + p, p*C1 + o] = w_co1[c, o], zero elsewhere (p = i*r+j).
    w_co1 = np.asarray(params["w_co1"], f32)              # (nc, C1)
    c_1x1 = w_co1.shape[-1]
    eye = np.eye(rr, dtype=f32)
    wc1_block = (w_co1[:, None, None, :] * eye[None, :, :, None]) \
        .reshape(nc * rr, rr * c_1x1).astype(f32)
    bc1_tiled = np.tile(np.asarray(params["b_co1"], f32), rr).reshape(1, rr * c_1x1)

    # Sub-pixel decomposition of the 3x3 conv on the upscaled grid.
    # Output pixel (r*h+i, r*w+j) tap (kh,kw) reads the shuffled co1 output at
    # row r*(h+qh)+sh, col r*(w+qw)+sw  with  d = i+kh-1 = r*qh + sh  (qh in {-1,0,1}).
    w_co2 = np.asarray(params["w_co2"], f32)              # (3,3,C1,Cout)
    c_out = w_co2.shape[-1]
    w2_all = np.zeros((3, 3, rr * c_1x1, rr * c_out), f32)
    for i in range(r):
        for kh in range(3):
            d = i + kh - 1
            qh, sh = d // r, d % r
            for j in range(r):
                for kw in range(3):
                    e = j + kw - 1
                    qw, sw = e // r, e % r
                    bi = sh * r + sw                      # input subpixel block of z
                    bo = i * r + j                        # output subpixel block
                    w2_all[qh + 1, qw + 1,
                           bi * c_1x1:(bi + 1) * c_1x1,
                           bo * c_out:(bo + 1) * c_out] = w_co2[kh, kw]
    b2_tiled = np.tile(np.asarray(params["b_co2"], f32), rr).reshape(1, rr * c_out)

    return (jnp.asarray(w1f), jnp.asarray(b1f), jnp.asarray(wc1_block),
            jnp.asarray(bc1_tiled), jnp.asarray(w2_all), jnp.asarray(b2_tiled))


# --------------------------------- wrapper -----------------------------------


@functools.partial(jax.jit, static_argnames=("r", "alpha1", "alpha2"))
def _forward_impl(x_nchw, w1f, b1f, wc1, bc1, w2a, b2t, *, r, alpha1, alpha2):
    N, cin, H, W = x_nchw.shape
    c1 = w1f.shape[-1]
    c_mid = wc1.shape[-1]
    c_o = w2a.shape[-1]
    rr = r * r
    c_out = c_o // rr

    x_nhwc = jnp.transpose(x_nchw, (0, 2, 3, 1)).astype(jnp.float32)

    kernel = functools.partial(_fused_upsample_kernel, alpha1=alpha1, alpha2=alpha2)

    out_flat = pl.pallas_call(
        kernel,
        out_shape=jax.ShapeDtypeStruct((N, H * W, c_o), jnp.float32),
        grid=(N,),
        in_specs=[
            pl.BlockSpec((1, H, W, cin), lambda n: (n, 0, 0, 0)),
            pl.BlockSpec((3, 3, cin, c1), lambda n: (0, 0, 0, 0)),
            pl.BlockSpec((1, c1), lambda n: (0, 0)),
            pl.BlockSpec((c1, c_mid), lambda n: (0, 0)),
            pl.BlockSpec((1, c_mid), lambda n: (0, 0)),
            pl.BlockSpec((3, 3, c_mid, c_o), lambda n: (0, 0, 0, 0)),
            pl.BlockSpec((1, c_o), lambda n: (0, 0)),
        ],
        out_specs=pl.BlockSpec((1, H * W, c_o), lambda n: (n, 0, 0)),
        scratch_shapes=[
            pltpu.VMEM((H + 2, W + 2, cin), jnp.float32),    # padded input tile
            pltpu.VMEM((H + 2, W + 2, c_mid), jnp.float32),  # padded co1 output (subpixel-major)
        ],
        compiler_params=pltpu.CompilerParams(dimension_semantics=("parallel",)),
    )(x_nhwc, w1f, b1f, wc1, bc1, w2a, b2t)

    # (n, h*W+w, (i*r+j)*Cout + o)  ->  NCHW (n, o, r*h+i, r*w+j).  Tiny final tensor;
    # fused into the same XLA executable by jit.
    y = out_flat.reshape(N, H, W, r, r, c_out)
    y = jnp.transpose(y, (0, 5, 1, 3, 2, 4))
    return y.reshape(N, c_out, H * r, W * r)


def our_upsample_forward(x_nchw, params, r=2):
    """Equivalent of OurUpSample.forward; input/output in PyTorch NCHW layout."""
    w1f, b1f, wc1, bc1, w2a, b2t = _pack_params(params, r)
    return _forward_impl(x_nchw, w1f, b1f, wc1, bc1, w2a, b2t,
                         r=r, alpha1=float(params["alpha1"]),
                         alpha2=float(params["alpha2"]))


# ------------------------------ pure-JAX reference ----------------------------


def pixel_shuffle_nhwc(x, r):
    N, H, W, crr = x.shape
    C = crr // (r * r)
    x = x.reshape(N, H, W, C, r, r)
    x = x.transpose(0, 1, 4, 2, 5, 3)            # (N, H, i, W, j, C)
    return x.reshape(N, H * r, W * r, C)


def ref_forward(x_nchw, params, r=2):
    dn = ("NHWC", "HWIO", "NHWC")
    hi = jax.lax.Precision.HIGHEST
    x = jnp.transpose(x_nchw, (0, 2, 3, 1))
    y = jax.lax.conv_general_dilated(x, params["w1"], (1, 1), "SAME",
                                     dimension_numbers=dn, precision=hi) + params["b1"]
    y = pixel_shuffle_nhwc(y, r)
    scale = params["bn_gamma"] / jnp.sqrt(params["bn_var"] + 1e-5)
    shift = params["bn_beta"] - params["bn_mean"] * scale
    y = jnp.maximum(y * scale + shift, 0.0)
    w1x1 = params["w_co1"].reshape(1, 1, *params["w_co1"].shape)
    y = jax.lax.conv_general_dilated(y, w1x1, (1, 1), "SAME",
                                     dimension_numbers=dn, precision=hi) + params["b_co1"]
    y = jnp.where(y >= 0, y, params["alpha1"] * y)
    y = jax.lax.conv_general_dilated(y, params["w_co2"], (1, 1), "SAME",
                                     dimension_numbers=dn, precision=hi) + params["b_co2"]
    y = jnp.where(y >= 0, y, params["alpha2"] * y)
    return jnp.transpose(y, (0, 3, 1, 2))


# ----------------------------------- main -------------------------------------


if __name__ == "__main__":
    key = jax.random.PRNGKey(0)
    ks = jax.random.split(key, 12)

    N, in_nc, H, W = 2, 4, 16, 16
    nc, r = 8, 2

    x = jax.random.normal(ks[0], (N, in_nc, H, W), jnp.float32)

    params = dict(
        # U1 conv: in_nc -> nc * r^2, 3x3
        w1=0.1 * jax.random.normal(ks[1], (3, 3, in_nc, nc * r * r), jnp.float32),
        b1=0.1 * jax.random.normal(ks[2], (nc * r * r,), jnp.float32),
        # BatchNorm2d(nc) inference params
        bn_gamma=1.0 + 0.1 * jax.random.normal(ks[3], (nc,), jnp.float32),
        bn_beta=0.1 * jax.random.normal(ks[4], (nc,), jnp.float32),
        bn_mean=0.1 * jax.random.normal(ks[5], (nc,), jnp.float32),
        bn_var=1.0 + 0.1 * jnp.abs(jax.random.normal(ks[6], (nc,), jnp.float32)),
        # co1: nc -> 16, 1x1 conv + PReLU (PyTorch default alpha = 0.25)
        w_co1=0.1 * jax.random.normal(ks[7], (nc, 16), jnp.float32),
        b_co1=0.1 * jax.random.normal(ks[8], (16,), jnp.float32),
        alpha1=0.25,
        # co2: 16 -> 3, 3x3 conv + PReLU
        w_co2=0.1 * jax.random.normal(ks[9], (3, 3, 16, 3), jnp.float32),
        b_co2=0.1 * jax.random.normal(ks[10], (3,), jnp.float32),
        alpha2=0.25,
    )

    out = our_upsample_forward(x, params, r=r)
    out = jax.block_until_ready(out)
    assert out.shape == (N, 3, H * r, W * r), out.shape

    ref = ref_forward(x, params, r=r)
    np.testing.assert_allclose(np.asarray(out), np.asarray(ref), rtol=1e-2, atol=1e-2)

    print("KERNEL_OK")
</pallas_src>

<mosaic_0001>
module attributes {stable_mosaic.version = 11 : i64} {
  func.func @_fused_upsample_kernel(%arg0: i32, %arg1: memref<1x16x16x4xf32, #tpu.memory_space<vmem>>, %arg2: memref<3x3x4x32xf32, #tpu.memory_space<vmem>>, %arg3: memref<1x32xf32, #tpu.memory_space<vmem>>, %arg4: memref<32x64xf32, #tpu.memory_space<vmem>>, %arg5: memref<1x64xf32, #tpu.memory_space<vmem>>, %arg6: memref<3x3x64x12xf32, #tpu.memory_space<vmem>>, %arg7: memref<1x12xf32, #tpu.memory_space<vmem>>, %arg8: memref<1x256x12xf32, #tpu.memory_space<vmem>>, %arg9: memref<18x18x4xf32, #tpu.memory_space<vmem>>, %arg10: memref<18x18x64xf32, #tpu.memory_space<vmem>>) attributes {dimension_semantics = [#tpu.dimension_semantics<parallel>], iteration_bounds = array<i64: 2>, scalar_prefetch = 0 : i64, scratch_operands = 2 : i64, tpu.core_type = #tpu.core_type<tc>, window_params = [{transform_indices = @transform_0, window_bounds = array<i64: 1, 16, 16, 4>}, {pipeline_mode = #tpu.pipeline_mode<synchronous>, transform_indices = @transform_1, window_bounds = array<i64: 3, 3, 4, 32>}, {pipeline_mode = #tpu.pipeline_mode<synchronous>, transform_indices = @transform_2, window_bounds = array<i64: 1, 32>}, {pipeline_mode = #tpu.pipeline_mode<synchronous>, transform_indices = @transform_3, window_bounds = array<i64: 32, 64>}, {pipeline_mode = #tpu.pipeline_mode<synchronous>, transform_indices = @transform_4, window_bounds = array<i64: 1, 64>}, {pipeline_mode = #tpu.pipeline_mode<synchronous>, transform_indices = @transform_5, window_bounds = array<i64: 3, 3, 64, 12>}, {pipeline_mode = #tpu.pipeline_mode<synchronous>, transform_indices = @transform_6, window_bounds = array<i64: 1, 12>}, {transform_indices = @transform_7, window_bounds = array<i64: 1, 256, 12>}]} {
    %cst = arith.constant 0.000000e+00 : f32
    %0 = vector.broadcast %cst : f32 to vector<18x18x4xf32>
    %c0 = arith.constant 0 : index
    %c0_0 = arith.constant 0 : index
    %c0_1 = arith.constant 0 : index
    %1 = vector.load %arg9[%c0, %c0_0, %c0_1] : memref<18x18x4xf32, #tpu.memory_space<vmem>>, vector<18x18x4xf32>
    tpu.vector_store %arg9[%c0, %c0_0, %c0_1], %0 {strides = array<i32>} : memref<18x18x4xf32, #tpu.memory_space<vmem>>, vector<18x18x4xf32>,
    %c0_2 = arith.constant 0 : index
    %c0_3 = arith.constant 0 : index
    %c0_4 = arith.constant 0 : index
    %c0_5 = arith.constant 0 : index
    %2 = vector.load %arg1[%c0_2, %c0_3, %c0_4, %c0_5] : memref<1x16x16x4xf32, #tpu.memory_space<vmem>>, vector<1x16x16x4xf32>
    %3 = vector.shape_cast %2 : vector<1x16x16x4xf32> to vector<16x16x4xf32>
    %c1 = arith.constant 1 : index
    %c1_6 = arith.constant 1 : index
    %c0_7 = arith.constant 0 : index
    %4 = vector.load %arg9[%c1, %c1_6, %c0_7] : memref<18x18x4xf32, #tpu.memory_space<vmem>>, vector<16x16x4xf32>
    tpu.vector_store %arg9[%c1, %c1_6, %c0_7], %3 {strides = array<i32>} : memref<18x18x4xf32, #tpu.memory_space<vmem>>, vector<16x16x4xf32>,
    %cst_8 = arith.constant 0.000000e+00 : f32
    %5 = vector.broadcast %cst_8 : f32 to vector<256x32xf32>
    %c0_9 = arith.constant 0 : index
    %c0_10 = arith.constant 0 : index
    %c0_11 = arith.constant 0 : index
    %6 = vector.load %arg9[%c0_9, %c0_10, %c0_11] : memref<18x18x4xf32, #tpu.memory_space<vmem>>, vector<16x16x4xf32>
    %7 = vector.shape_cast %6 : vector<16x16x4xf32> to vector<256x4xf32>
    %c0_12 = arith.constant 0 : index
    %c0_13 = arith.constant 0 : index
    %c0_14 = arith.constant 0 : index
    %c0_15 = arith.constant 0 : index
    %8 = vector.load %arg2[%c0_12, %c0_13, %c0_14, %c0_15] : memref<3x3x4x32xf32, #tpu.memory_space<vmem>>, vector<1x1x4x32xf32>
    %9 = vector.shape_cast %8 : vector<1x1x4x32xf32> to vector<4x32xf32>
    %cst_16 = arith.constant dense<0.000000e+00> : vector<256x32xf32>
    %10 = tpu.matmul %7, %9, %cst_16 {dimension_numbers = #tpu.dot_dimension_numbers<[1], [0], [0], [1], [0, 0, 1, 1], [], []>} : vector<256x4xf32>, vector<4x32xf32>, vector<256x32xf32> -> vector<256x32xf32>
    %11 = arith.addf %5, %10 : vector<256x32xf32>
    %c0_17 = arith.constant 0 : index
    %c1_18 = arith.constant 1 : index
    %c0_19 = arith.constant 0 : index
    %12 = vector.load %arg9[%c0_17, %c1_18, %c0_19] : memref<18x18x4xf32, #tpu.memory_space<vmem>>, vector<16x16x4xf32>
    %13 = vector.shape_cast %12 : vector<16x16x4xf32> to vector<256x4xf32>
    %c0_20 = arith.constant 0 : index
    %c1_21 = arith.constant 1 : index
    %c0_22 = arith.constant 0 : index
    %c0_23 = arith.constant 0 : index
    %14 = vector.load %arg2[%c0_20, %c1_21, %c0_22, %c0_23] : memref<3x3x4x32xf32, #tpu.memory_space<vmem>>, vector<1x1x4x32xf32>
    %15 = vector.shape_cast %14 : vector<1x1x4x32xf32> to vector<4x32xf32>
    %cst_24 = arith.constant dense<0.000000e+00> : vector<256x32xf32>
    %16 = tpu.matmul %13, %15, %cst_24 {dimension_numbers = #tpu.dot_dimension_numbers<[1], [0], [0], [1], [0, 0, 1, 1], [], []>} : vector<256x4xf32>, vector<4x32xf32>, vector<256x32xf32> -> vector<256x32xf32>
    %17 = arith.addf %11, %16 : vector<256x32xf32>
    %c0_25 = arith.constant 0 : index
    %c2 = arith.constant 2 : index
    %c0_26 = arith.constant 0 : index
    %18 = vector.load %arg9[%c0_25, %c2, %c0_26] : memref<18x18x4xf32, #tpu.memory_space<vmem>>, vector<16x16x4xf32>
    %19 = vector.shape_cast %18 : vector<16x16x4xf32> to vector<256x4xf32>
    %c0_27 = arith.constant 0 : index
    %c2_28 = arith.constant 2 : index
    %c0_29 = arith.constant 0 : index
    %c0_30 = arith.constant 0 : index
    %20 = vector.load %arg2[%c0_27, %c2_28, %c0_29, %c0_30] : memref<3x3x4x32xf32, #tpu.memory_space<vmem>>, vector<1x1x4x32xf32>
    %21 = vector.shape_cast %20 : vector<1x1x4x32xf32> to vector<4x32xf32>
    %cst_31 = arith.constant dense<0.000000e+00> : vector<256x32xf32>
    %22 = tpu.matmul %19, %21, %cst_31 {dimension_numbers = #tpu.dot_dimension_numbers<[1], [0], [0], [1], [0, 0, 1, 1], [], []>} : vector<256x4xf32>, vector<4x32xf32>, vector<256x32xf32> -> vector<256x32xf32>
    %23 = arith.addf %17, %22 : vector<256x32xf32>
    %c1_32 = arith.constant 1 : index
    %c0_33 = arith.constant 0 : index
    %c0_34 = arith.constant 0 : index
    %24 = vector.load %arg9[%c1_32, %c0_33, %c0_34] : memref<18x18x4xf32, #tpu.memory_space<vmem>>, vector<16x16x4xf32>
    %25 = vector.shape_cast %24 : vector<16x16x4xf32> to vector<256x4xf32>
    %c1_35 = arith.constant 1 : index
    %c0_36 = arith.constant 0 : index
    %c0_37 = arith.constant 0 : index
    %c0_38 = arith.constant 0 : index
    %26 = vector.load %arg2[%c1_35, %c0_36, %c0_37, %c0_38] : memref<3x3x4x32xf32, #tpu.memory_space<vmem>>, vector<1x1x4x32xf32>
    %27 = vector.shape_cast %26 : vector<1x1x4x32xf32> to vector<4x32xf32>
    %cst_39 = arith.constant dense<0.000000e+00> : vector<256x32xf32>
    %28 = tpu.matmul %25, %27, %cst_39 {dimension_numbers = #tpu.dot_dimension_numbers<[1], [0], [0], [1], [0, 0, 1, 1], [], []>} : vector<256x4xf32>, vector<4x32xf32>, vector<256x32xf32> -> vector<256x32xf32>
    %29 = arith.addf %23, %28 : vector<256x32xf32>
    %c1_40 = arith.constant 1 : index
    %c1_41 = arith.constant 1 : index
    %c0_42 = arith.constant 0 : index
    %30 = vector.load %arg9[%c1_40, %c1_41, %c0_42] : memref<18x18x4xf32, #tpu.memory_space<vmem>>, vector<16x16x4xf32>
    %31 = vector.shape_cast %30 : vector<16x16x4xf32> to vector<256x4xf32>
    %c1_43 = arith.constant 1 : index
    %c1_44 = arith.constant 1 : index
    %c0_45 = arith.constant 0 : index
    %c0_46 = arith.constant 0 : index
    %32 = vector.load %arg2[%c1_43, %c1_44, %c0_45, %c0_46] : memref<3x3x4x32xf32, #tpu.memory_space<vmem>>, vector<1x1x4x32xf32>
    %33 = vector.shape_cast %32 : vector<1x1x4x32xf32> to vector<4x32xf32>
    %cst_47 = arith.constant dense<0.000000e+00> : vector<256x32xf32>
    %34 = tpu.matmul %31, %33, %cst_47 {dimension_numbers = #tpu.dot_dimension_numbers<[1], [0], [0], [1], [0, 0, 1, 1], [], []>} : vector<256x4xf32>, vector<4x32xf32>, vector<256x32xf32> -> vector<256x32xf32>
    %35 = arith.addf %29, %34 : vector<256x32xf32>
    %c1_48 = arith.constant 1 : index
    %c2_49 = arith.constant 2 : index
    %c0_50 = arith.constant 0 : index
    %36 = vector.load %arg9[%c1_48, %c2_49, %c0_50] : memref<18x18x4xf32, #tpu.memory_space<vmem>>, vector<16x16x4xf32>
    %37 = vector.shape_cast %36 : vector<16x16x4xf32> to vector<256x4xf32>
    %c1_51 = arith.constant 1 : index
    %c2_52 = arith.constant 2 : index
    %c0_53 = arith.constant 0 : index
    %c0_54 = arith.constant 0 : index
    %38 = vector.load %arg2[%c1_51, %c2_52, %c0_53, %c0_54] : memref<3x3x4x32xf32, #tpu.memory_space<vmem>>, vector<1x1x4x32xf32>
    %39 = vector.shape_cast %38 : vector<1x1x4x32xf32> to vector<4x32xf32>
    %cst_55 = arith.constant dense<0.000000e+00> : vector<256x32xf32>
    %40 = tpu.matmul %37, %39, %cst_55 {dimension_numbers = #tpu.dot_dimension_numbers<[1], [0], [0], [1], [0, 0, 1, 1], [], []>} : vector<256x4xf32>, vector<4x32xf32>, vector<256x32xf32> -> vector<256x32xf32>
    %41 = arith.addf %35, %40 : vector<256x32xf32>
    %c2_56 = arith.constant 2 : index
    %c0_57 = arith.constant 0 : index
    %c0_58 = arith.constant 0 : index
    %42 = vector.load %arg9[%c2_56, %c0_57, %c0_58] : memref<18x18x4xf32, #tpu.memory_space<vmem>>, vector<16x16x4xf32>
    %43 = vector.shape_cast %42 : vector<16x16x4xf32> to vector<256x4xf32>
    %c2_59 = arith.constant 2 : index
    %c0_60 = arith.constant 0 : index
    %c0_61 = arith.constant 0 : index
    %c0_62 = arith.constant 0 : index
    %44 = vector.load %arg2[%c2_59, %c0_60, %c0_61, %c0_62] : memref<3x3x4x32xf32, #tpu.memory_space<vmem>>, vector<1x1x4x32xf32>
    %45 = vector.shape_cast %44 : vector<1x1x4x32xf32> to vector<4x32xf32>
    %cst_63 = arith.constant dense<0.000000e+00> : vector<256x32xf32>
    %46 = tpu.matmul %43, %45, %cst_63 {dimension_numbers = #tpu.dot_dimension_numbers<[1], [0], [0], [1], [0, 0, 1, 1], [], []>} : vector<256x4xf32>, vector<4x32xf32>, vector<256x32xf32> -> vector<256x32xf32>
    %47 = arith.addf %41, %46 : vector<256x32xf32>
    %c2_64 = arith.constant 2 : index
    %c1_65 = arith.constant 1 : index
    %c0_66 = arith.constant 0 : index
    %48 = vector.load %arg9[%c2_64, %c1_65, %c0_66] : memref<18x18x4xf32, #tpu.memory_space<vmem>>, vector<16x16x4xf32>
    %49 = vector.shape_cast %48 : vector<16x16x4xf32> to vector<256x4xf32>
    %c2_67 = arith.constant 2 : index
    %c1_68 = arith.constant 1 : index
    %c0_69 = arith.constant 0 : index
    %c0_70 = arith.constant 0 : index
    %50 = vector.load %arg2[%c2_67, %c1_68, %c0_69, %c0_70] : memref<3x3x4x32xf32, #tpu.memory_space<vmem>>, vector<1x1x4x32xf32>
    %51 = vector.shape_cast %50 : vector<1x1x4x32xf32> to vector<4x32xf32>
    %cst_71 = arith.constant dense<0.000000e+00> : vector<256x32xf32>
    %52 = tpu.matmul %49, %51, %cst_71 {dimension_numbers = #tpu.dot_dimension_numbers<[1], [0], [0], [1], [0, 0, 1, 1], [], []>} : vector<256x4xf32>, vector<4x32xf32>, vector<256x32xf32> -> vector<256x32xf32>
    %53 = arith.addf %47, %52 : vector<256x32xf32>
    %c2_72 = arith.constant 2 : index
    %c2_73 = arith.constant 2 : index
    %c0_74 = arith.constant 0 : index
    %54 = vector.load %arg9[%c2_72, %c2_73, %c0_74] : memref<18x18x4xf32, #tpu.memory_space<vmem>>, vector<16x16x4xf32>
    %55 = vector.shape_cast %54 : vector<16x16x4xf32> to vector<256x4xf32>
    %c2_75 = arith.constant 2 : index
    %c2_76 = arith.constant 2 : index
    %c0_77 = arith.constant 0 : index
    %c0_78 = arith.constant 0 : index
    %56 = vector.load %arg2[%c2_75, %c2_76, %c0_77, %c0_78] : memref<3x3x4x32xf32, #tpu.memory_space<vmem>>, vector<1x1x4x32xf32>
    %57 = vector.shape_cast %56 : vector<1x1x4x32xf32> to vector<4x32xf32>
    %cst_79 = arith.constant dense<0.000000e+00> : vector<256x32xf32>
    %58 = tpu.matmul %55, %57, %cst_79 {dimension_numbers = #tpu.dot_dimension_numbers<[1], [0], [0], [1], [0, 0, 1, 1], [], []>} : vector<256x4xf32>, vector<4x32xf32>, vector<256x32xf32> -> vector<256x32xf32>
    %59 = arith.addf %53, %58 : vector<256x32xf32>
    %c0_80 = arith.constant 0 : index
    %c0_81 = arith.constant 0 : index
    %60 = vector.load %arg3[%c0_80, %c0_81] : memref<1x32xf32, #tpu.memory_space<vmem>>, vector<1x32xf32>
    %61 = vector.broadcast %60 : vector<1x32xf32> to vector<256x32xf32>
    %62 = arith.addf %59, %61 : vector<256x32xf32>
    %cst_82 = arith.constant 0.000000e+00 : f32
    %63 = vector.broadcast %cst_82 : f32 to vector<256x32xf32>
    %64 = arith.maximumf %62, %63 : vector<256x32xf32>
    %c0_83 = arith.constant 0 : index
    %c0_84 = arith.constant 0 : index
    %65 = vector.load %arg4[%c0_83, %c0_84] : memref<32x64xf32, #tpu.memory_space<vmem>>, vector<32x64xf32>
    %cst_85 = arith.constant dense<0.000000e+00> : vector<256x64xf32>
    %66 = tpu.matmul %64, %65, %cst_85 {dimension_numbers = #tpu.dot_dimension_numbers<[1], [0], [0], [1], [0, 0, 1, 1], [], []>} : vector<256x32xf32>, vector<32x64xf32>, vector<256x64xf32> -> vector<256x64xf32>
    %c0_86 = arith.constant 0 : index
    %c0_87 = arith.constant 0 : index
    %67 = vector.load %arg5[%c0_86, %c0_87] : memref<1x64xf32, #tpu.memory_space<vmem>>, vector<1x64xf32>
    %68 = vector.broadcast %67 : vector<1x64xf32> to vector<256x64xf32>
    %69 = arith.addf %66, %68 : vector<256x64xf32>
    %cst_88 = arith.constant 0.000000e+00 : f32
    %70 = vector.broadcast %cst_88 : f32 to vector<256x64xf32>
    %71 = arith.cmpf oge, %69, %70 : vector<256x64xf32>
    %cst_89 = arith.constant 2.500000e-01 : f32
    %72 = vector.broadcast %cst_89 : f32 to vector<256x64xf32>
    %73 = arith.mulf %72, %69 : vector<256x64xf32>
    %74 = arith.select %71, %69, %73 : vector<256x64xi1>, vector<256x64xf32>
    %cst_90 = arith.constant 0.000000e+00 : f32
    %75 = vector.broadcast %cst_90 : f32 to vector<18x18x64xf32>
    %c0_91 = arith.constant 0 : index
    %c0_92 = arith.constant 0 : index
    %c0_93 = arith.constant 0 : index
    %76 = vector.load %arg10[%c0_91, %c0_92, %c0_93] : memref<18x18x64xf32, #tpu.memory_space<vmem>>, vector<18x18x64xf32>
    tpu.vector_store %arg10[%c0_91, %c0_92, %c0_93], %75 {strides = array<i32>} : memref<18x18x64xf32, #tpu.memory_space<vmem>>, vector<18x18x64xf32>,
    %77 = vector.shape_cast %74 : vector<256x64xf32> to vector<16x16x64xf32>
    %c1_94 = arith.constant 1 : index
    %c1_95 = arith.constant 1 : index
    %c0_96 = arith.constant 0 : index
    %78 = vector.load %arg10[%c1_94, %c1_95, %c0_96] : memref<18x18x64xf32, #tpu.memory_space<vmem>>, vector<16x16x64xf32>
    tpu.vector_store %arg10[%c1_94, %c1_95, %c0_96], %77 {strides = array<i32>} : memref<18x18x64xf32, #tpu.memory_space<vmem>>, vector<16x16x64xf32>,
    %cst_97 = arith.constant 0.000000e+00 : f32
    %79 = vector.broadcast %cst_97 : f32 to vector<256x12xf32>
    %c0_98 = arith.constant 0 : index
    %c0_99 = arith.constant 0 : index
    %c0_100 = arith.constant 0 : index
    %80 = vector.load %arg10[%c0_98, %c0_99, %c0_100] : memref<18x18x64xf32, #tpu.memory_space<vmem>>, vector<16x16x64xf32>
    %81 = vector.shape_cast %80 : vector<16x16x64xf32> to vector<256x64xf32>
    %c0_101 = arith.constant 0 : index
    %c0_102 = arith.constant 0 : index
    %c0_103 = arith.constant 0 : index
    %c0_104 = arith.constant 0 : index
    %82 = vector.load %arg6[%c0_101, %c0_102, %c0_103, %c0_104] : memref<3x3x64x12xf32, #tpu.memory_space<vmem>>, vector<1x1x64x12xf32>
    %83 = vector.shape_cast %82 : vector<1x1x64x12xf32> to vector<64x12xf32>
    %cst_105 = arith.constant dense<0.000000e+00> : vector<256x12xf32>
    %84 = tpu.matmul %81, %83, %cst_105 {dimension_numbers = #tpu.dot_dimension_numbers<[1], [0], [0], [1], [0, 0, 1, 1], [], []>} : vector<256x64xf32>, vector<64x12xf32>, vector<256x12xf32> -> vector<256x12xf32>
    %85 = arith.addf %79, %84 : vector<256x12xf32>
    %c0_106 = arith.constant 0 : index
    %c1_107 = arith.constant 1 : index
    %c0_108 = arith.constant 0 : index
    %86 = vector.load %arg10[%c0_106, %c1_107, %c0_108] : memref<18x18x64xf32, #tpu.memory_space<vmem>>, vector<16x16x64xf32>
    %87 = vector.shape_cast %86 : vector<16x16x64xf32> to vector<256x64xf32>
    %c0_109 = arith.constant 0 : index
    %c1_110 = arith.constant 1 : index
    %c0_111 = arith.constant 0 : index
    %c0_112 = arith.constant 0 : index
    %88 = vector.load %arg6[%c0_109, %c1_110, %c0_111, %c0_112] : memref<3x3x64x12xf32, #tpu.memory_space<vmem>>, vector<1x1x64x12xf32>
    %89 = vector.shape_cast %88 : vector<1x1x64x12xf32> to vector<64x12xf32>
    %cst_113 = arith.constant dense<0.000000e+00> : vector<256x12xf32>
    %90 = tpu.matmul %87, %89, %cst_113 {dimension_numbers = #tpu.dot_dimension_numbers<[1], [0], [0], [1], [0, 0, 1, 1], [], []>} : vector<256x64xf32>, vector<64x12xf32>, vector<256x12xf32> -> vector<256x12xf32>
    %91 = arith.addf %85, %90 : vector<256x12xf32>
    %c0_114 = arith.constant 0 : index
    %c2_115 = arith.constant 2 : index
    %c0_116 = arith.constant 0 : index
    %92 = vector.load %arg10[%c0_114, %c2_115, %c0_116] : memref<18x18x64xf32, #tpu.memory_space<vmem>>, vector<16x16x64xf32>
    %93 = vector.shape_cast %92 : vector<16x16x64xf32> to vector<256x64xf32>
    %c0_117 = arith.constant 0 : index
    %c2_118 = arith.constant 2 : index
    %c0_119 = arith.constant 0 : index
    %c0_120 = arith.constant 0 : index
    %94 = vector.load %arg6[%c0_117, %c2_118, %c0_119, %c0_120] : memref<3x3x64x12xf32, #tpu.memory_space<vmem>>, vector<1x1x64x12xf32>
    %95 = vector.shape_cast %94 : vector<1x1x64x12xf32> to vector<64x12xf32>
    %cst_121 = arith.constant dense<0.000000e+00> : vector<256x12xf32>
    %96 = tpu.matmul %93, %95, %cst_121 {dimension_numbers = #tpu.dot_dimension_numbers<[1], [0], [0], [1], [0, 0, 1, 1], [], []>} : vector<256x64xf32>, vector<64x12xf32>, vector<256x12xf32> -> vector<256x12xf32>
    %97 = arith.addf %91, %96 : vector<256x12xf32>
    %c1_122 = arith.constant 1 : index
    %c0_123 = arith.constant 0 : index
    %c0_124 = arith.constant 0 : index
    %98 = vector.load %arg10[%c1_122, %c0_123, %c0_124] : memref<18x18x64xf32, #tpu.memory_space<vmem>>, vector<16x16x64xf32>
    %99 = vector.shape_cast %98 : vector<16x16x64xf32> to vector<256x64xf32>
    %c1_125 = arith.constant 1 : index
    %c0_126 = arith.constant 0 : index
    %c0_127 = arith.constant 0 : index
    %c0_128 = arith.constant 0 : index
    %100 = vector.load %arg6[%c1_125, %c0_126, %c0_127, %c0_128] : memref<3x3x64x12xf32, #tpu.memory_space<vmem>>, vector<1x1x64x12xf32>
    %101 = vector.shape_cast %100 : vector<1x1x64x12xf32> to vector<64x12xf32>
    %cst_129 = arith.constant dense<0.000000e+00> : vector<256x12xf32>
    %102 = tpu.matmul %99, %101, %cst_129 {dimension_numbers = #tpu.dot_dimension_numbers<[1], [0], [0], [1], [0, 0, 1, 1], [], []>} : vector<256x64xf32>, vector<64x12xf32>, vector<256x12xf32> -> vector<256x12xf32>
    %103 = arith.addf %97, %102 : vector<256x12xf32>
    %c1_130 = arith.constant 1 : index
    %c1_131 = arith.constant 1 : index
    %c0_132 = arith.constant 0 : index
    %104 = vector.load %arg10[%c1_130, %c1_131, %c0_132] : memref<18x18x64xf32, #tpu.memory_space<vmem>>, vector<16x16x64xf32>
    %105 = vector.shape_cast %104 : vector<16x16x64xf32> to vector<256x64xf32>
    %c1_133 = arith.constant 1 : index
    %c1_134 = arith.constant 1 : index
    %c0_135 = arith.constant 0 : index
    %c0_136 = arith.constant 0 : index
    %106 = vector.load %arg6[%c1_133, %c1_134, %c0_135, %c0_136] : memref<3x3x64x12xf32, #tpu.memory_space<vmem>>, vector<1x1x64x12xf32>
    %107 = vector.shape_cast %106 : vector<1x1x64x12xf32> to vector<64x12xf32>
    %cst_137 = arith.constant dense<0.000000e+00> : vector<256x12xf32>
    %108 = tpu.matmul %105, %107, %cst_137 {dimension_numbers = #tpu.dot_dimension_numbers<[1], [0], [0], [1], [0, 0, 1, 1], [], []>} : vector<256x64xf32>, vector<64x12xf32>, vector<256x12xf32> -> vector<256x12xf32>
    %109 = arith.addf %103, %108 : vector<256x12xf32>
    %c1_138 = arith.constant 1 : index
    %c2_139 = arith.constant 2 : index
    %c0_140 = arith.constant 0 : index
    %110 = vector.load %arg10[%c1_138, %c2_139, %c0_140] : memref<18x18x64xf32, #tpu.memory_space<vmem>>, vector<16x16x64xf32>
    %111 = vector.shape_cast %110 : vector<16x16x64xf32> to vector<256x64xf32>
    %c1_141 = arith.constant 1 : index
    %c2_142 = arith.constant 2 : index
    %c0_143 = arith.constant 0 : index
    %c0_144 = arith.constant 0 : index
    %112 = vector.load %arg6[%c1_141, %c2_142, %c0_143, %c0_144] : memref<3x3x64x12xf32, #tpu.memory_space<vmem>>, vector<1x1x64x12xf32>
    %113 = vector.shape_cast %112 : vector<1x1x64x12xf32> to vector<64x12xf32>
    %cst_145 = arith.constant dense<0.000000e+00> : vector<256x12xf32>
    %114 = tpu.matmul %111, %113, %cst_145 {dimension_numbers = #tpu.dot_dimension_numbers<[1], [0], [0], [1], [0, 0, 1, 1], [], []>} : vector<256x64xf32>, vector<64x12xf32>, vector<256x12xf32> -> vector<256x12xf32>
    %115 = arith.addf %109, %114 : vector<256x12xf32>
    %c2_146 = arith.constant 2 : index
    %c0_147 = arith.constant 0 : index
    %c0_148 = arith.constant 0 : index
    %116 = vector.load %arg10[%c2_146, %c0_147, %c0_148] : memref<18x18x64xf32, #tpu.memory_space<vmem>>, vector<16x16x64xf32>
    %117 = vector.shape_cast %116 : vector<16x16x64xf32> to vector<256x64xf32>
    %c2_149 = arith.constant 2 : index
    %c0_150 = arith.constant 0 : index
    %c0_151 = arith.constant 0 : index
    %c0_152 = arith.constant 0 : index
    %118 = vector.load %arg6[%c2_149, %c0_150, %c0_151, %c0_152] : memref<3x3x64x12xf32, #tpu.memory_space<vmem>>, vector<1x1x64x12xf32>
    %119 = vector.shape_cast %118 : vector<1x1x64x12xf32> to vector<64x12xf32>
    %cst_153 = arith.constant dense<0.000000e+00> : vector<256x12xf32>
    %120 = tpu.matmul %117, %119, %cst_153 {dimension_numbers = #tpu.dot_dimension_numbers<[1], [0], [0], [1], [0, 0, 1, 1], [], []>} : vector<256x64xf32>, vector<64x12xf32>, vector<256x12xf32> -> vector<256x12xf32>
    %121 = arith.addf %115, %120 : vector<256x12xf32>
    %c2_154 = arith.constant 2 : index
    %c1_155 = arith.constant 1 : index
    %c0_156 = arith.constant 0 : index
    %122 = vector.load %arg10[%c2_154, %c1_155, %c0_156] : memref<18x18x64xf32, #tpu.memory_space<vmem>>, vector<16x16x64xf32>
    %123 = vector.shape_cast %122 : vector<16x16x64xf32> to vector<256x64xf32>
    %c2_157 = arith.constant 2 : index
    %c1_158 = arith.constant 1 : index
    %c0_159 = arith.constant 0 : index
    %c0_160 = arith.constant 0 : index
    %124 = vector.load %arg6[%c2_157, %c1_158, %c0_159, %c0_160] : memref<3x3x64x12xf32, #tpu.memory_space<vmem>>, vector<1x1x64x12xf32>
    %125 = vector.shape_cast %124 : vector<1x1x64x12xf32> to vector<64x12xf32>
    %cst_161 = arith.constant dense<0.000000e+00> : vector<256x12xf32>
    %126 = tpu.matmul %123, %125, %cst_161 {dimension_numbers = #tpu.dot_dimension_numbers<[1], [0], [0], [1], [0, 0, 1, 1], [], []>} : vector<256x64xf32>, vector<64x12xf32>, vector<256x12xf32> -> vector<256x12xf32>
    %127 = arith.addf %121, %126 : vector<256x12xf32>
    %c2_162 = arith.constant 2 : index
    %c2_163 = arith.constant 2 : index
    %c0_164 = arith.constant 0 : index
    %128 = vector.load %arg10[%c2_162, %c2_163, %c0_164] : memref<18x18x64xf32, #tpu.memory_space<vmem>>, vector<16x16x64xf32>
    %129 = vector.shape_cast %128 : vector<16x16x64xf32> to vector<256x64xf32>
    %c2_165 = arith.constant 2 : index
    %c2_166 = arith.constant 2 : index
    %c0_167 = arith.constant 0 : index
    %c0_168 = arith.constant 0 : index
    %130 = vector.load %arg6[%c2_165, %c2_166, %c0_167, %c0_168] : memref<3x3x64x12xf32, #tpu.memory_space<vmem>>, vector<1x1x64x12xf32>
    %131 = vector.shape_cast %130 : vector<1x1x64x12xf32> to vector<64x12xf32>
    %cst_169 = arith.constant dense<0.000000e+00> : vector<256x12xf32>
    %132 = tpu.matmul %129, %131, %cst_169 {dimension_numbers = #tpu.dot_dimension_numbers<[1], [0], [0], [1], [0, 0, 1, 1], [], []>} : vector<256x64xf32>, vector<64x12xf32>, vector<256x12xf32> -> vector<256x12xf32>
    %133 = arith.addf %127, %132 : vector<256x12xf32>
    %c0_170 = arith.constant 0 : index
    %c0_171 = arith.constant 0 : index
    %134 = vector.load %arg7[%c0_170, %c0_171] : memref<1x12xf32, #tpu.memory_space<vmem>>, vector<1x12xf32>
    %135 = vector.broadcast %134 : vector<1x12xf32> to vector<256x12xf32>
    %136 = arith.addf %133, %135 : vector<256x12xf32>
    %cst_172 = arith.constant 0.000000e+00 : f32
    %137 = vector.broadcast %cst_172 : f32 to vector<256x12xf32>
    %138 = arith.cmpf oge, %136, %137 : vector<256x12xf32>
    %cst_173 = arith.constant 2.500000e-01 : f32
    %139 = vector.broadcast %cst_173 : f32 to vector<256x12xf32>
    %140 = arith.mulf %139, %136 : vector<256x12xf32>
    %141 = arith.select %138, %136, %140 : vector<256x12xi1>, vector<256x12xf32>
    %142 = vector.shape_cast %141 : vector<256x12xf32> to vector<1x256x12xf32>
    %c0_174 = arith.constant 0 : index
    %c0_175 = arith.constant 0 : index
    %c0_176 = arith.constant 0 : index
    %143 = vector.load %arg8[%c0_174, %c0_175, %c0_176] : memref<1x256x12xf32, #tpu.memory_space<vmem>>, vector<1x256x12xf32>
    tpu.vector_store %arg8[%c0_174, %c0_175, %c0_176], %142 {strides = array<i32>} : memref<1x256x12xf32, #tpu.memory_space<vmem>>, vector<1x256x12xf32>,
    return
  }
  func.func @transform_0(%arg0: i32) -> (i32, i32, i32, i32) {
    %c0_i32 = arith.constant 0 : i32
    %c0_i32_0 = arith.constant 0 : i32
    %c0_i32_1 = arith.constant 0 : i32
    %c0_i32_2 = arith.constant 0 : i32
    return %arg0, %c0_i32, %c0_i32_0, %c0_i32_1 : i32, i32, i32, i32
  }
  func.func @transform_1(%arg0: i32) -> (i32, i32, i32, i32) {
    %c0_i32 = arith.constant 0 : i32
    %c0_i32_0 = arith.constant 0 : i32
    %c0_i32_1 = arith.constant 0 : i32
    %c0_i32_2 = arith.constant 0 : i32
    %c0_i32_3 = arith.constant 0 : i32
    return %c0_i32, %c0_i32_0, %c0_i32_1, %c0_i32_2 : i32, i32, i32, i32
  }
  func.func @transform_2(%arg0: i32) -> (i32, i32) {
    %c0_i32 = arith.constant 0 : i32
    %c0_i32_0 = arith.constant 0 : i32
    %c0_i32_1 = arith.constant 0 : i32
    return %c0_i32, %c0_i32_0 : i32, i32
  }
  func.func @transform_3(%arg0: i32) -> (i32, i32) {
    %c0_i32 = arith.constant 0 : i32
    %c0_i32_0 = arith.constant 0 : i32
    %c0_i32_1 = arith.constant 0 : i32
    return %c0_i32, %c0_i32_0 : i32, i32
  }
  func.func @transform_4(%arg0: i32) -> (i32, i32) {
    %c0_i32 = arith.constant 0 : i32
    %c0_i32_0 = arith.constant 0 : i32
    %c0_i32_1 = arith.constant 0 : i32
    return %c0_i32, %c0_i32_0 : i32, i32
  }
  func.func @transform_5(%arg0: i32) -> (i32, i32, i32, i32) {
    %c0_i32 = arith.constant 0 : i32
    %c0_i32_0 = arith.constant 0 : i32
    %c0_i32_1 = arith.constant 0 : i32
    %c0_i32_2 = arith.constant 0 : i32
    %c0_i32_3 = arith.constant 0 : i32
    return %c0_i32, %c0_i32_0, %c0_i32_1, %c0_i32_2 : i32, i32, i32, i32
  }
  func.func @transform_6(%arg0: i32) -> (i32, i32) {
    %c0_i32 = arith.constant 0 : i32
    %c0_i32_0 = arith.constant 0 : i32
    %c0_i32_1 = arith.constant 0 : i32
    return %c0_i32, %c0_i32_0 : i32, i32
  }
  func.func @transform_7(%arg0: i32) -> (i32, i32, i32) {
    %c0_i32 = arith.constant 0 : i32
    %c0_i32_0 = arith.constant 0 : i32
    %c0_i32_1 = arith.constant 0 : i32
    return %arg0, %c0_i32, %c0_i32_0 : i32, i32, i32
  }
}

</mosaic_0001>

<bundles_post_ra>
// kernel: _forward_impl.1
= control target key start
LH: loop header
LB: loop body
LE: loop exit
PB: predicated region body
PF: predicated region fallthrough
CT: control target
= control target key end

     0   :  { %12 = vsyncpa [#allocation5], 0  ;;  %s14103_s0 = inlined_call_operand.vmem [shape: f32[2,16,16,4], index: 0, kind: input, shape index: {}]   ;;  %s14104_s1 = inlined_call_operand.hbm [shape: f32[3,3,4,32], index: 1, kind: input, shape index: {}]   ;;  %s14105_s2 = inlined_call_operand.hbm [shape: f32[1,32], index: 2, kind: input, shape index: {}]   ;;  %s14106_s3 = inlined_call_operand.hbm [shape: f32[32,64], index: 3, kind: input, shape index: {}]   ;;  %s14107_s4 = inlined_call_operand.hbm [shape: f32[1,64], index: 4, kind: input, shape index: {}]   ;;  %s14108_s5 = inlined_call_operand.vmem [shape: f32[3,3,64,12], index: 5, kind: input, shape index: {}]   ;;  %s14109_s6 = inlined_call_operand.hbm [shape: f32[1,12], index: 6, kind: input, shape index: {}]   ;;  %s14110_s7 = inlined_call_operand.vmem [shape: f32[2,256,12], index: 7, kind: output, shape index: {}]  }
   0x1   :  { %13 = vsyncpa [#allocation7], 0 }
   0x2   :  { %14 = vsyncpa [#allocation10], 0  ;;  %s11682_s24 = smov 0  }
   0x3 LB: > { %s11632_s25 = smov [#allocation6]   ;;  %s11688_s27 = sadd.s32 4294967295, %s11630_s24   ;;  %s11630_s24 = sphi %s11682_s24, %s20_s24  }
   0x4   : > { %s229_s26 = sshll.u32 %s11632_s25, 4  ;;  %p8260_p0 = scmp.ge.s32.totalorder %s11630_s24, 1  ;;  %s11693_s26 = int_to_ptr.vmem [resolvable:$true] %s229_s26 }
   0x5   : > { %p203_p1 = scmp.lt.s32.totalorder %s11630_s24, 3  ;;  %p14111_p2 = scmp.eq.s32.totalorder %s11688_s27, 0 }
   0x6   : > { %s11633_s29 = smov [#allocation9]   ;;  %s11634_s8 = smov [#allocation4]  }
   0x7   : > { %p11695_p3 = pnand %p8260_p0, %p203_p1  ;;  %s253_s30 = sshll.u32 %s11633_s29, 4  ;;  %s11701_s30 = int_to_ptr.vmem [resolvable:$true] %s253_s30 }
   0x8   : > { %s215_s9 = sshll.u32 %s11634_s8, 4  ;;  %s11635_s11 = smov [#allocation8]   ;;  %s11709_s9 = int_to_ptr.vmem [resolvable:$true] %s215_s9 }
   0x9   : > { %s14233_s28 = scalar_select %p11695_p3, 1, 0 }
   0xa   : > { %p11428_p4 = pneg %p11695_p3  ;;  %s11711_s12 = sshll.u32 %s11635_s11, 4  ;;  %s240_s12 = int_to_ptr.vmem [resolvable:$true] %s11711_s12 }
   0xb   : > { %s11472_s15 = scalar_lea.hbm %s14105_s2, 16 }
   0xc   : > { %p11705_p5 = pnand %p14111_p2, %p11428_p4  ;;  %p11473_p6 = scmp.ne.s32.totalorder %s14105_s2, %s11472_s15 }
   0xd   : > { %p11479_p10 = scmp.lt.u32.totalorder %s11472_s15, %s14105_s2 }
   0xe   : > { %p11721_p7 = pneg %p11705_p5 }
  0x10   : > { %p11475_p8 = pnand %p11721_p7, %p11473_p6 }
  0x12   : > { %p11476_p9 = pneg %p11475_p8 }
  0x14   : > { %p11481_p11 = pnand %p11479_p10, %p11476_p9 }
  0x16   : > { %11484 = shalt.err (!%p11481_p11)
}
  0x17   : > { %s11485_s21 = scalar_lea.vmem %s11693_s26, 16  ;;  %s11492_s22 = scalar_lea.vmem %s11693_s26, 32 }
  0x18   : > { %p11486_p12 = scmp.ne.s32.totalorder %s11693_s26, %s11485_s21  ;;  %p11493_p1 = scmp.lt.s32.totalorder %s11693_s26, %s11693_s26 }
  0x19   : > { %p11494_p4 = scmp.lt.s32.totalorder %s11492_s22, %s11485_s21 }
  0x1a   : > { %p11488_p13 = pnand %p11486_p12, %p11721_p7 }
  0x1b   : > { %p11495_p6 = por %p11494_p4, %p11493_p1 }
  0x1c   : > { %p11489_p0 = pneg %p11488_p13 }
  0x1e   : > { %p11496_p8 = pnand %p11495_p6, %p11489_p0 }
  0x20   : > { %11499 = shalt.err (!%p11496_p8)
}
  0x21   : > { %11434 = dma.hbm_to_vmem [thread:$0]  (!%p11705_p5), %s14105_s2, 16, %s11693_s26, [#allocation7]  }
  0x22   : > { %s11500_s11 = scalar_lea.hbm %s14107_s4, 16 }
  0x23   : > { %p11501_p9 = scmp.ne.s32.totalorder %s14107_s4, %s11500_s11  ;;  %p11507_p12 = scmp.lt.u32.totalorder %s11500_s11, %s14107_s4 }
  0x25   : > { %p11503_p10 = pnand %p11501_p9, %p11721_p7 }
  0x27   : > { %p11504_p11 = pneg %p11503_p10 }
  0x29   : > { %p11509_p13 = pnand %p11507_p12, %p11504_p11 }
  0x2b   : > { %11512 = shalt.err (!%p11509_p13)
}
  0x2c   : > { %s11513_s26 = scalar_lea.vmem %s11701_s30, 16  ;;  %s11520_s17 = scalar_lea.vmem %s11701_s30, 32 }
  0x2d   : > { %p11514_p0 = scmp.ne.s32.totalorder %s11701_s30, %s11513_s26  ;;  %p11521_p6 = scmp.lt.s32.totalorder %s11701_s30, %s11701_s30 }
  0x2e   : > { %p11522_p8 = scmp.lt.s32.totalorder %s11520_s17, %s11513_s26 }
  0x2f   : > { %p11516_p1 = pnand %p11514_p0, %p11721_p7 }
  0x30   : > { %p11523_p9 = por %p11522_p8, %p11521_p6 }
  0x31   : > { %p11517_p4 = pneg %p11516_p1 }
  0x33   : > { %p11524_p10 = pnand %p11523_p9, %p11517_p4 }
  0x35   : > { %11527 = shalt.err (!%p11524_p10)
}
  0x36   : > { %11440 = dma.hbm_to_vmem [thread:$0]  (!%p11705_p5), %s14107_s4, 16, %s11701_s30, [#allocation10]  }
  0x37   : > { %s11528_s23 = scalar_lea.hbm %s14104_s1, 576 }
  0x38   : > { %p11529_p11 = scmp.ne.s32.totalorder %s14104_s1, %s11528_s23  ;;  %p11535_p0 = scmp.lt.u32.totalorder %s11528_s23, %s14104_s1 }
  0x3a   : > { %p11531_p12 = pnand %p11529_p11, %p11721_p7 }
  0x3c   : > { %p11532_p13 = pneg %p11531_p12 }
  0x3e   : > { %p11537_p1 = pnand %p11535_p0, %p11532_p13 }
  0x40   : > { %11540 = shalt.err (!%p11537_p1)
}
  0x41   : > { %s11541_s30 = scalar_lea.vmem %s11709_s9, 576  ;;  %p11549_p9 = scmp.lt.s32.totalorder %s11709_s9, %s11709_s9 }
  0x42   : > { %p11542_p4 = scmp.ne.s32.totalorder %s11709_s9, %s11541_s30  ;;  %p11550_p10 = scmp.lt.s32.totalorder %s11541_s30, %s11541_s30 }
  0x44   : > { %p11544_p6 = pnand %p11542_p4, %p11721_p7  ;;  %p11551_p11 = por %p11550_p10, %p11549_p9 }
  0x46   : > { %p11545_p8 = pneg %p11544_p6 }
  0x48   : > { %p11552_p12 = pnand %p11551_p11, %p11545_p8 }
  0x4a   : > { %11555 = shalt.err (!%p11552_p12)
}
  0x4b   : > { %s11636_s13 = smov 64   ;;  %s11637_s14 = smov 4  }
  0x4c   : > { %11431 = dma.hbm_to_vmem [thread:$0]  (!%p11705_p5), %s14104_s1, 576, %s11709_s9, [#allocation5], %s11636_s13, %s11636_s13, %s11637_s14  }
  0x4d   : > { %s11556_s19 = scalar_lea.hbm %s14106_s3, 512 }
  0x4e   : > { %p11557_p13 = scmp.ne.s32.totalorder %s14106_s3, %s11556_s19  ;;  %p11563_p4 = scmp.lt.u32.totalorder %s11556_s19, %s14106_s3 }
  0x50   : > { %p11559_p0 = pnand %p11557_p13, %p11721_p7 }
  0x52   : > { %p11560_p1 = pneg %p11559_p0 }
  0x54   : > { %p11565_p6 = pnand %p11563_p4, %p11560_p1 }
  0x56   : > { %11568 = shalt.err (!%p11565_p6)
}
  0x57   : > { %s11569_s25 = scalar_lea.vmem %s240_s12, 512  ;;  %p11577_p11 = scmp.lt.s32.totalorder %s240_s12, %s240_s12 }
  0x58   : > { %p11570_p8 = scmp.ne.s32.totalorder %s240_s12, %s11569_s25  ;;  %p11578_p12 = scmp.lt.s32.totalorder %s11569_s25, %s11569_s25 }
  0x5a   : > { %p11572_p9 = pnand %p11570_p8, %p11721_p7  ;;  %p11579_p2 = por %p11578_p12, %p11577_p11 }
  0x5c   : > { %p11573_p10 = pneg %p11572_p9 }
  0x5e   : > { %p11580_p3 = pnand %p11579_p2, %p11573_p10 }
  0x60   : > { %11583 = shalt.err (!%p11580_p3)
}
  0x61   : > { %s11638_s9 = smov 128   ;;  %s11639_s29 = smov 8  }
  0x62   : > { %11437 = dma.hbm_to_vmem [thread:$0]  (!%p11705_p5), %s14106_s3, 512, %s240_s12, [#allocation7], %s11638_s9, %s11638_s9, %s11639_s29  }
  0x63   : > { %s11640_s30 = smov [#allocation11]   ;;  %s11584_s16 = scalar_lea.hbm %s14109_s6, 16 }
  0x64   : > { %s267_s13 = sshll.u32 %s11640_s30, 4  ;;  %p11585_p2 = scmp.ne.s32.totalorder %s14109_s6, %s11584_s16  ;;  %s268_s13 = int_to_ptr.vmem [resolvable:$true] %s267_s13 }
  0x65   : > { %p11591_p0 = scmp.lt.u32.totalorder %s11584_s16, %s14109_s6 }
  0x66   : > { %p11587_p3 = pnand %p11585_p2, %p11721_p7 }
  0x68   : > { %p11588_p13 = pneg %p11587_p3 }
  0x6a   : > { %p11593_p1 = pnand %p11591_p0, %p11588_p13 }
  0x6c   : > { %11596 = shalt.err (!%p11593_p1)
}
  0x6d   : > { %s11597_s12 = scalar_lea.vmem %s268_s13, 16  ;;  %s11604_s21 = scalar_lea.vmem %s268_s13, 32 }
  0x6e   : > { %p11598_p4 = scmp.ne.s32.totalorder %s268_s13, %s11597_s12  ;;  %p11605_p9 = scmp.lt.s32.totalorder %s268_s13, %s268_s13 }
  0x6f   : > { %p11606_p10 = scmp.lt.s32.totalorder %s11604_s21, %s11597_s12 }
  0x70   : > { %p11600_p6 = pnand %p11598_p4, %p11721_p7 }
  0x71   : > { %p11607_p11 = por %p11606_p10, %p11605_p9 }
  0x72   : > { %p11601_p8 = pneg %p11600_p6 }
  0x74   : > { %p11608_p12 = pnand %p11607_p11, %p11601_p8 }
  0x76   : > { %11611 = shalt.err (!%p11608_p12)
}
  0x77   : > { %11443 = dma.hbm_to_vmem [thread:$0]  (!%p11705_p5), %s14109_s6, 16, %s268_s13, [#allocation10]  }
  0x78   : > { %p14236_p2 = scmp.ne.s32.totalorder %s14233_s28, 0 }
  0x7a   : > { %288 = sbr.rel (%p14236_p2) target bundleno = 1916 (0x77c), region = 48 }
  0x81   : > { %p14237_p3 = scmp.eq.s32.totalorder %s11688_s27, 0 }
  0x83   : > { %11617 = dma.done.wait (%p14237_p3), [#allocation5], 576   ;;  %p14238_p7 = pmov %p14237_p3 }
  0x84   : > { %p14239_p13 = pmov %p14237_p3 }
  0x85   : > { %11619 = vsyncadd (%p14238_p7), [#allocation5], 4294966720 }
  0x86   : > { %11621 = dma.done.wait (%p14239_p13), [#allocation7], 528   ;;  %p14240_p0 = pmov %p14237_p3 }
  0x88   : > { %11623 = vsyncadd (%p14240_p0), [#allocation7], 4294966768  ;;  %p14241_p1 = pmov %p14240_p0 }
  0x89   : > { %p14242_p5 = pmov %p14240_p0 }
  0x8a   : > { %11625 = dma.done.wait (%p14241_p1), [#allocation10], 32  }
  0x8b   : > { %11627 = vsyncadd (%p14242_p5), [#allocation10], 4294967264  ;;  %vm346_vm0 = vcmask 31744   ;;  %vm349_vm1 = vcmask 25600   ;;  %v14113_v0 = vmov 0.0   ;;  %p336_p4 = scmp.lt.s32.totalorder %s11688_s27, 1 }
  0x8c   : > { %347 = vst.msk [vmem:[#allocation2] sm:$0xff] %vm346_vm0, %v14113_v0  ;;  %348 = vst.msk [vmem:[#allocation2 + $0x8] sm:$0xff] %vm346_vm0, %v14113_v0  ;;  %vm630_vm2 = vcmask 1043456   ;;  %v533_v1 = vld [vmem:[#allocation4 + $0x4] sm:$0xf]  ;;  %vm3996_vm3 = vcmask 261120  }
  0x8d   : > { %351 = vst.msk [vmem:[#allocation2 + $0x18] sm:$0xff] %vm346_vm0, %v14113_v0  ;;  %352 = vst.msk [vmem:[#allocation2 + $0x20] sm:$0xff] %vm346_vm0, %v14113_v0  ;;  %s14402_s27 = smov (!%p336_p4, %s11688_s27), 1  ;;  %v499_v2 = vld [vmem:[#allocation4] sm:$0xf]  ;;  %9658 = vmatprep.subr.msk.mxu0 %vm630_vm2, %v533_v1  ;;  %vm4414_vm4 = vcmask 523264  }
  0x8e   : > { %354 = vst.msk [vmem:[#allocation2 + $0x30] sm:$0xff] %vm346_vm0, %v14113_v0  ;;  %355 = vst.msk [vmem:[#allocation2 + $0x38] sm:$0xff] %vm346_vm0, %v14113_v0  ;;  %s8963_s28 = sshll.u32 %s14402_s27, 8  ;;  %9659 = vmatpush3.msk.msra.mxu0 %vm630_vm2, %v533_v1  ;;  %v1216_v43 = vld [vmem:[#allocation4 + $0x8] sm:$0xf]  ;;  %vm4417_vm5 = vcmask 517120  }
  0x8f   : > { %357 = vst.msk [vmem:[#allocation2 + $0x48] sm:$0xff] %vm346_vm0, %v14113_v0  ;;  %358 = vst.msk [vmem:[#allocation2 + $0x50] sm:$0xff] %vm346_vm0, %v14113_v0  ;;  %s11959_s25 = scalar_lea.vmem %s14103_s0, %s8963_s28  ;;  %9708 = vmatprep.subr.msk.mxu0 %vm630_vm2, %v499_v2  ;;  %s14004_s14 = scalar_lea.vmem %s14110_s7, %s8963_s28 }
  0x90   : > { %360 = vst.msk [vmem:[#allocation2 + $0x60] sm:$0xff] %vm346_vm0, %v14113_v0  ;;  %361 = vst.msk [vmem:[#allocation2 + $0x68] sm:$0xff] %vm346_vm0, %v14113_v0  ;;  %v402_v3 = vld [vmem:[%s11959_s25] sm:$0xff]  ;;  %v403_v6 = vld [vmem:[%s11959_s25 + $0x8] sm:$0xff] }
  0x91   : > { %363 = vst.msk [vmem:[#allocation2 + $0x78] sm:$0xff] %vm346_vm0, %v14113_v0  ;;  %364 = vst.msk [vmem:[#allocation2 + $0x80] sm:$0xff] %vm346_vm0, %v14113_v0  ;;  %v404_v7 = vld [vmem:[%s11959_s25 + $0x10] sm:$0xff]  ;;  %v405_v8 = vld [vmem:[%s11959_s25 + $0x18] sm:$0xff] }
  0x92   : > { %366 = vst.msk [vmem:[#allocation2 + $0x90] sm:$0xff] %vm346_vm0, %v14113_v0  ;;  %367 = vst.msk [vmem:[#allocation2 + $0x98] sm:$0xff] %vm346_vm0, %v14113_v0  ;;  %v406_v9 = vld [vmem:[%s11959_s25 + $0x20] sm:$0xff]  ;;  %v407_v10 = vld [vmem:[%s11959_s25 + $0x28] sm:$0xff] }
  0x93   : > { %369 = vst.msk [vmem:[#allocation2 + $0xa8] sm:$0xff] %vm346_vm0, %v14113_v0  ;;  %370 = vst.msk [vmem:[#allocation2 + $0xb0] sm:$0xff] %vm346_vm0, %v14113_v0  ;;  %v500_v4 = vld [vmem:[#allocation2 + $0x1] sm:$0xff]  ;;  %v408_v11 = vld [vmem:[%s11959_s25 + $0x30] sm:$0xff] }
  0x94   : > { %372 = vst.msk [vmem:[#allocation2 + $0xc0] sm:$0xff] %vm346_vm0, %v14113_v0  ;;  %373 = vst.msk [vmem:[#allocation2 + $0xc8] sm:$0xff] %vm346_vm0, %v14113_v0  ;;  %9660 = vmatprep.mubr.msk.f32.mxu0 %vm346_vm0, %v500_v4  ;;  %v409_v12 = vld [vmem:[%s11959_s25 + $0x38] sm:$0xff]  ;;  %v410_v13 = vld [vmem:[%s11959_s25 + $0x40] sm:$0xff] }
  0x95   : > { %375 = vst.msk [vmem:[#allocation2 + $0xd8] sm:$0xff] %vm346_vm0, %v14113_v0  ;;  %376 = vst.msk [vmem:[#allocation2 + $0xe0] sm:$0xff] %vm346_vm0, %v14113_v0  ;;  %v411_v14 = vld [vmem:[%s11959_s25 + $0x48] sm:$0xff]  ;;  %v412_v15 = vld [vmem:[%s11959_s25 + $0x50] sm:$0xff] }
  0x96   : > { %378 = vst.msk [vmem:[#allocation2 + $0xf0] sm:$0xff] %vm346_vm0, %v14113_v0  ;;  %379 = vst.msk [vmem:[#allocation2 + $0xf8] sm:$0xff] %vm346_vm0, %v14113_v0  ;;  %v413_v16 = vld [vmem:[%s11959_s25 + $0x58] sm:$0xff]  ;;  %v414_v17 = vld [vmem:[%s11959_s25 + $0x60] sm:$0xff] }
  0x97   : > { %381 = vst.msk [vmem:[#allocation2 + $0x108] sm:$0xff] %vm346_vm0, %v14113_v0  ;;  %382 = vst.msk [vmem:[#allocation2 + $0x110] sm:$0xff] %vm346_vm0, %v14113_v0  ;;  %v415_v18 = vld [vmem:[%s11959_s25 + $0x68] sm:$0xff]  ;;  %v416_v19 = vld [vmem:[%s11959_s25 + $0x70] sm:$0xff] }
  0x98   : > { %384 = vst.msk [vmem:[#allocation2 + $0x120] sm:$0xff] %vm346_vm0, %v14113_v0  ;;  %385 = vst.msk [vmem:[#allocation2 + $0x128] sm:$0xff] %vm346_vm0, %v14113_v0  ;;  %v417_v20 = vld [vmem:[%s11959_s25 + $0x78] sm:$0xff]  ;;  %v418_v21 = vld [vmem:[%s11959_s25 + $0x80] sm:$0xff] }
  0x99   : > { %387 = vst.msk [vmem:[#allocation2 + $0x138] sm:$0xff] %vm346_vm0, %v14113_v0  ;;  %388 = vst.msk [vmem:[#allocation2 + $0x140] sm:$0xff] %vm346_vm0, %v14113_v0  ;;  %v419_v22 = vld [vmem:[%s11959_s25 + $0x88] sm:$0xff]  ;;  %v420_v23 = vld [vmem:[%s11959_s25 + $0x90] sm:$0xff] }
  0x9a   : > { %390 = vst.msk [vmem:[#allocation2 + $0x150] sm:$0xff] %vm346_vm0, %v14113_v0  ;;  %391 = vst.msk [vmem:[#allocation2 + $0x158] sm:$0xff] %vm346_vm0, %v14113_v0  ;;  %v421_v24 = vld [vmem:[%s11959_s25 + $0x98] sm:$0xff]  ;;  %v422_v26 = vld [vmem:[%s11959_s25 + $0xa0] sm:$0xff] }
  0x9b   : > { %393 = vst.msk [vmem:[#allocation2 + $0x168] sm:$0xff] %vm346_vm0, %v14113_v0  ;;  %394 = vst.msk [vmem:[#allocation2 + $0x170] sm:$0xff] %vm346_vm0, %v14113_v0  ;;  %v423_v27 = vld [vmem:[%s11959_s25 + $0xa8] sm:$0xff]  ;;  %v424_v29 = vld [vmem:[%s11959_s25 + $0xb0] sm:$0xff] }
  0x9c   : > { %396 = vst.msk [vmem:[#allocation2 + $0x180] sm:$0xff] %vm346_vm0, %v14113_v0  ;;  %397 = vst.msk [vmem:[#allocation2 + $0x188] sm:$0xff] %vm346_vm0, %v14113_v0  ;;  %v425_v30 = vld [vmem:[%s11959_s25 + $0xb8] sm:$0xff]  ;;  %v426_v36 = vld [vmem:[%s11959_s25 + $0xc0] sm:$0xff] }
  0x9d   : > { %399 = vst.msk [vmem:[#allocation2 + $0x198] sm:$0xff] %vm346_vm0, %v14113_v0  ;;  %400 = vst.msk [vmem:[#allocation2 + $0x1a0] sm:$0xff] %vm346_vm0, %v14113_v0  ;;  %v427_v37 = vld [vmem:[%s11959_s25 + $0xc8] sm:$0xff]  ;;  %v428_v38 = vld [vmem:[%s11959_s25 + $0xd0] sm:$0xff] }
  0x9e   : > { %350 = vst.msk [vmem:[#allocation2 + $0x10] sm:$0x3] %vm349_vm1, %v14113_v0  ;;  %353 = vst.msk [vmem:[#allocation2 + $0x28] sm:$0x3] %vm349_vm1, %v14113_v0  ;;  %v429_v39 = vld [vmem:[%s11959_s25 + $0xd8] sm:$0xff]  ;;  %v430_v40 = vld [vmem:[%s11959_s25 + $0xe0] sm:$0xff] }
  0x9f   : > { %356 = vst.msk [vmem:[#allocation2 + $0x40] sm:$0x3] %vm349_vm1, %v14113_v0  ;;  %359 = vst.msk [vmem:[#allocation2 + $0x58] sm:$0x3] %vm349_vm1, %v14113_v0  ;;  %v431_v42 = vld [vmem:[%s11959_s25 + $0xe8] sm:$0xff] }
  0xa0   : > { %362 = vst.msk [vmem:[#allocation2 + $0x70] sm:$0x3] %vm349_vm1, %v14113_v0  ;;  %365 = vst.msk [vmem:[#allocation2 + $0x88] sm:$0x3] %vm349_vm1, %v14113_v0  ;;  %v468_v4 = vld [vmem:[#allocation2 + $0x8] sm:$0xff] }
  0xa1   : > { %368 = vst.msk [vmem:[#allocation2 + $0xa0] sm:$0x3] %vm349_vm1, %v14113_v0  ;;  %371 = vst.msk [vmem:[#allocation2 + $0xb8] sm:$0x3] %vm349_vm1, %v14113_v0 }
  0xa2   : > { %374 = vst.msk [vmem:[#allocation2 + $0xd0] sm:$0x3] %vm349_vm1, %v14113_v0  ;;  %377 = vst.msk [vmem:[#allocation2 + $0xe8] sm:$0x3] %vm349_vm1, %v14113_v0 }
  0xa3   : > { %380 = vst.msk [vmem:[#allocation2 + $0x100] sm:$0x3] %vm349_vm1, %v14113_v0  ;;  %383 = vst.msk [vmem:[#allocation2 + $0x118] sm:$0x3] %vm349_vm1, %v14113_v0 }
  0xa4   : > { %386 = vst.msk [vmem:[#allocation2 + $0x130] sm:$0x3] %vm349_vm1, %v14113_v0  ;;  %389 = vst.msk [vmem:[#allocation2 + $0x148] sm:$0x3] %vm349_vm1, %v14113_v0 }
  0xa5   : > { %392 = vst.msk [vmem:[#allocation2 + $0x160] sm:$0x3] %vm349_vm1, %v14113_v0  ;;  %395 = vst.msk [vmem:[#allocation2 + $0x178] sm:$0x3] %vm349_vm1, %v14113_v0  ;;  %v501_v5 = vld [vmem:[#allocation2 + $0x9] sm:$0xff] }
  0xa6   : > { %398 = vst.msk [vmem:[#allocation2 + $0x190] sm:$0x3] %vm349_vm1, %v14113_v0  ;;  %401 = vst.msk [vmem:[#allocation2 + $0x1a8] sm:$0x3] %vm349_vm1, %v14113_v0  ;;  %9661 = vmatmul.mubr.msk.f32.vlgmr.msra.gmra.mrb[0].mxu0 %vm346_vm0, %v501_v5 }
  0xa7   : > { %435 = vst.msk [vmem:[#allocation2 + $0x19] sm:$0xff] %vm346_vm0, %v402_v3  ;;  %436 = vst.msk [vmem:[#allocation2 + $0x21] sm:$0xff] %vm346_vm0, %v403_v6  ;;  %9709 = vmatpush3.msk.msra.mxu0 %vm630_vm2, %v499_v2  ;;  %v467_v3 = vld [vmem:[#allocation2] sm:$0xff]  ;;  %v12151_v6 = vld [vmem:[#allocation4 + $0xc] sm:$0xf] }
  0xa8   : > { %437 = vst.msk [vmem:[#allocation2 + $0x31] sm:$0xff] %vm346_vm0, %v404_v7  ;;  %438 = vst.msk [vmem:[#allocation2 + $0x39] sm:$0xff] %vm346_vm0, %v405_v8  ;;  %9758 = vmatprep.subr.msk.mxu0 %vm630_vm2, %v1216_v43 }
  0xa9   : > { %439 = vst.msk [vmem:[#allocation2 + $0x49] sm:$0xff] %vm346_vm0, %v406_v9  ;;  %440 = vst.msk [vmem:[#allocation2 + $0x51] sm:$0xff] %vm346_vm0, %v407_v10 }
  0xaa   : > { %441 = vst.msk [vmem:[#allocation2 + $0x61] sm:$0xff] %vm346_vm0, %v408_v11  ;;  %442 = vst.msk [vmem:[#allocation2 + $0x69] sm:$0xff] %vm346_vm0, %v409_v12 }
  0xab   : > { %443 = vst.msk [vmem:[#allocation2 + $0x79] sm:$0xff] %vm346_vm0, %v410_v13  ;;  %444 = vst.msk [vmem:[#allocation2 + $0x81] sm:$0xff] %vm346_vm0, %v411_v14 }
  0xac   : > { %445 = vst.msk [vmem:[#allocation2 + $0x91] sm:$0xff] %vm346_vm0, %v412_v15  ;;  %446 = vst.msk [vmem:[#allocation2 + $0x99] sm:$0xff] %vm346_vm0, %v413_v16 }
  0xad   : > { %447 = vst.msk [vmem:[#allocation2 + $0xa9] sm:$0xff] %vm346_vm0, %v414_v17  ;;  %448 = vst.msk [vmem:[#allocation2 + $0xb1] sm:$0xff] %vm346_vm0, %v415_v18 }
  0xae   : > { %449 = vst.msk [vmem:[#allocation2 + $0xc1] sm:$0xff] %vm346_vm0, %v416_v19  ;;  %450 = vst.msk [vmem:[#allocation2 + $0xc9] sm:$0xff] %vm346_vm0, %v417_v20  ;;  %v12004_v25 = vld [vmem:[#allocation2 + $0x19] sm:$0xff]  ;;  %v12013_v28 = vld [vmem:[#allocation2 + $0x21] sm:$0xff] }
  0xaf   : > { %451 = vst.msk [vmem:[#allocation2 + $0xd9] sm:$0xff] %vm346_vm0, %v418_v21  ;;  %452 = vst.msk [vmem:[#allocation2 + $0xe1] sm:$0xff] %vm346_vm0, %v419_v22  ;;  %9663 = vmatprep.mubr.msk.f32.mxu0 %vm346_vm0, %v12004_v25  ;;  %v12021_v31 = vld [vmem:[#allocation2 + $0x31] sm:$0xff]  ;;  %v12027_v32 = vld [vmem:[#allocation2 + $0x39] sm:$0xff] }
  0xb0   : > { %453 = vst.msk [vmem:[#allocation2 + $0xf1] sm:$0xff] %vm346_vm0, %v420_v23  ;;  %454 = vst.msk [vmem:[#allocation2 + $0xf9] sm:$0xff] %vm346_vm0, %v421_v24  ;;  %9664 = vmatmul.mubr.msk.f32.gmra.mrb[2].mxu0 %vm346_vm0, %v12013_v28  ;;  %v12029_v33 = vld [vmem:[#allocation2 + $0x49] sm:$0xff]  ;;  %v12035_v34 = vld [vmem:[#allocation2 + $0x51] sm:$0xff] }
  0xb1   : > { %455 = vst.msk [vmem:[#allocation2 + $0x109] sm:$0xff] %vm346_vm0, %v422_v26  ;;  %456 = vst.msk [vmem:[#allocation2 + $0x111] sm:$0xff] %vm346_vm0, %v423_v27  ;;  %9666 = vmatprep.mubr.msk.f32.mxu0 %vm346_vm0, %v12021_v31  ;;  %v12037_v35 = vld [vmem:[#allocation2 + $0x61] sm:$0xff]  ;;  %v12050_v41 = vld [vmem:[#allocation2 + $0x69] sm:$0xff] }
  0xb2   : > { %457 = vst.msk [vmem:[#allocation2 + $0x121] sm:$0xff] %vm346_vm0, %v424_v29  ;;  %458 = vst.msk [vmem:[#allocation2 + $0x129] sm:$0xff] %vm346_vm0, %v425_v30  ;;  %v12056_v44 = vld [vmem:[#allocation2 + $0x79] sm:$0xff]  ;;  %v12064_v45 = vld [vmem:[#allocation2 + $0x81] sm:$0xff] }
  0xb3   : > { %459 = vst.msk [vmem:[#allocation2 + $0x139] sm:$0xff] %vm346_vm0, %v426_v36  ;;  %460 = vst.msk [vmem:[#allocation2 + $0x141] sm:$0xff] %vm346_vm0, %v427_v37  ;;  %v12066_v46 = vld [vmem:[#allocation2 + $0x91] sm:$0xff]  ;;  %v12072_v47 = vld [vmem:[#allocation2 + $0x99] sm:$0xff] }
  0xb4   : > { %9667 = vmatmul.mubr.msk.f32.gmra.mrb[4].mxu0 %vm346_vm0, %v12027_v32  ;;  %461 = vst.msk [vmem:[#allocation2 + $0x151] sm:$0xff] %vm346_vm0, %v428_v38  ;;  %462 = vst.msk [vmem:[#allocation2 + $0x159] sm:$0xff] %vm346_vm0, %v429_v39  ;;  %v12074_v48 = vld [vmem:[#allocation2 + $0xa9] sm:$0xff]  ;;  %v12080_v49 = vld [vmem:[#allocation2 + $0xb1] sm:$0xff] }
  0xb5   : > { %9669 = vmatprep.mubr.msk.f32.mxu0 %vm346_vm0, %v12029_v33  ;;  %463 = vst.msk [vmem:[#allocation2 + $0x169] sm:$0xff] %vm346_vm0, %v430_v40  ;;  %464 = vst.msk [vmem:[#allocation2 + $0x171] sm:$0xff] %vm346_vm0, %v431_v42  ;;  %v12082_v50 = vld [vmem:[#allocation2 + $0xc1] sm:$0xff]  ;;  %v12088_v51 = vld [vmem:[#allocation2 + $0xc9] sm:$0xff] }
  0xb6   : > { %v12090_v52 = vld [vmem:[#allocation2 + $0xd9] sm:$0xff]  ;;  %v12096_v53 = vld [vmem:[#allocation2 + $0xe1] sm:$0xff]  ;;  %v12159_v8 = vld [vmem:[#allocation2 + $0x30] sm:$0xff] }
  0xb7   : > { %v12098_v54 = vld [vmem:[#allocation2 + $0xf1] sm:$0xff]  ;;  %v12104_v55 = vld [vmem:[#allocation2 + $0xf9] sm:$0xff]  ;;  %v12169_v10 = vld [vmem:[#allocation2 + $0x48] sm:$0xff] }
  0xb8   : > { %9670 = vmatmul.mubr.msk.f32.gmra.mrb[6].mxu0 %vm346_vm0, %v12035_v34  ;;  %v12106_v56 = vld [vmem:[#allocation2 + $0x109] sm:$0xff]  ;;  %v12112_v57 = vld [vmem:[#allocation2 + $0x111] sm:$0xff]  ;;  %v12157_v7 = vld [vmem:[#allocation2 + $0x20] sm:$0xff] }
  0xb9   : > { %9672 = vmatprep.mubr.msk.f32.mxu0 %vm346_vm0, %v12037_v35  ;;  %v12114_v58 = vld [vmem:[#allocation2 + $0x121] sm:$0xff]  ;;  %v12120_v59 = vld [vmem:[#allocation2 + $0x129] sm:$0xff]  ;;  %v12149_v5 = vld [vmem:[#allocation2 + $0x18] sm:$0xff] }
  0xba   : > { %v12122_v60 = vld [vmem:[#allocation2 + $0x139] sm:$0xff]  ;;  %v12128_v61 = vld [vmem:[#allocation2 + $0x141] sm:$0xff]  ;;  %v12175_v11 = vld [vmem:[#allocation2 + $0x50] sm:$0xff] }
  0xbb   : > { %v12130_v62 = vld [vmem:[#allocation2 + $0x151] sm:$0xff]  ;;  %v12136_v63 = vld [vmem:[#allocation2 + $0x159] sm:$0xff]  ;;  %v12183_v13 = vld [vmem:[#allocation2 + $0x68] sm:$0xff] }
  0xbc   : > { %9673 = vmatmul.mubr.msk.f32.gmra.mrb[8].mxu0 %vm346_vm0, %v12050_v41  ;;  %14243 = vst [vmem:[#allocation15_spill] sm:$0xff] %v12130_v62  ;;  %14244 = vst [vmem:[#allocation16_spill] sm:$0xff] %v12136_v63  ;;  %v12138_v1 = vld [vmem:[#allocation2 + $0x169] sm:$0xff]  ;;  %v12144_v2 = vld [vmem:[#allocation2 + $0x171] sm:$0xff] }
  0xbd   : > { %9675 = vmatprep.mubr.msk.f32.mxu0 %vm346_vm0, %v12056_v44  ;;  %14245 = vst [vmem:[#allocation17_spill] sm:$0xff] %v12138_v1  ;;  %14246 = vst [vmem:[#allocation18_spill] sm:$0xff] %v12144_v2  ;;  %v12167_v9 = vld [vmem:[#allocation2 + $0x38] sm:$0xff]  ;;  %v12177_v12 = vld [vmem:[#allocation2 + $0x60] sm:$0xff] }
  0xbe   : > { %v12185_v14 = vld [vmem:[#allocation2 + $0x78] sm:$0xff]  ;;  %v12191_v15 = vld [vmem:[#allocation2 + $0x80] sm:$0xff]  ;;  %v12193_v16 = vld [vmem:[#allocation2 + $0x90] sm:$0xff] }
  0xbf   : > { %v12199_v17 = vld [vmem:[#allocation2 + $0x98] sm:$0xff]  ;;  %v12201_v18 = vld [vmem:[#allocation2 + $0xa8] sm:$0xff]  ;;  %v12207_v19 = vld [vmem:[#allocation2 + $0xb0] sm:$0xff] }
  0xc0   : > { %9676 = vmatmul.mubr.msk.f32.gmra.mrb[10].mxu0 %vm346_vm0, %v12064_v45  ;;  %v12209_v20 = vld [vmem:[#allocation2 + $0xc0] sm:$0xff]  ;;  %v12215_v21 = vld [vmem:[#allocation2 + $0xc8] sm:$0xff]  ;;  %v12217_v22 = vld [vmem:[#allocation2 + $0xd8] sm:$0xff] }
  0xc1   : > { %9678 = vmatprep.mubr.msk.f32.mxu0 %vm346_vm0, %v12066_v46  ;;  %v12223_v23 = vld [vmem:[#allocation2 + $0xe0] sm:$0xff]  ;;  %v12225_v24 = vld [vmem:[#allocation2 + $0xf0] sm:$0xff]  ;;  %v12231_v26 = vld [vmem:[#allocation2 + $0xf8] sm:$0xff] }
  0xc2   : > { %v12233_v27 = vld [vmem:[#allocation2 + $0x108] sm:$0xff]  ;;  %v12239_v29 = vld [vmem:[#allocation2 + $0x110] sm:$0xff]  ;;  %v12241_v30 = vld [vmem:[#allocation2 + $0x120] sm:$0xff] }
  0xc3   : > { %v12247_v36 = vld [vmem:[#allocation2 + $0x128] sm:$0xff]  ;;  %v12249_v37 = vld [vmem:[#allocation2 + $0x138] sm:$0xff]  ;;  %v12255_v38 = vld [vmem:[#allocation2 + $0x140] sm:$0xff] }
  0xc4   : > { %9679 = vmatmul.mubr.msk.f32.gmra.mrb[12].mxu0 %vm346_vm0, %v12072_v47  ;;  %v12257_v39 = vld [vmem:[#allocation2 + $0x150] sm:$0xff]  ;;  %v433_v42 = vld [vmem:[%s11959_s25 + $0xf8] sm:$0xff] }
  0xc5   : > { %9681 = vmatprep.mubr.msk.f32.mxu0 %vm346_vm0, %v12074_v48  ;;  %v432_v40 = vld [vmem:[%s11959_s25 + $0xf0] sm:$0xff]  ;;  %466 = vst.msk [vmem:[#allocation2 + $0x189] sm:$0xff] %vm346_vm0, %v433_v42  ;;  %v12280_v0 = vld [vmem:[#allocation2 + $0x1a] sm:$0xff] }
  0xc6   : > { %465 = vst.msk [vmem:[#allocation2 + $0x181] sm:$0xff] %vm346_vm0, %v432_v40  ;;  %v1183_v40 = vld [vmem:[#allocation2 + $0x2] sm:$0xff]  ;;  %v1184_v42 = vld [vmem:[#allocation2 + $0xa] sm:$0xff]  ;;  %14247 = vst [vmem:[#allocation19_spill] sm:$0xff] %v12280_v0 }
  0xc8   : > { %9682 = vmatmul.mubr.msk.f32.gmra.mrb[14].mxu0 %vm346_vm0, %v12080_v49 }
  0xc9   : > { %9684 = vmatprep.mubr.msk.f32.mxu0 %vm346_vm0, %v12082_v50 }
  0xcc   : > { %9685 = vmatmul.mubr.msk.f32.gmra.mrb[16].mxu0 %vm346_vm0, %v12088_v51 }
  0xcd   : > { %9687 = vmatprep.mubr.msk.f32.mxu0 %vm346_vm0, %v12090_v52 }
  0xd0   : > { %9688 = vmatmul.mubr.msk.f32.gmra.mrb[18].mxu0 %vm346_vm0, %v12096_v53 }
  0xd1   : > { %9690 = vmatprep.mubr.msk.f32.mxu0 %vm346_vm0, %v12098_v54 }
  0xd4   : > { %9691 = vmatmul.mubr.msk.f32.gmra.mrb[20].mxu0 %vm346_vm0, %v12104_v55 }
  0xd5   : > { %9693 = vmatprep.mubr.msk.f32.mxu0 %vm346_vm0, %v12106_v56 }
  0xd8   : > { %9694 = vmatmul.mubr.msk.f32.gmra.mrb[22].mxu0 %vm346_vm0, %v12112_v57 }
  0xd9   : > { %9696 = vmatprep.mubr.msk.f32.mxu0 %vm346_vm0, %v12114_v58 }
  0xdc   : > { %9697 = vmatmul.mubr.msk.f32.gmra.mrb[24].mxu0 %vm346_vm0, %v12120_v59 }
  0xdd   : > { %9699 = vmatprep.mubr.msk.f32.mxu0 %vm346_vm0, %v12122_v60 }
  0xe0   : > { %9700 = vmatmul.mubr.msk.f32.gmra.mrb[26].mxu0 %vm346_vm0, %v12128_v61 }
  0xe1   : > { %9702 = vmatprep.mubr.msk.f32.mxu0 %vm346_vm0, %v12130_v62 }
  0xe4   : > { %9703 = vmatmul.mubr.msk.f32.gmra.mrb[28].mxu0 %vm346_vm0, %v12136_v63  ;;  %v12291_v63 = vld [vmem:[#allocation2 + $0x32] sm:$0xff] }
  0xe5   : > { %9705 = vmatprep.mubr.msk.f32.mxu0 %vm346_vm0, %v12138_v1  ;;  %v12289_v1 = vld [vmem:[#allocation2 + $0x22] sm:$0xff]  ;;  %14249 = vst [vmem:[#allocation21_spill] sm:$0xff] %v12291_v63 }
  0xe6   : > { %14248 = vst [vmem:[#allocation20_spill] sm:$0xff] %v12289_v1 }
  0xe8   : > { %9706 = vmatmul.mubr.msk.f32.gmra.mrb[30].mxu0 %vm346_vm0, %v12144_v2  ;;  %v12282_v2 = vld [vmem:[#allocation4 + $0x10] sm:$0xf] }
  0xe9   : > { %9710 = vmatprep.mubr.msk.f32.mxu0 %vm346_vm0, %v467_v3  ;;  %v12269_v3 = vld [vmem:[#allocation2 + $0x168] sm:$0xff] }
  0xec   : > { %9711 = vmatmul.mubr.msk.f32.vlgmr.msra.gmra.mrb[0].mxu0 %vm346_vm0, %v468_v4  ;;  %v12275_v4 = vld [vmem:[#allocation2 + $0x170] sm:$0xff] }
  0xed   : > { %9759 = vmatpush3.msk.msra.mxu0 %vm630_vm2, %v1216_v43  ;;  %9713 = vmatprep.mubr.msk.f32.mxu0 %vm346_vm0, %v12149_v5  ;;  %v12267_v43 = vld [vmem:[#allocation2 + $0x158] sm:$0xff] }
  0xee   : > { %9808 = vmatprep.subr.msk.mxu0 %vm630_vm2, %v12151_v6 }
  0xf0   : > { %9714 = vmatmul.mubr.msk.f32.gmra.mrb[2].mxu0 %vm346_vm0, %v12157_v7 }
  0xf1   : > { %9716 = vmatprep.mubr.msk.f32.mxu0 %vm346_vm0, %v12159_v8 }
  0xf4   : > { %9717 = vmatmul.mubr.msk.f32.gmra.mrb[4].mxu0 %vm346_vm0, %v12167_v9 }
  0xf5   : > { %9719 = vmatprep.mubr.msk.f32.mxu0 %vm346_vm0, %v12169_v10 }
  0xf8   : > { %9720 = vmatmul.mubr.msk.f32.gmra.mrb[6].mxu0 %vm346_vm0, %v12175_v11 }
  0xf9   : > { %9722 = vmatprep.mubr.msk.f32.mxu0 %vm346_vm0, %v12177_v12 }
  0xfc   : > { %9723 = vmatmul.mubr.msk.f32.gmra.mrb[8].mxu0 %vm346_vm0, %v12183_v13 }
  0xfd   : > { %9725 = vmatprep.mubr.msk.f32.mxu0 %vm346_vm0, %v12185_v14 }
 0x100   : > { %9726 = vmatmul.mubr.msk.f32.gmra.mrb[10].mxu0 %vm346_vm0, %v12191_v15 }
 0x101   : > { %9728 = vmatprep.mubr.msk.f32.mxu0 %vm346_vm0, %v12193_v16 }
 0x104   : > { %9729 = vmatmul.mubr.msk.f32.gmra.mrb[12].mxu0 %vm346_vm0, %v12199_v17 }
 0x105   : > { %9731 = vmatprep.mubr.msk.f32.mxu0 %vm346_vm0, %v12201_v18 }
 0x108   : > { %9732 = vmatmul.mubr.msk.f32.gmra.mrb[14].mxu0 %vm346_vm0, %v12207_v19 }
 0x109   : > { %9734 = vmatprep.mubr.msk.f32.mxu0 %vm346_vm0, %v12209_v20 }
 0x10c   : > { %9735 = vmatmul.mubr.msk.f32.gmra.mrb[16].mxu0 %vm346_vm0, %v12215_v21 }
 0x10d   : > { %9737 = vmatprep.mubr.msk.f32.mxu0 %vm346_vm0, %v12217_v22 }
 0x110   : > { %9738 = vmatmul.mubr.msk.f32.gmra.mrb[18].mxu0 %vm346_vm0, %v12223_v23 }
 0x111   : > { %9740 = vmatprep.mubr.msk.f32.mxu0 %vm346_vm0, %v12225_v24 }
 0x114   : > { %9741 = vmatmul.mubr.msk.f32.gmra.mrb[20].mxu0 %vm346_vm0, %v12231_v26 }
 0x115   : > { %9743 = vmatprep.mubr.msk.f32.mxu0 %vm346_vm0, %v12233_v27 }
 0x118   : > { %9744 = vmatmul.mubr.msk.f32.gmra.mrb[22].mxu0 %vm346_vm0, %v12239_v29 }
 0x119   : > { %9746 = vmatprep.mubr.msk.f32.mxu0 %vm346_vm0, %v12241_v30 }
 0x11c   : > { %9747 = vmatmul.mubr.msk.f32.gmra.mrb[24].mxu0 %vm346_vm0, %v12247_v36 }
 0x11d   : > { %9749 = vmatprep.mubr.msk.f32.mxu0 %vm346_vm0, %v12249_v37 }
 0x120   : > { %9750 = vmatmul.mubr.msk.f32.gmra.mrb[26].mxu0 %vm346_vm0, %v12255_v38 }
 0x121   : > { %9752 = vmatprep.mubr.msk.f32.mxu0 %vm346_vm0, %v12257_v39 }
 0x124   : > { %9753 = vmatmul.mubr.msk.f32.gmra.mrb[28].mxu0 %vm346_vm0, %v12267_v43 }
 0x125   : > { %9755 = vmatprep.mubr.msk.f32.mxu0 %vm346_vm0, %v12269_v3 }
 0x128   : > { %9756 = vmatmul.mubr.msk.f32.gmra.mrb[30].mxu0 %vm346_vm0, %v12275_v4 }
 0x129   : > { %9760 = vmatprep.mubr.msk.f32.mxu0 %vm346_vm0, %v1183_v40  ;;  %v12299_v40 = vld [vmem:[#allocation2 + $0x3a] sm:$0xff] }
 0x12a   : > { %14250 = vst [vmem:[#allocation22_spill] sm:$0xff] %v12299_v40 }
 0x12c   : > { %9761 = vmatmul.mubr.msk.f32.vlgmr.msra.gmra.mrb[0].mxu0 %vm346_vm0, %v1184_v42  ;;  %v12301_v42 = vld [vmem:[#allocation2 + $0x4a] sm:$0xff] }
 0x12d   : > { %9809 = vmatpush3.msk.msra.mxu0 %vm630_vm2, %v12151_v6  ;;  %9763 = vmatprep.mubr.msk.f32.mxu0 %vm346_vm0, %v12280_v0  ;;  %14251 = vst [vmem:[#allocation23_spill] sm:$0xff] %v12301_v42  ;;  %v12307_v6 = vld [vmem:[#allocation2 + $0x52] sm:$0xff]  ;;  %v12309_v0 = vld [vmem:[#allocation2 + $0x62] sm:$0xff] }
 0x12e   : > { %9858 = vmatprep.subr.msk.mxu0 %vm630_vm2, %v12282_v2  ;;  %14252 = vst [vmem:[#allocation24_spill] sm:$0xff] %v12307_v6  ;;  %14253 = vst [vmem:[#allocation25_spill] sm:$0xff] %v12309_v0 }
 0x130   : > { %9764 = vmatmul.mubr.msk.f32.gmra.mrb[2].mxu0 %vm346_vm0, %v12289_v1  ;;  %v12317_v1 = vld [vmem:[#allocation2 + $0x7a] sm:$0xff] }
 0x131   : > { %9766 = vmatprep.mubr.msk.f32.mxu0 %vm346_vm0, %v12291_v63  ;;  %v12315_v63 = vld [vmem:[#allocation2 + $0x6a] sm:$0xff]  ;;  %14255 = vst [vmem:[#allocation27_spill] sm:$0xff] %v12317_v1 }
 0x132   : > { %14254 = vst [vmem:[#allocation26_spill] sm:$0xff] %v12315_v63 }
 0x134   : > { %9767 = vmatmul.mubr.msk.f32.gmra.mrb[4].mxu0 %vm346_vm0, %v12299_v40  ;;  %v12325_v40 = vld [vmem:[#allocation2 + $0x92] sm:$0xff] }
 0x135   : > { %9769 = vmatprep.mubr.msk.f32.mxu0 %vm346_vm0, %v12301_v42  ;;  %v12323_v42 = vld [vmem:[#allocation2 + $0x82] sm:$0xff]  ;;  %14257 = vst [vmem:[#allocation29_spill] sm:$0xff] %v12325_v40 }
 0x136   : > { %14256 = vst [vmem:[#allocation28_spill] sm:$0xff] %v12323_v42 }
 0x138   : > { %9770 = vmatmul.mubr.msk.f32.gmra.mrb[6].mxu0 %vm346_vm0, %v12307_v6  ;;  %v12333_v6 = vld [vmem:[#allocation2 + $0xaa] sm:$0xff] }
 0x139   : > { %9772 = vmatprep.mubr.msk.f32.mxu0 %vm346_vm0, %v12309_v0  ;;  %v12331_v0 = vld [vmem:[#allocation2 + $0x9a] sm:$0xff]  ;;  %14259 = vst [vmem:[#allocation31_spill] sm:$0xff] %v12333_v6 }
 0x13a   : > { %14258 = vst [vmem:[#allocation30_spill] sm:$0xff] %v12331_v0 }
 0x13c   : > { %9773 = vmatmul.mubr.msk.f32.gmra.mrb[8].mxu0 %vm346_vm0, %v12315_v63  ;;  %v12341_v63 = vld [vmem:[#allocation2 + $0xc2] sm:$0xff] }
 0x13d   : > { %9775 = vmatprep.mubr.msk.f32.mxu0 %vm346_vm0, %v12317_v1  ;;  %v12339_v1 = vld [vmem:[#allocation2 + $0xb2] sm:$0xff]  ;;  %14261 = vst [vmem:[#allocation33_spill] sm:$0xff] %v12341_v63 }
 0x13e   : > { %14260 = vst [vmem:[#allocation32_spill] sm:$0xff] %v12339_v1 }
 0x140   : > { %9776 = vmatmul.mubr.msk.f32.gmra.mrb[10].mxu0 %vm346_vm0, %v12323_v42  ;;  %v12349_v42 = vld [vmem:[#allocation2 + $0xda] sm:$0xff] }
 0x141   : > { %9778 = vmatprep.mubr.msk.f32.mxu0 %vm346_vm0, %v12325_v40  ;;  %v12347_v40 = vld [vmem:[#allocation2 + $0xca] sm:$0xff]  ;;  %14263 = vst [vmem:[#allocation35_spill] sm:$0xff] %v12349_v42 }
 0x142   : > { %14262 = vst [vmem:[#allocation34_spill] sm:$0xff] %v12347_v40 }
 0x144   : > { %9779 = vmatmul.mubr.msk.f32.gmra.mrb[12].mxu0 %vm346_vm0, %v12331_v0  ;;  %v12357_v0 = vld [vmem:[#allocation2 + $0xf2] sm:$0xff] }
 0x145   : > { %9781 = vmatprep.mubr.msk.f32.mxu0 %vm346_vm0, %v12333_v6  ;;  %v12355_v6 = vld [vmem:[#allocation2 + $0xe2] sm:$0xff]  ;;  %14265 = vst [vmem:[#allocation37_spill] sm:$0xff] %v12357_v0 }
 0x146   : > { %14264 = vst [vmem:[#allocation36_spill] sm:$0xff] %v12355_v6 }
 0x148   : > { %9782 = vmatmul.mubr.msk.f32.gmra.mrb[14].mxu0 %vm346_vm0, %v12339_v1  ;;  %v12365_v1 = vld [vmem:[#allocation2 + $0x10a] sm:$0xff] }
 0x149   : > { %9784 = vmatprep.mubr.msk.f32.mxu0 %vm346_vm0, %v12341_v63  ;;  %v12363_v63 = vld [vmem:[#allocation2 + $0xfa] sm:$0xff]  ;;  %14267 = vst [vmem:[#allocation39_spill] sm:$0xff] %v12365_v1 }
 0x14a   : > { %14266 = vst [vmem:[#allocation38_spill] sm:$0xff] %v12363_v63 }
 0x14c   : > { %9785 = vmatmul.mubr.msk.f32.gmra.mrb[16].mxu0 %vm346_vm0, %v12347_v40  ;;  %v12373_v40 = vld [vmem:[#allocation2 + $0x122] sm:$0xff] }
 0x14d   : > { %9787 = vmatprep.mubr.msk.f32.mxu0 %vm346_vm0, %v12349_v42  ;;  %v12371_v42 = vld [vmem:[#allocation2 + $0x112] sm:$0xff]  ;;  %14269 = vst [vmem:[#allocation41_spill] sm:$0xff] %v12373_v40 }
 0x14e   : > { %14268 = vst [vmem:[#allocation40_spill] sm:$0xff] %v12371_v42 }
 0x150   : > { %9788 = vmatmul.mubr.msk.f32.gmra.mrb[18].mxu0 %vm346_vm0, %v12355_v6  ;;  %v12381_v6 = vld [vmem:[#allocation2 + $0x13a] sm:$0xff] }
 0x151   : > { %9790 = vmatprep.mubr.msk.f32.mxu0 %vm346_vm0, %v12357_v0  ;;  %v12379_v0 = vld [vmem:[#allocation2 + $0x12a] sm:$0xff]  ;;  %14270 = vst [vmem:[#allocation42_spill] sm:$0xff] %v12381_v6 }
 0x154   : > { %9791 = vmatmul.mubr.msk.f32.gmra.mrb[20].mxu0 %vm346_vm0, %v12363_v63  ;;  %v12389_v63 = vld [vmem:[#allocation2 + $0x152] sm:$0xff] }
 0x155   : > { %9793 = vmatprep.mubr.msk.f32.mxu0 %vm346_vm0, %v12365_v1  ;;  %v12387_v1 = vld [vmem:[#allocation2 + $0x142] sm:$0xff] }
 0x156   : > { %14271 = vst [vmem:[#allocation43_spill] sm:$0xff] %v12387_v1 }
 0x158   : > { %9794 = vmatmul.mubr.msk.f32.gmra.mrb[22].mxu0 %vm346_vm0, %v12371_v42  ;;  %v12397_v42 = vld [vmem:[#allocation2 + $0x16a] sm:$0xff] }
 0x159   : > { %9796 = vmatprep.mubr.msk.f32.mxu0 %vm346_vm0, %v12373_v40  ;;  %v12395_v40 = vld [vmem:[#allocation2 + $0x15a] sm:$0xff] }
 0x15a   : > { %14272 = vst [vmem:[#allocation44_spill] sm:$0xff] %v12395_v40 }
 0x15c   : > { %9797 = vmatmul.mubr.msk.f32.gmra.mrb[24].mxu0 %vm346_vm0, %v12379_v0 }
 0x15d   : > { %9799 = vmatprep.mubr.msk.f32.mxu0 %vm346_vm0, %v12381_v6  ;;  %v12403_v6 = vld [vmem:[#allocation2 + $0x172] sm:$0xff] }
 0x160   : > { %9800 = vmatmul.mubr.msk.f32.gmra.mrb[26].mxu0 %vm346_vm0, %v12387_v1  ;;  %v2386_v1 = vld [vmem:[#allocation4 + $0x14] sm:$0xf] }
 0x161   : > { %9802 = vmatprep.mubr.msk.f32.mxu0 %vm346_vm0, %v12389_v63 }
 0x164   : > { %9803 = vmatmul.mubr.msk.f32.gmra.mrb[28].mxu0 %vm346_vm0, %v12395_v40 }
 0x165   : > { %9805 = vmatprep.mubr.msk.f32.mxu0 %vm346_vm0, %v12397_v42 }
 0x168   : > { %9806 = vmatmul.mubr.msk.f32.gmra.mrb[30].mxu0 %vm346_vm0, %v12403_v6 }
 0x169   : > { %9810 = vmatprep.mubr.msk.f32.mxu0 %vm346_vm0, %v12149_v5  ;;  %v12474_v5 = vld [vmem:[#allocation2 + $0x188] sm:$0xff] }
 0x16c   : > { %9811 = vmatmul.mubr.msk.f32.vlgmr.msra.gmra.mrb[0].mxu0 %vm346_vm0, %v12157_v7  ;;  %v2777_v7 = vld [vmem:[#allocation4 + $0x18] sm:$0xf] }
 0x16d   : > { %9859 = vmatpush3.msk.msra.mxu0 %vm630_vm2, %v12282_v2  ;;  %9813 = vmatprep.mubr.msk.f32.mxu0 %vm346_vm0, %v12159_v8  ;;  %v12468_v2 = vld [vmem:[#allocation2 + $0x180] sm:$0xff] }
 0x16e   : > { %9908 = vmatprep.subr.msk.mxu0 %vm630_vm2, %v2386_v1 }
 0x170   : > { %9814 = vmatmul.mubr.msk.f32.gmra.mrb[2].mxu0 %vm346_vm0, %v12167_v9 }
 0x171   : > { %9816 = vmatprep.mubr.msk.f32.mxu0 %vm346_vm0, %v12169_v10 }
 0x174   : > { %9817 = vmatmul.mubr.msk.f32.gmra.mrb[4].mxu0 %vm346_vm0, %v12175_v11 }
 0x175   : > { %9819 = vmatprep.mubr.msk.f32.mxu0 %vm346_vm0, %v12177_v12 }
 0x178   : > { %9820 = vmatmul.mubr.msk.f32.gmra.mrb[6].mxu0 %vm346_vm0, %v12183_v13 }
 0x179   : > { %9822 = vmatprep.mubr.msk.f32.mxu0 %vm346_vm0, %v12185_v14 }
 0x17c   : > { %9823 = vmatmul.mubr.msk.f32.gmra.mrb[8].mxu0 %vm346_vm0, %v12191_v15 }
 0x17d   : > { %9825 = vmatprep.mubr.msk.f32.mxu0 %vm346_vm0, %v12193_v16 }
 0x180   : > { %9826 = vmatmul.mubr.msk.f32.gmra.mrb[10].mxu0 %vm346_vm0, %v12199_v17 }
 0x181   : > { %9828 = vmatprep.mubr.msk.f32.mxu0 %vm346_vm0, %v12201_v18 }
 0x184   : > { %9829 = vmatmul.mubr.msk.f32.gmra.mrb[12].mxu0 %vm346_vm0, %v12207_v19 }
 0x185   : > { %9831 = vmatprep.mubr.msk.f32.mxu0 %vm346_vm0, %v12209_v20 }
 0x188   : > { %9832 = vmatmul.mubr.msk.f32.gmra.mrb[14].mxu0 %vm346_vm0, %v12215_v21 }
 0x189   : > { %9834 = vmatprep.mubr.msk.f32.mxu0 %vm346_vm0, %v12217_v22 }
 0x18c   : > { %9835 = vmatmul.mubr.msk.f32.gmra.mrb[16].mxu0 %vm346_vm0, %v12223_v23 }
 0x18d   : > { %9837 = vmatprep.mubr.msk.f32.mxu0 %vm346_vm0, %v12225_v24 }
 0x190   : > { %9838 = vmatmul.mubr.msk.f32.gmra.mrb[18].mxu0 %vm346_vm0, %v12231_v26 }
 0x191   : > { %9840 = vmatprep.mubr.msk.f32.mxu0 %vm346_vm0, %v12233_v27 }
 0x194   : > { %9841 = vmatmul.mubr.msk.f32.gmra.mrb[20].mxu0 %vm346_vm0, %v12239_v29 }
 0x195   : > { %9843 = vmatprep.mubr.msk.f32.mxu0 %vm346_vm0, %v12241_v30 }
 0x198   : > { %9844 = vmatmul.mubr.msk.f32.gmra.mrb[22].mxu0 %vm346_vm0, %v12247_v36 }
 0x199   : > { %9846 = vmatprep.mubr.msk.f32.mxu0 %vm346_vm0, %v12249_v37 }
 0x19c   : > { %9847 = vmatmul.mubr.msk.f32.gmra.mrb[24].mxu0 %vm346_vm0, %v12255_v38 }
 0x19d   : > { %9849 = vmatprep.mubr.msk.f32.mxu0 %vm346_vm0, %v12257_v39 }
 0x1a0   : > { %9850 = vmatmul.mubr.msk.f32.gmra.mrb[26].mxu0 %vm346_vm0, %v12267_v43 }
 0x1a1   : > { %9852 = vmatprep.mubr.msk.f32.mxu0 %vm346_vm0, %v12269_v3 }
 0x1a4   : > { %9853 = vmatmul.mubr.msk.f32.gmra.mrb[28].mxu0 %vm346_vm0, %v12275_v4 }
 0x1a5   : > { %9855 = vmatprep.mubr.msk.f32.mxu0 %vm346_vm0, %v12468_v2 }
 0x1a8   : > { %9856 = vmatmul.mubr.msk.f32.gmra.mrb[30].mxu0 %vm346_vm0, %v12474_v5 }
 0x1a9   : > { %9860 = vmatprep.mubr.msk.f32.mxu0 %vm346_vm0, %v12004_v25  ;;  %v14273_v25 = vld [vmem:[#allocation16_spill] sm:$0xff] }
 0x1ac   : > { %9861 = vmatmul.mubr.msk.f32.vlgmr.msra.gmra.mrb[0].mxu0 %vm346_vm0, %v12013_v28  ;;  %v14274_v28 = vld [vmem:[#allocation17_spill] sm:$0xff] }
 0x1ad   : > { %9909 = vmatpush3.msk.msra.mxu0 %vm630_vm2, %v2386_v1  ;;  %9863 = vmatprep.mubr.msk.f32.mxu0 %vm346_vm0, %v12021_v31  ;;  %v12538_v31 = vld [vmem:[#allocation2 + $0x181] sm:$0xff]  ;;  %v3167_v1 = vld [vmem:[#allocation4 + $0x1c] sm:$0xf] }
 0x1ae   : > { %9958 = vmatprep.subr.msk.mxu0 %vm630_vm2, %v2777_v7  ;;  %14275 = vst [vmem:[#allocation45_spill] sm:$0xff] %v12538_v31 }
 0x1b0   : > { %9864 = vmatmul.mubr.msk.f32.gmra.mrb[2].mxu0 %vm346_vm0, %v12027_v32  ;;  %v14276_v32 = vld [vmem:[#allocation18_spill] sm:$0xff] }
 0x1b1   : > { %9866 = vmatprep.mubr.msk.f32.mxu0 %vm346_vm0, %v12029_v33  ;;  %v12544_v33 = vld [vmem:[#allocation2 + $0x189] sm:$0xff] }
 0x1b2   : > { %14277 = vst [vmem:[#allocation46_spill] sm:$0xff] %v12544_v33 }
 0x1b4   : > { %9867 = vmatmul.mubr.msk.f32.gmra.mrb[4].mxu0 %vm346_vm0, %v12035_v34  ;;  %v14278_v34 = vld [vmem:[#allocation19_spill] sm:$0xff] }
 0x1b5   : > { %9869 = vmatprep.mubr.msk.f32.mxu0 %vm346_vm0, %v12037_v35 }
 0x1b8   : > { %9870 = vmatmul.mubr.msk.f32.gmra.mrb[6].mxu0 %vm346_vm0, %v12050_v41 }
 0x1b9   : > { %9872 = vmatprep.mubr.msk.f32.mxu0 %vm346_vm0, %v12056_v44 }
 0x1bc   : > { %9873 = vmatmul.mubr.msk.f32.gmra.mrb[8].mxu0 %vm346_vm0, %v12064_v45 }
 0x1bd   : > { %9875 = vmatprep.mubr.msk.f32.mxu0 %vm346_vm0, %v12066_v46 }
 0x1c0   : > { %9876 = vmatmul.mubr.msk.f32.gmra.mrb[10].mxu0 %vm346_vm0, %v12072_v47 }
 0x1c1   : > { %9878 = vmatprep.mubr.msk.f32.mxu0 %vm346_vm0, %v12074_v48 }
 0x1c4   : > { %9879 = vmatmul.mubr.msk.f32.gmra.mrb[12].mxu0 %vm346_vm0, %v12080_v49 }
 0x1c5   : > { %9881 = vmatprep.mubr.msk.f32.mxu0 %vm346_vm0, %v12082_v50 }
 0x1c8   : > { %9882 = vmatmul.mubr.msk.f32.gmra.mrb[14].mxu0 %vm346_vm0, %v12088_v51 }
 0x1c9   : > { %9884 = vmatprep.mubr.msk.f32.mxu0 %vm346_vm0, %v12090_v52 }
 0x1cc   : > { %9885 = vmatmul.mubr.msk.f32.gmra.mrb[16].mxu0 %vm346_vm0, %v12096_v53 }
 0x1cd   : > { %9887 = vmatprep.mubr.msk.f32.mxu0 %vm346_vm0, %v12098_v54 }
 0x1d0   : > { %9888 = vmatmul.mubr.msk.f32.gmra.mrb[18].mxu0 %vm346_vm0, %v12104_v55 }
 0x1d1   : > { %9890 = vmatprep.mubr.msk.f32.mxu0 %vm346_vm0, %v12106_v56 }
 0x1d4   : > { %9891 = vmatmul.mubr.msk.f32.gmra.mrb[20].mxu0 %vm346_vm0, %v12112_v57 }
 0x1d5   : > { %9893 = vmatprep.mubr.msk.f32.mxu0 %vm346_vm0, %v12114_v58 }
 0x1d8   : > { %9894 = vmatmul.mubr.msk.f32.gmra.mrb[22].mxu0 %vm346_vm0, %v12120_v59 }
 0x1d9   : > { %9896 = vmatprep.mubr.msk.f32.mxu0 %vm346_vm0, %v12122_v60 }
 0x1dc   : > { %9897 = vmatmul.mubr.msk.f32.gmra.mrb[24].mxu0 %vm346_vm0, %v12128_v61 }
 0x1dd   : > { %9899 = vmatprep.mubr.msk.f32.mxu0 %vm346_vm0, %v12130_v62  ;;  %v14288_v62 = vld [vmem:[#allocation29_spill] sm:$0xff] }
 0x1e0   : > { %9900 = vmatmul.mubr.msk.f32.gmra.mrb[26].mxu0 %vm346_vm0, %v14273_v25  ;;  %v14279_v25 = vld [vmem:[#allocation20_spill] sm:$0xff] }
 0x1e1   : > { %9902 = vmatprep.mubr.msk.f32.mxu0 %vm346_vm0, %v14274_v28  ;;  %v14280_v28 = vld [vmem:[#allocation21_spill] sm:$0xff] }
 0x1e4   : > { %9903 = vmatmul.mubr.msk.f32.gmra.mrb[28].mxu0 %vm346_vm0, %v14276_v32  ;;  %v14282_v32 = vld [vmem:[#allocation23_spill] sm:$0xff] }
 0x1e5   : > { %9905 = vmatprep.mubr.msk.f32.mxu0 %vm346_vm0, %v12538_v31  ;;  %v14281_v31 = vld [vmem:[#allocation22_spill] sm:$0xff] }
 0x1e8   : > { %9906 = vmatmul.mubr.msk.f32.gmra.mrb[30].mxu0 %vm346_vm0, %v12544_v33  ;;  %v14283_v33 = vld [vmem:[#allocation24_spill] sm:$0xff] }
 0x1e9   : > { %9910 = vmatprep.mubr.msk.f32.mxu0 %vm346_vm0, %v14278_v34  ;;  %v14284_v34 = vld [vmem:[#allocation25_spill] sm:$0xff] }
 0x1ec   : > { %9911 = vmatmul.mubr.msk.f32.vlgmr.msra.gmra.mrb[0].mxu0 %vm346_vm0, %v14279_v25  ;;  %v14285_v25 = vld [vmem:[#allocation26_spill] sm:$0xff] }
 0x1ed   : > { %9959 = vmatpush3.msk.msra.mxu0 %vm630_vm2, %v2777_v7  ;;  %9913 = vmatprep.mubr.msk.f32.mxu0 %vm346_vm0, %v14280_v28  ;;  %v14286_v7 = vld [vmem:[#allocation27_spill] sm:$0xff]  ;;  %v14287_v28 = vld [vmem:[#allocation28_spill] sm:$0xff] }
 0x1ee   : > { %10008 = vmatprep.subr.msk.mxu0 %vm630_vm2, %v3167_v1 }
 0x1f0   : > { %9914 = vmatmul.mubr.msk.f32.gmra.mrb[2].mxu0 %vm346_vm0, %v14281_v31  ;;  %v14289_v31 = vld [vmem:[#allocation30_spill] sm:$0xff] }
 0x1f1   : > { %9916 = vmatprep.mubr.msk.f32.mxu0 %vm346_vm0, %v14282_v32  ;;  %v14290_v32 = vld [vmem:[#allocation31_spill] sm:$0xff] }
 0x1f4   : > { %9917 = vmatmul.mubr.msk.f32.gmra.mrb[4].mxu0 %vm346_vm0, %v14283_v33  ;;  %v14291_v33 = vld [vmem:[#allocation32_spill] sm:$0xff] }
 0x1f5   : > { %9919 = vmatprep.mubr.msk.f32.mxu0 %vm346_vm0, %v14284_v34  ;;  %v14292_v34 = vld [vmem:[#allocation33_spill] sm:$0xff] }
 0x1f8   : > { %9920 = vmatmul.mubr.msk.f32.gmra.mrb[6].mxu0 %vm346_vm0, %v14285_v25  ;;  %v14293_v25 = vld [vmem:[#allocation34_spill] sm:$0xff] }
 0x1f9   : > { %9922 = vmatprep.mubr.msk.f32.mxu0 %vm346_vm0, %v14286_v7  ;;  %v14294_v7 = vld [vmem:[#allocation35_spill] sm:$0xff] }
 0x1fc   : > { %9923 = vmatmul.mubr.msk.f32.gmra.mrb[8].mxu0 %vm346_vm0, %v14287_v28  ;;  %v14295_v28 = vld [vmem:[#allocation36_spill] sm:$0xff] }
 0x1fd   : > { %9925 = vmatprep.mubr.msk.f32.mxu0 %vm346_vm0, %v14288_v62  ;;  %v14296_v62 = vld [vmem:[#allocation37_spill] sm:$0xff] }
 0x200   : > { %9926 = vmatmul.mubr.msk.f32.gmra.mrb[10].mxu0 %vm346_vm0, %v14289_v31  ;;  %v14297_v31 = vld [vmem:[#allocation38_spill] sm:$0xff] }
 0x201   : > { %9928 = vmatprep.mubr.msk.f32.mxu0 %vm346_vm0, %v14290_v32  ;;  %v14298_v32 = vld [vmem:[#allocation39_spill] sm:$0xff] }
 0x204   : > { %9929 = vmatmul.mubr.msk.f32.gmra.mrb[12].mxu0 %vm346_vm0, %v14291_v33  ;;  %v14299_v33 = vld [vmem:[#allocation40_spill] sm:$0xff] }
 0x205   : > { %9931 = vmatprep.mubr.msk.f32.mxu0 %vm346_vm0, %v14292_v34  ;;  %v14300_v34 = vld [vmem:[#allocation41_spill] sm:$0xff] }
 0x208   : > { %9932 = vmatmul.mubr.msk.f32.gmra.mrb[14].mxu0 %vm346_vm0, %v14293_v25 }
 0x209   : > { %9934 = vmatprep.mubr.msk.f32.mxu0 %vm346_vm0, %v14294_v7  ;;  %v14301_v7 = vld [vmem:[#allocation42_spill] sm:$0xff] }
 0x20c   : > { %9935 = vmatmul.mubr.msk.f32.gmra.mrb[16].mxu0 %vm346_vm0, %v14295_v28  ;;  %v14302_v28 = vld [vmem:[#allocation43_spill] sm:$0xff] }
 0x20d   : > { %9937 = vmatprep.mubr.msk.f32.mxu0 %vm346_vm0, %v14296_v62 }
 0x210   : > { %9938 = vmatmul.mubr.msk.f32.gmra.mrb[18].mxu0 %vm346_vm0, %v14297_v31 }
 0x211   : > { %9940 = vmatprep.mubr.msk.f32.mxu0 %vm346_vm0, %v14298_v32 }
 0x214   : > { %9941 = vmatmul.mubr.msk.f32.gmra.mrb[20].mxu0 %vm346_vm0, %v14299_v33  ;;  %v12608_v33 = vld [vmem:[#allocation2 + $0x182] sm:$0xff] }
 0x215   : > { %9943 = vmatprep.mubr.msk.f32.mxu0 %vm346_vm0, %v14300_v34 }
 0x218   : > { %9944 = vmatmul.mubr.msk.f32.gmra.mrb[22].mxu0 %vm346_vm0, %v12379_v0 }
 0x219   : > { %9946 = vmatprep.mubr.msk.f32.mxu0 %vm346_vm0, %v14301_v7  ;;  %v12614_v7 = vld [vmem:[#allocation2 + $0x18a] sm:$0xff] }
 0x21c   : > { %9947 = vmatmul.mubr.msk.f32.gmra.mrb[24].mxu0 %vm346_vm0, %v14302_v28 }
 0x21d   : > { %9949 = vmatprep.mubr.msk.f32.mxu0 %vm346_vm0, %v12389_v63 }
 0x220   : > { %9950 = vmatmul.mubr.msk.f32.gmra.mrb[26].mxu0 %vm346_vm0, %v12395_v40  ;;  %v3557_v40 = vld [vmem:[#allocation4 + $0x20] sm:$0xf] }
 0x221   : > { %9952 = vmatprep.mubr.msk.f32.mxu0 %vm346_vm0, %v12397_v42 }
 0x224   : > { %9953 = vmatmul.mubr.msk.f32.gmra.mrb[28].mxu0 %vm346_vm0, %v12403_v6 }
 0x225   : > { %9955 = vmatprep.mubr.msk.f32.mxu0 %vm346_vm0, %v12608_v33 }
 0x228   : > { %9956 = vmatmul.mubr.msk.f32.gmra.mrb[30].mxu0 %vm346_vm0, %v12614_v7 }
 0x229   : > { %9960 = vmatprep.mubr.msk.f32.mxu0 %vm346_vm0, %v12159_v8  ;;  %v2774_v8 = vld [vmem:[#allocation2 + $0x198] sm:$0xff] }
 0x22c   : > { %9961 = vmatmul.mubr.msk.f32.vlgmr.msra.gmra.mrb[0].mxu0 %vm346_vm0, %v12167_v9  ;;  %v2775_v9 = vld [vmem:[#allocation2 + $0x1a0] sm:$0xff] }
 0x22d   : > { %10009 = vmatpush3.msk.msra.mxu0 %vm630_vm2, %v3167_v1  ;;  %9963 = vmatprep.mubr.msk.f32.mxu0 %vm346_vm0, %v12169_v10  ;;  %v3134_v10 = vld [vmem:[#allocation2 + $0x31] sm:$0xff] }
 0x22e   : > { %10058 = vmatprep.subr.msk.mxu0 %vm630_vm2, %v3557_v40 }
 0x230   : > { %9964 = vmatmul.mubr.msk.f32.gmra.mrb[2].mxu0 %vm346_vm0, %v12175_v11  ;;  %v3985_v11 = vld [vmem:[#allocation8] sm:$0xff] }
 0x231   : > { %9966 = vmatprep.mubr.msk.f32.mxu0 %vm346_vm0, %v12177_v12  ;;  %v3986_v12 = vld [vmem:[#allocation8 + $0x8] sm:$0xff] }
 0x234   : > { %9967 = vmatmul.mubr.msk.f32.gmra.mrb[4].mxu0 %vm346_vm0, %v12183_v13  ;;  %v3135_v13 = vld [vmem:[#allocation2 + $0x39] sm:$0xff] }
 0x235   : > { %9969 = vmatprep.mubr.msk.f32.mxu0 %vm346_vm0, %v12185_v14  ;;  %v10740_v14 = vpack.c.bf16 %v3986_v12, %v3985_v11 }
 0x237   : > { %10892 = vmatprep.subr.bf16.mxu1 %v10740_v14 }
 0x238   : > { %9970 = vmatmul.mubr.msk.f32.gmra.mrb[6].mxu0 %vm346_vm0, %v12191_v15  ;;  %v3987_v15 = vld [vmem:[#allocation8 + $0x10] sm:$0xff]  ;;  %10894 = vmatpush3.bf16.msra.mxu1 %v10740_v14 }
 0x239   : > { %9972 = vmatprep.mubr.msk.f32.mxu0 %vm346_vm0, %v12193_v16  ;;  %v3988_v16 = vld [vmem:[#allocation8 + $0x18] sm:$0xff] }
 0x23c   : > { %9973 = vmatmul.mubr.msk.f32.gmra.mrb[8].mxu0 %vm346_vm0, %v12199_v17  ;;  %v3136_v17 = vld [vmem:[#allocation2 + $0x49] sm:$0xff] }
 0x23d   : > { %9975 = vmatprep.mubr.msk.f32.mxu0 %vm346_vm0, %v12201_v18  ;;  %v10744_v18 = vpack.c.bf16 %v3988_v16, %v3987_v15 }
 0x23f   : > { %10893 = vmatprep.subr.bf16.mxu1 %v10744_v18 }
 0x240   : > { %9976 = vmatmul.mubr.msk.f32.gmra.mrb[10].mxu0 %vm346_vm0, %v12207_v19  ;;  %v3137_v19 = vld [vmem:[#allocation2 + $0x51] sm:$0xff]  ;;  %10895 = vmatpush3.bf16.msra.mxu1 %v10744_v18 }
 0x241   : > { %9978 = vmatprep.mubr.msk.f32.mxu0 %vm346_vm0, %v12209_v20  ;;  %v14321_v20 = vld [vmem:[#allocation33_spill] sm:$0xff] }
 0x244   : > { %9979 = vmatmul.mubr.msk.f32.gmra.mrb[12].mxu0 %vm346_vm0, %v12215_v21  ;;  %v14322_v21 = vld [vmem:[#allocation35_spill] sm:$0xff] }
 0x245   : > { %9981 = vmatprep.mubr.msk.f32.mxu0 %vm346_vm0, %v12217_v22  ;;  %v14323_v22 = vld [vmem:[#allocation36_spill] sm:$0xff] }
 0x248   : > { %9982 = vmatmul.mubr.msk.f32.gmra.mrb[14].mxu0 %vm346_vm0, %v12223_v23  ;;  %v14324_v23 = vld [vmem:[#allocation40_spill] sm:$0xff] }
 0x249   : > { %9984 = vmatprep.mubr.msk.f32.mxu0 %vm346_vm0, %v12225_v24  ;;  %v14325_v24 = vld [vmem:[#allocation42_spill] sm:$0xff] }
 0x24c   : > { %9985 = vmatmul.mubr.msk.f32.gmra.mrb[16].mxu0 %vm346_vm0, %v12231_v26  ;;  %v3555_v26 = vld [vmem:[#allocation2 + $0x1a2] sm:$0xff] }
 0x24d   : > { %9987 = vmatprep.mubr.msk.f32.mxu0 %vm346_vm0, %v12233_v27  ;;  %v8609_v27 = vld [vmem:[%s14108_s5 + $0x48] sm:$0xff] }
 0x250   : > { %9988 = vmatmul.mubr.msk.f32.gmra.mrb[18].mxu0 %vm346_vm0, %v12239_v29 }
 0x251   : > { %9990 = vmatprep.mubr.msk.f32.mxu0 %vm346_vm0, %v12241_v30  ;;  %v12812_v30 = vld [vmem:[#allocation6] ss:$0 sm:$0xff] }
 0x254   : > { %9991 = vmatmul.mubr.msk.f32.gmra.mrb[20].mxu0 %vm346_vm0, %v12247_v36 }
 0x255   : > { %9993 = vmatprep.mubr.msk.f32.mxu0 %vm346_vm0, %v12249_v37 }
 0x258   : > { %9994 = vmatmul.mubr.msk.f32.gmra.mrb[22].mxu0 %vm346_vm0, %v12255_v38 }
 0x259   : > { %9996 = vmatprep.mubr.msk.f32.mxu0 %vm346_vm0, %v12257_v39 }
 0x25c   : > { %9997 = vmatmul.mubr.msk.f32.gmra.mrb[24].mxu0 %vm346_vm0, %v12267_v43 }
 0x25d   : > { %9999 = vmatprep.mubr.msk.f32.mxu0 %vm346_vm0, %v12269_v3 }
 0x260   : > { %10000 = vmatmul.mubr.msk.f32.gmra.mrb[26].mxu0 %vm346_vm0, %v12275_v4 }
 0x261   : > { %10002 = vmatprep.mubr.msk.f32.mxu0 %vm346_vm0, %v12468_v2 }
 0x264   : > { %10003 = vmatmul.mubr.msk.f32.gmra.mrb[28].mxu0 %vm346_vm0, %v12474_v5 }
 0x265   : > { %10005 = vmatprep.mubr.msk.f32.mxu0 %vm346_vm0, %v2774_v8 }
 0x268   : > { %10006 = vmatmul.mubr.msk.f32.gmra.mrb[30].mxu0 %vm346_vm0, %v2775_v9 }
 0x269   : > { %10010 = vmatprep.mubr.msk.f32.mxu0 %vm346_vm0, %v3134_v10 }
 0x26c   : > { %10011 = vmatmul.mubr.msk.f32.vlgmr.msra.gmra.mrb[0].mxu0 %vm346_vm0, %v3135_v13 }
 0x26d   : > { %10059 = vmatpush3.msk.msra.mxu0 %vm630_vm2, %v3557_v40  ;;  %10013 = vmatprep.mubr.msk.f32.mxu0 %vm346_vm0, %v3136_v17 }
 0x26e   : > { %10741 = vmatprep.subr.bf16.mxu0 %v10740_v14 }
 0x270   : > { %10014 = vmatmul.mubr.msk.f32.gmra.mrb[2].mxu0 %vm346_vm0, %v3137_v19 }
 0x271   : > { %10016 = vmatprep.mubr.msk.f32.mxu0 %vm346_vm0, %v12037_v35  ;;  %v14303_v35 = vld [vmem:[#allocation15_spill] sm:$0xff] }
 0x274   : > { %10017 = vmatmul.mubr.msk.f32.gmra.mrb[4].mxu0 %vm346_vm0, %v12050_v41  ;;  %v14304_v41 = vld [vmem:[#allocation16_spill] sm:$0xff] }
 0x275   : > { %10019 = vmatprep.mubr.msk.f32.mxu0 %vm346_vm0, %v12056_v44  ;;  %v14305_v44 = vld [vmem:[#allocation17_spill] sm:$0xff] }
 0x278   : > { %10020 = vmatmul.mubr.msk.f32.gmra.mrb[6].mxu0 %vm346_vm0, %v12064_v45  ;;  %v14306_v45 = vld [vmem:[#allocation18_spill] sm:$0xff] }
 0x279   : > { %10022 = vmatprep.mubr.msk.f32.mxu0 %vm346_vm0, %v12066_v46  ;;  %v14307_v46 = vld [vmem:[#allocation45_spill] sm:$0xff] }
 0x27c   : > { %10023 = vmatmul.mubr.msk.f32.gmra.mrb[8].mxu0 %vm346_vm0, %v12072_v47  ;;  %v3164_v47 = vld [vmem:[#allocation2 + $0x199] sm:$0xff] }
 0x27d   : > { %10025 = vmatprep.mubr.msk.f32.mxu0 %vm346_vm0, %v12074_v48  ;;  %v14308_v48 = vld [vmem:[#allocation46_spill] sm:$0xff] }
 0x280   : > { %10026 = vmatmul.mubr.msk.f32.gmra.mrb[10].mxu0 %vm346_vm0, %v12080_v49  ;;  %v3165_v49 = vld [vmem:[#allocation2 + $0x1a1] sm:$0xff] }
 0x281   : > { %10028 = vmatprep.mubr.msk.f32.mxu0 %vm346_vm0, %v12082_v50  ;;  %v14309_v50 = vld [vmem:[#allocation21_spill] sm:$0xff] }
 0x284   : > { %10029 = vmatmul.mubr.msk.f32.gmra.mrb[12].mxu0 %vm346_vm0, %v12088_v51  ;;  %v14310_v51 = vld [vmem:[#allocation22_spill] sm:$0xff] }
 0x285   : > { %10031 = vmatprep.mubr.msk.f32.mxu0 %vm346_vm0, %v12090_v52  ;;  %v14311_v52 = vld [vmem:[#allocation23_spill] sm:$0xff] }
 0x288   : > { %10032 = vmatmul.mubr.msk.f32.gmra.mrb[14].mxu0 %vm346_vm0, %v12096_v53  ;;  %v14312_v53 = vld [vmem:[#allocation24_spill] sm:$0xff] }
 0x289   : > { %10034 = vmatprep.mubr.msk.f32.mxu0 %vm346_vm0, %v12098_v54  ;;  %v14313_v54 = vld [vmem:[#allocation25_spill] sm:$0xff] }
 0x28c   : > { %10035 = vmatmul.mubr.msk.f32.gmra.mrb[16].mxu0 %vm346_vm0, %v12104_v55  ;;  %v14314_v55 = vld [vmem:[#allocation26_spill] sm:$0xff] }
 0x28d   : > { %10037 = vmatprep.mubr.msk.f32.mxu0 %vm346_vm0, %v12106_v56  ;;  %v14315_v56 = vld [vmem:[#allocation27_spill] sm:$0xff] }
 0x290   : > { %10038 = vmatmul.mubr.msk.f32.gmra.mrb[18].mxu0 %vm346_vm0, %v12112_v57  ;;  %v14316_v57 = vld [vmem:[#allocation28_spill] sm:$0xff] }
 0x291   : > { %10040 = vmatprep.mubr.msk.f32.mxu0 %vm346_vm0, %v12114_v58  ;;  %v14317_v58 = vld [vmem:[#allocation29_spill] sm:$0xff] }
 0x294   : > { %10041 = vmatmul.mubr.msk.f32.gmra.mrb[20].mxu0 %vm346_vm0, %v12120_v59  ;;  %v14318_v59 = vld [vmem:[#allocation30_spill] sm:$0xff] }
 0x295   : > { %10043 = vmatprep.mubr.msk.f32.mxu0 %vm346_vm0, %v12122_v60  ;;  %v14319_v60 = vld [vmem:[#allocation31_spill] sm:$0xff] }
 0x298   : > { %10044 = vmatmul.mubr.msk.f32.gmra.mrb[22].mxu0 %vm346_vm0, %v12128_v61  ;;  %v14320_v61 = vld [vmem:[#allocation32_spill] sm:$0xff] }
 0x299   : > { %10046 = vmatprep.mubr.msk.f32.mxu0 %vm346_vm0, %v14303_v35 }
 0x29c   : > { %10047 = vmatmul.mubr.msk.f32.gmra.mrb[24].mxu0 %vm346_vm0, %v14304_v41 }
 0x29d   : > { %10049 = vmatprep.mubr.msk.f32.mxu0 %vm346_vm0, %v14305_v44 }
 0x2a0   : > { %10050 = vmatmul.mubr.msk.f32.gmra.mrb[26].mxu0 %vm346_vm0, %v14306_v45 }
 0x2a1   : > { %10052 = vmatprep.mubr.msk.f32.mxu0 %vm346_vm0, %v14307_v46 }
 0x2a4   : > { %10053 = vmatmul.mubr.msk.f32.gmra.mrb[28].mxu0 %vm346_vm0, %v14308_v48 }
 0x2a5   : > { %10055 = vmatprep.mubr.msk.f32.mxu0 %vm346_vm0, %v3164_v47 }
 0x2a8   : > { %10056 = vmatmul.mubr.msk.f32.gmra.mrb[30].mxu0 %vm346_vm0, %v3165_v49 }
 0x2a9   : > { %10060 = vmatprep.mubr.msk.f32.mxu0 %vm346_vm0, %v14309_v50 }
 0x2ac   : > { %10061 = vmatmul.mubr.msk.f32.vlgmr.msra.gmra.mrb[0].mxu0 %vm346_vm0, %v14310_v51 }
 0x2ad   : > { %10063 = vmatprep.mubr.msk.f32.mxu0 %vm346_vm0, %v14311_v52  ;;  %10743 = vmatpush3.bf16.msra.mxu0 %v10740_v14 }
 0x2ae   : > { %10745 = vmatprep.subr.bf16.mxu0 %v10744_v18 }
 0x2b0   : > { %10064 = vmatmul.mubr.msk.f32.gmra.mrb[2].mxu0 %vm346_vm0, %v14312_v53 }
 0x2b1   : > { %10066 = vmatprep.mubr.msk.f32.mxu0 %vm346_vm0, %v14313_v54  ;;  %10747 = vmatpush3.bf16.msra.mxu0 %v10744_v18 }
 0x2b4   : > { %10067 = vmatmul.mubr.msk.f32.gmra.mrb[4].mxu0 %vm346_vm0, %v14314_v55 }
 0x2b5   : > { %10069 = vmatprep.mubr.msk.f32.mxu0 %vm346_vm0, %v14315_v56 }
 0x2b8   : > { %10070 = vmatmul.mubr.msk.f32.gmra.mrb[6].mxu0 %vm346_vm0, %v14316_v57 }
 0x2b9   : > { %10072 = vmatprep.mubr.msk.f32.mxu0 %vm346_vm0, %v14317_v58 }
 0x2bc   : > { %10073 = vmatmul.mubr.msk.f32.gmra.mrb[8].mxu0 %vm346_vm0, %v14318_v59 }
 0x2bd   : > { %10075 = vmatprep.mubr.msk.f32.mxu0 %vm346_vm0, %v14319_v60 }
 0x2c0   : > { %10076 = vmatmul.mubr.msk.f32.gmra.mrb[10].mxu0 %vm346_vm0, %v14320_v61 }
 0x2c1   : > { %10078 = vmatprep.mubr.msk.f32.mxu0 %vm346_vm0, %v14321_v20  ;;  %v8610_v20 = vld [vmem:[%s14108_s5 + $0x50] sm:$0xff] }
 0x2c4   : > { %10079 = vmatmul.mubr.msk.f32.gmra.mrb[12].mxu0 %vm346_vm0, %v14293_v25 }
 0x2c5   : > { %10081 = vmatprep.mubr.msk.f32.mxu0 %vm346_vm0, %v14322_v21  ;;  %v8611_v21 = vld [vmem:[%s14108_s5 + $0x58] sm:$0xff] }
 0x2c8   : > { %10082 = vmatmul.mubr.msk.f32.gmra.mrb[14].mxu0 %vm346_vm0, %v14323_v22 }
 0x2c9   : > { %10084 = vmatprep.mubr.msk.f32.mxu0 %vm346_vm0, %v14296_v62  ;;  %v14326_v62 = vld [vmem:[#allocation44_spill] sm:$0xff] }
 0x2cc   : > { %10085 = vmatmul.mubr.msk.f32.gmra.mrb[16].mxu0 %vm346_vm0, %v14297_v31 }
 0x2cd   : > { %10087 = vmatprep.mubr.msk.f32.mxu0 %vm346_vm0, %v14298_v32 }
 0x2d0   : > { %10088 = vmatmul.mubr.msk.f32.gmra.mrb[18].mxu0 %vm346_vm0, %v14324_v23 }
 0x2d1   : > { %10090 = vmatprep.mubr.msk.f32.mxu0 %vm346_vm0, %v14300_v34 }
 0x2d4   : > { %10091 = vmatmul.mubr.msk.f32.gmra.mrb[20].mxu0 %vm346_vm0, %v12379_v0  ;;  %v3554_v0 = vld [vmem:[#allocation2 + $0x19a] sm:$0xff] }
 0x2d5   : > { %10093 = vmatprep.mubr.msk.f32.mxu0 %vm346_vm0, %v14325_v24 }
 0x2d8   : > { %10094 = vmatmul.mubr.msk.f32.gmra.mrb[22].mxu0 %vm346_vm0, %v14302_v28 }
 0x2d9   : > { %10096 = vmatprep.mubr.msk.f32.mxu0 %vm346_vm0, %v12389_v63  ;;  %v8608_v63 = vld [vmem:[%s14108_s5 + $0x40] sm:$0xff] }
 0x2da   : > { %v12809_v29 = vpack.c.bf16 %v8609_v27, %v8608_v63  ;;  %v8612_v27 = vld [vmem:[%s14108_s5 + $0x60] sm:$0xff] }
 0x2dc   : > { %10097 = vmatmul.mubr.msk.f32.gmra.mrb[24].mxu0 %vm346_vm0, %v14326_v62  ;;  %10749 = vmatprep.subr.bf16.mxu1 %v12809_v29 }
 0x2dd   : > { %10099 = vmatprep.mubr.msk.f32.mxu0 %vm346_vm0, %v12397_v42 }
 0x2e0   : > { %10100 = vmatmul.mubr.msk.f32.gmra.mrb[26].mxu0 %vm346_vm0, %v12403_v6 }
 0x2e1   : > { %10102 = vmatprep.mubr.msk.f32.mxu0 %vm346_vm0, %v12608_v33 }
 0x2e4   : > { %10103 = vmatmul.mubr.msk.f32.gmra.mrb[28].mxu0 %vm346_vm0, %v12614_v7 }
 0x2e5   : > { %10105 = vmatprep.mubr.msk.f32.mxu0 %vm346_vm0, %v3554_v0 }
 0x2e8   : > { %10106 = vmatmul.mubr.msk.f32.gmra.mrb[30].mxu0 %vm346_vm0, %v3555_v26  ;;  %v10752_v26 = vpack.c.bf16 %v8611_v21, %v8610_v20  ;;  %v4541_v21 = vld [vmem:[%s14108_s5 + $0x30] sm:$0xff] }
 0x37f   : > { %v10062_v36 = vpop.f32.mrb[0].mxu0 }
 0x380   : > { %v3922_v37 = vadd.f32 %v10062_v36, %v12812_v30  ;;  %v3723_v38 = vpop.f32.mrb[1].mxu0  ;;  %v8613_v36 = vld [vmem:[%s14108_s5 + $0x68] sm:$0xff] }
 0x381   : > { %v3921_v39 = vadd.f32 %v12812_v30, %v3723_v38 }
 0x382   : > { %v3954_v4 = vmax.f32 %v3922_v37, 0.0 }
 0x383   : > { %v3953_v43 = vmax.f32 %v3921_v39, 0.0  ;;  %v10065_v3 = vpop.f32.mrb[2].mxu0 }
 0x384   : > { %v3924_v40 = vadd.f32 %v10065_v3, %v12812_v30  ;;  %v3733_v42 = vpop.f32.mrb[3].mxu0 }
 0x385   : > { %v3923_v6 = vadd.f32 %v12812_v30, %v3733_v42  ;;  %10116 = vmatprep.mubr.msk.f32.mxu0 %vm3996_vm3, %v3953_v43 }
 0x386   : > { %10117 = vmatmul.mubr.msk.f32.vlgmr.msra.gmra.mrb[32].mxu0 %vm3996_vm3, %v3954_v4  ;;  %v3956_v28 = vmax.f32 %v3924_v40, 0.0  ;;  %v10756_v4 = vpack.c.bf16 %v8613_v36, %v8612_v27 }
 0x387   : > { %v3955_v2 = vmax.f32 %v3923_v6, 0.0  ;;  %v10068_v5 = vpop.f32.mrb[4].mxu0 }
 0x388   : > { %v3926_v31 = vadd.f32 %v10068_v5, %v12812_v30  ;;  %v3743_v32 = vpop.f32.mrb[5].mxu0 }
 0x389   : > { %v3925_v33 = vadd.f32 %v12812_v30, %v3743_v32  ;;  %10119 = vmatprep.mubr.msk.f32.mxu0 %vm3996_vm3, %v3955_v2 }
 0x38a   : > { %10120 = vmatmul.mubr.msk.f32.gmra.mrb[34].mxu0 %vm3996_vm3, %v3956_v28  ;;  %v3958_v25 = vmax.f32 %v3926_v31, 0.0 }
 0x38b   : > { %v3957_v1 = vmax.f32 %v3925_v33, 0.0  ;;  %v10071_v34 = vpop.f32.mrb[6].mxu0 }
 0x38c   : > { %v3928_v7 = vadd.f32 %v10071_v34, %v12812_v30  ;;  %v3753_v8 = vpop.f32.mrb[7].mxu0 }
 0x38d   : > { %v3927_v9 = vadd.f32 %v12812_v30, %v3753_v8  ;;  %10122 = vmatprep.mubr.msk.f32.mxu0 %vm3996_vm3, %v3957_v1 }
 0x38e   : > { %10123 = vmatmul.mubr.msk.f32.gmra.mrb[36].mxu0 %vm3996_vm3, %v3958_v25  ;;  %v3960_v12 = vmax.f32 %v3928_v7, 0.0 }
 0x38f   : > { %v3959_v10 = vmax.f32 %v3927_v9, 0.0  ;;  %v10074_v11 = vpop.f32.mrb[8].mxu0 }
 0x390   : > { %v3930_v13 = vadd.f32 %v10074_v11, %v12812_v30  ;;  %v3763_v14 = vpop.f32.mrb[9].mxu0 }
 0x391   : > { %v3929_v15 = vadd.f32 %v12812_v30, %v3763_v14  ;;  %10125 = vmatprep.mubr.msk.f32.mxu0 %vm3996_vm3, %v3959_v10 }
 0x392   : > { %10126 = vmatmul.mubr.msk.f32.gmra.mrb[38].mxu0 %vm3996_vm3, %v3960_v12  ;;  %v3962_v18 = vmax.f32 %v3930_v13, 0.0 }
 0x393   : > { %v3961_v16 = vmax.f32 %v3929_v15, 0.0  ;;  %v10077_v17 = vpop.f32.mrb[10].mxu0 }
 0x394   : > { %v3932_v19 = vadd.f32 %v10077_v17, %v12812_v30  ;;  %v3773_v35 = vpop.f32.mrb[11].mxu0 }
 0x395   : > { %v3931_v41 = vadd.f32 %v12812_v30, %v3773_v35  ;;  %10128 = vmatprep.mubr.msk.f32.mxu0 %vm3996_vm3, %v3961_v16 }
 0x396   : > { %10129 = vmatmul.mubr.msk.f32.gmra.mrb[40].mxu0 %vm3996_vm3, %v3962_v18  ;;  %v3964_v46 = vmax.f32 %v3932_v19, 0.0 }
 0x397   : > { %v3963_v44 = vmax.f32 %v3931_v41, 0.0  ;;  %v10080_v45 = vpop.f32.mrb[12].mxu0 }
 0x398   : > { %v3934_v47 = vadd.f32 %v10080_v45, %v12812_v30  ;;  %v3783_v48 = vpop.f32.mrb[13].mxu0 }
 0x399   : > { %v3933_v49 = vadd.f32 %v12812_v30, %v3783_v48  ;;  %10131 = vmatprep.mubr.msk.f32.mxu0 %vm3996_vm3, %v3963_v44 }
 0x39a   : > { %10132 = vmatmul.mubr.msk.f32.gmra.mrb[42].mxu0 %vm3996_vm3, %v3964_v46  ;;  %v3966_v52 = vmax.f32 %v3934_v47, 0.0 }
 0x39b   : > { %v3965_v50 = vmax.f32 %v3933_v49, 0.0  ;;  %v10083_v51 = vpop.f32.mrb[14].mxu0  ;;  %v14327_v49 = vmov 0.0  }
 0x39c   : > { %v3936_v53 = vadd.f32 %v10083_v51, %v12812_v30  ;;  %v3793_v54 = vpop.f32.mrb[15].mxu0  ;;  %4420 = vst.msk [vmem:[#allocation3 + $0x20] sm:$0xff] %vm4414_vm4, %v14327_v49  ;;  %4415 = vst.msk [vmem:[#allocation3] sm:$0xff] %vm4414_vm4, %v14327_v49 }
 0x39d   : > { %v3935_v55 = vadd.f32 %v12812_v30, %v3793_v54  ;;  %10134 = vmatprep.mubr.msk.f32.mxu0 %vm3996_vm3, %v3965_v50  ;;  %4416 = vst.msk [vmem:[#allocation3 + $0x8] sm:$0xff] %vm4414_vm4, %v14327_v49  ;;  %4419 = vst.msk [vmem:[#allocation3 + $0x18] sm:$0xff] %vm4414_vm4, %v14327_v49  ;;  %v8615_v50 = vld [vmem:[%s14108_s5 + $0x78] sm:$0xff]  ;;  %v4535_v54 = vld [vmem:[%s14108_s5] sm:$0xff] }
 0x39e   : > { %10135 = vmatmul.mubr.msk.f32.gmra.mrb[44].mxu0 %vm3996_vm3, %v3966_v52  ;;  %v3968_v58 = vmax.f32 %v3936_v53, 0.0  ;;  %4422 = vst.msk [vmem:[#allocation3 + $0x30] sm:$0xff] %vm4414_vm4, %v14327_v49  ;;  %4423 = vst.msk [vmem:[#allocation3 + $0x38] sm:$0xff] %vm4414_vm4, %v14327_v49 }
 0x39f   : > { %v3967_v56 = vmax.f32 %v3935_v55, 0.0  ;;  %v10086_v57 = vpop.f32.mrb[16].mxu0  ;;  %4425 = vst.msk [vmem:[#allocation3 + $0x48] sm:$0xff] %vm4414_vm4, %v14327_v49  ;;  %4426 = vst.msk [vmem:[#allocation3 + $0x50] sm:$0xff] %vm4414_vm4, %v14327_v49  ;;  %v4536_v55 = vld [vmem:[%s14108_s5 + $0x8] sm:$0xff] }
 0x3a0   : > { %v3938_v59 = vadd.f32 %v10086_v57, %v12812_v30  ;;  %v3803_v60 = vpop.f32.mrb[17].mxu0  ;;  %4428 = vst.msk [vmem:[#allocation3 + $0x60] sm:$0xff] %vm4414_vm4, %v14327_v49  ;;  %4429 = vst.msk [vmem:[#allocation3 + $0x68] sm:$0xff] %vm4414_vm4, %v14327_v49  ;;  %v4537_v57 = vld [vmem:[%s14108_s5 + $0x10] sm:$0xff] }
 0x3a1   : > { %v3937_v61 = vadd.f32 %v12812_v30, %v3803_v60  ;;  %10137 = vmatprep.mubr.msk.f32.mxu0 %vm3996_vm3, %v3967_v56  ;;  %4431 = vst.msk [vmem:[#allocation3 + $0x78] sm:$0xff] %vm4414_vm4, %v14327_v49  ;;  %4432 = vst.msk [vmem:[#allocation3 + $0x80] sm:$0xff] %vm4414_vm4, %v14327_v49  ;;  %v10764_v56 = vpack.c.bf16 %v4536_v55, %v4535_v54  ;;  %v4539_v60 = vld [vmem:[%s14108_s5 + $0x20] sm:$0xff] }
 0x3a2   : > { %10138 = vmatmul.mubr.msk.f32.gmra.mrb[46].mxu0 %vm3996_vm3, %v3968_v58  ;;  %v3970_v24 = vmax.f32 %v3938_v59, 0.0  ;;  %4434 = vst.msk [vmem:[#allocation3 + $0x90] sm:$0xff] %vm4414_vm4, %v14327_v49  ;;  %4435 = vst.msk [vmem:[#allocation3 + $0x98] sm:$0xff] %vm4414_vm4, %v14327_v49  ;;  %v4538_v58 = vld [vmem:[%s14108_s5 + $0x18] sm:$0xff] }
 0x3a3   : > { %v3969_v22 = vmax.f32 %v3937_v61, 0.0  ;;  %v10089_v23 = vpop.f32.mrb[18].mxu0  ;;  %4437 = vst.msk [vmem:[#allocation3 + $0xa8] sm:$0xff] %vm4414_vm4, %v14327_v49  ;;  %4438 = vst.msk [vmem:[#allocation3 + $0xb0] sm:$0xff] %vm4414_vm4, %v14327_v49  ;;  %v10768_v59 = vpack.c.bf16 %v4538_v58, %v4537_v57  ;;  %v4540_v61 = vld [vmem:[%s14108_s5 + $0x28] sm:$0xff] }
 0x3a4   : > { %v3940_v62 = vadd.f32 %v10089_v23, %v12812_v30  ;;  %v3813_v0 = vpop.f32.mrb[19].mxu0  ;;  %4440 = vst.msk [vmem:[#allocation3 + $0xc0] sm:$0xff] %vm4414_vm4, %v14327_v49  ;;  %4441 = vst.msk [vmem:[#allocation3 + $0xc8] sm:$0xff] %vm4414_vm4, %v14327_v49  ;;  %v4543_v52 = vld [vmem:[#allocation3 + $0x1] sm:$0xff]  ;;  %v10772_v20 = vpack.c.bf16 %v4540_v61, %v4539_v60 }
 0x3a5   : > { %v3939_v63 = vadd.f32 %v12812_v30, %v3813_v0  ;;  %10140 = vmatprep.mubr.msk.f32.mxu1 %vm3996_vm3, %v3969_v22  ;;  %4443 = vst.msk [vmem:[#allocation3 + $0xd8] sm:$0xff] %vm4414_vm4, %v14327_v49  ;;  %4444 = vst.msk [vmem:[#allocation3 + $0xe0] sm:$0xff] %vm4414_vm4, %v14327_v49  ;;  %v4542_v22 = vld [vmem:[%s14108_s5 + $0x38] sm:$0xff] }
 0x3a6   : > { %10141 = vmatmul.mubr.msk.f32.vlgmr.msra.gmra.mrb[0].mxu1 %vm3996_vm3, %v3970_v24  ;;  %v3972_v39 = vmax.f32 %v3940_v62, 0.0  ;;  %4446 = vst.msk [vmem:[#allocation3 + $0xf0] sm:$0xff] %vm4414_vm4, %v14327_v49  ;;  %4447 = vst.msk [vmem:[#allocation3 + $0xf8] sm:$0xff] %vm4414_vm4, %v14327_v49  ;;  %v10776_v23 = vpack.c.bf16 %v4542_v22, %v4541_v21  ;;  %v8680_v24 = vld [vmem:[%s14108_s5 + $0x80] sm:$0xff]  ;;  %v8681_v62 = vld [vmem:[%s14108_s5 + $0x88] sm:$0xff] }
 0x3a7   : > { %v3971_v37 = vmax.f32 %v3939_v63, 0.0  ;;  %v10092_v38 = vpop.f32.mrb[20].mxu0  ;;  %10751 = vmatpush3.bf16.msra.mxu1 %v12809_v29  ;;  %4449 = vst.msk [vmem:[#allocation3 + $0x108] sm:$0xff] %vm4414_vm4, %v14327_v49  ;;  %4450 = vst.msk [vmem:[#allocation3 + $0x110] sm:$0xff] %vm4414_vm4, %v14327_v49  ;;  %v13037_v0 = vpack.c.bf16 %v8681_v62, %v8680_v24 }
 0x3a8   : > { %v3942_v43 = vadd.f32 %v10092_v38, %v12812_v30  ;;  %v3823_v3 = vpop.f32.mrb[21].mxu0  ;;  %10753 = vmatprep.subr.bf16.mxu1 %v10752_v26  ;;  %4452 = vst.msk [vmem:[#allocation3 + $0x120] sm:$0xff] %vm4414_vm4, %v14327_v49  ;;  %4453 = vst.msk [vmem:[#allocation3 + $0x128] sm:$0xff] %vm4414_vm4, %v14327_v49 }
 0x3a9   : > { %v3941_v40 = vadd.f32 %v12812_v30, %v3823_v3  ;;  %10143 = vmatprep.mubr.msk.f32.mxu1 %vm3996_vm3, %v3971_v37  ;;  %4455 = vst.msk [vmem:[#allocation3 + $0x138] sm:$0xff] %vm4414_vm4, %v14327_v49  ;;  %4456 = vst.msk [vmem:[#allocation3 + $0x140] sm:$0xff] %vm4414_vm4, %v14327_v49 }
 0x3aa   : > { %10144 = vmatmul.mubr.msk.f32.gmra.mrb[2].mxu1 %vm3996_vm3, %v3972_v39  ;;  %v3974_v2 = vmax.f32 %v3942_v43, 0.0  ;;  %4458 = vst.msk [vmem:[#allocation3 + $0x150] sm:$0xff] %vm4414_vm4, %v14327_v49  ;;  %4459 = vst.msk [vmem:[#allocation3 + $0x158] sm:$0xff] %vm4414_vm4, %v14327_v49 }
 0x3ab   : > { %v3973_v42 = vmax.f32 %v3941_v40, 0.0  ;;  %v10095_v6 = vpop.f32.mrb[22].mxu0  ;;  %10755 = vmatpush3.bf16.msra.mxu1 %v10752_v26  ;;  %4461 = vst.msk [vmem:[#allocation3 + $0x168] sm:$0xff] %vm4414_vm4, %v14327_v49  ;;  %4462 = vst.msk [vmem:[#allocation3 + $0x170] sm:$0xff] %vm4414_vm4, %v14327_v49  ;;  %v13040_v26 = vld [vmem:[#allocation9] ss:$0 sm:$0xff] }
 0x3ac   : > { %v3944_v5 = vadd.f32 %v10095_v6, %v12812_v30  ;;  %v3833_v28 = vpop.f32.mrb[23].mxu0  ;;  %10757 = vmatprep.subr.bf16.mxu1 %v10756_v4  ;;  %4464 = vst.msk [vmem:[#allocation3 + $0x180] sm:$0xff] %vm4414_vm4, %v14327_v49  ;;  %4465 = vst.msk [vmem:[#allocation3 + $0x188] sm:$0xff] %vm4414_vm4, %v14327_v49 }
 0x3ad   : > { %v3943_v29 = vadd.f32 %v12812_v30, %v3833_v28  ;;  %10146 = vmatprep.mubr.msk.f32.mxu1 %vm3996_vm3, %v3973_v42  ;;  %4467 = vst.msk [vmem:[#allocation3 + $0x198] sm:$0xff] %vm4414_vm4, %v14327_v49  ;;  %4468 = vst.msk [vmem:[#allocation3 + $0x1a0] sm:$0xff] %vm4414_vm4, %v14327_v49 }
 0x3ae   : > { %10147 = vmatmul.mubr.msk.f32.gmra.mrb[4].mxu1 %vm3996_vm3, %v3974_v2  ;;  %v3976_v33 = vmax.f32 %v3944_v5, 0.0  ;;  %4421 = vst.msk [vmem:[#allocation3 + $0x28] sm:$0x3] %vm4417_vm5, %v14327_v49  ;;  %4418 = vst.msk [vmem:[#allocation3 + $0x10] sm:$0x3] %vm4417_vm5, %v14327_v49 }
 0x3af   : > { %v3975_v31 = vmax.f32 %v3943_v29, 0.0  ;;  %v10098_v32 = vpop.f32.mrb[24].mxu0  ;;  %10759 = vmatpush3.bf16.msra.mxu1 %v10756_v4  ;;  %4424 = vst.msk [vmem:[#allocation3 + $0x40] sm:$0x3] %vm4417_vm5, %v14327_v49  ;;  %4427 = vst.msk [vmem:[#allocation3 + $0x58] sm:$0x3] %vm4417_vm5, %v14327_v49 }
 0x3b0   : > { %v3946_v1 = vadd.f32 %v10098_v32, %v12812_v30  ;;  %v3843_v34 = vpop.f32.mrb[25].mxu0  ;;  %4430 = vst.msk [vmem:[#allocation3 + $0x70] sm:$0x3] %vm4417_vm5, %v14327_v49  ;;  %4433 = vst.msk [vmem:[#allocation3 + $0x88] sm:$0x3] %vm4417_vm5, %v14327_v49 }
 0x3b1   : > { %v3945_v25 = vadd.f32 %v12812_v30, %v3843_v34  ;;  %10149 = vmatprep.mubr.msk.f32.mxu1 %vm3996_vm3, %v3975_v31  ;;  %4436 = vst.msk [vmem:[#allocation3 + $0xa0] sm:$0x3] %vm4417_vm5, %v14327_v49  ;;  %4439 = vst.msk [vmem:[#allocation3 + $0xb8] sm:$0x3] %vm4417_vm5, %v14327_v49 }
 0x3b2   : > { %10150 = vmatmul.mubr.msk.f32.gmra.mrb[6].mxu1 %vm3996_vm3, %v3976_v33  ;;  %v3978_v9 = vmax.f32 %v3946_v1, 0.0  ;;  %4442 = vst.msk [vmem:[#allocation3 + $0xd0] sm:$0x3] %vm4417_vm5, %v14327_v49  ;;  %4445 = vst.msk [vmem:[#allocation3 + $0xe8] sm:$0x3] %vm4417_vm5, %v14327_v49 }
 0x3b3   : > { %v3977_v7 = vmax.f32 %v3945_v25, 0.0  ;;  %v10101_v8 = vpop.f32.mrb[26].mxu0  ;;  %4448 = vst.msk [vmem:[#allocation3 + $0x100] sm:$0x3] %vm4417_vm5, %v14327_v49  ;;  %4451 = vst.msk [vmem:[#allocation3 + $0x118] sm:$0x3] %vm4417_vm5, %v14327_v49 }
 0x3b4   : > { %v3948_v10 = vadd.f32 %v10101_v8, %v12812_v30  ;;  %v3853_v11 = vpop.f32.mrb[27].mxu0  ;;  %4454 = vst.msk [vmem:[#allocation3 + $0x130] sm:$0x3] %vm4417_vm5, %v14327_v49  ;;  %4457 = vst.msk [vmem:[#allocation3 + $0x148] sm:$0x3] %vm4417_vm5, %v14327_v49 }
 0x3b5   : > { %v3947_v12 = vadd.f32 %v12812_v30, %v3853_v11  ;;  %10152 = vmatprep.mubr.msk.f32.mxu1 %vm3996_vm3, %v3977_v7  ;;  %4460 = vst.msk [vmem:[#allocation3 + $0x160] sm:$0x3] %vm4417_vm5, %v14327_v49  ;;  %4463 = vst.msk [vmem:[#allocation3 + $0x178] sm:$0x3] %vm4417_vm5, %v14327_v49  ;;  %v4544_v53 = vld [vmem:[#allocation3 + $0x9] sm:$0xff] }
 0x3b6   : > { %10153 = vmatmul.mubr.msk.f32.gmra.mrb[8].mxu1 %vm3996_vm3, %v3978_v9  ;;  %v3980_v15 = vmax.f32 %v3948_v10, 0.0  ;;  %4466 = vst.msk [vmem:[#allocation3 + $0x190] sm:$0x3] %vm4417_vm5, %v14327_v49  ;;  %4469 = vst.msk [vmem:[#allocation3 + $0x1a8] sm:$0x3] %vm4417_vm5, %v14327_v49 }
 0x3b7   : > { %v3979_v13 = vmax.f32 %v3947_v12, 0.0  ;;  %v10104_v14 = vpop.f32.mrb[28].mxu0 }
 0x3b8   : > { %v3950_v16 = vadd.f32 %v10104_v14, %v12812_v30  ;;  %v3863_v17 = vpop.f32.mrb[29].mxu0 }
 0x3b9   : > { %v3949_v18 = vadd.f32 %v12812_v30, %v3863_v17  ;;  %10155 = vmatprep.mubr.msk.f32.mxu1 %vm3996_vm3, %v3979_v13 }
 0x3ba   : > { %10156 = vmatmul.mubr.msk.f32.gmra.mrb[10].mxu1 %vm3996_vm3, %v3980_v15  ;;  %v3982_v41 = vmax.f32 %v3950_v16, 0.0 }
 0x3bb   : > { %v3981_v19 = vmax.f32 %v3949_v18, 0.0  ;;  %v10107_v35 = vpop.f32.mrb[30].mxu0 }
 0x3bc   : > { %v3952_v44 = vadd.f32 %v10107_v35, %v12812_v30  ;;  %v3873_v45 = vpop.f32.mrb[31].mxu0 }
 0x3bd   : > { %v3951_v46 = vadd.f32 %v12812_v30, %v3873_v45  ;;  %10158 = vmatprep.mubr.msk.f32.mxu1 %vm3996_vm3, %v3981_v19  ;;  %v8614_v30 = vld [vmem:[%s14108_s5 + $0x70] sm:$0xff] }
 0x3be   : > { %10159 = vmatmul.mubr.msk.f32.gmra.mrb[12].mxu1 %vm3996_vm3, %v3982_v41  ;;  %v3984_v48 = vmax.f32 %v3952_v44, 0.0  ;;  %v10760_v51 = vpack.c.bf16 %v8615_v50, %v8614_v30 }
 0x3bf   : > { %v3983_v47 = vmax.f32 %v3951_v46, 0.0 }
 0x3c0   : > { %10761 = vmatprep.subr.bf16.mxu1 %v10760_v51 }
 0x3c1   : > { %10161 = vmatprep.mubr.msk.f32.mxu1 %vm3996_vm3, %v3983_v47  ;;  %10763 = vmatpush3.bf16.msra.mxu1 %v10760_v51 }
 0x3c2   : > { %10162 = vmatmul.mubr.msk.f32.gmra.mrb[14].mxu1 %vm3996_vm3, %v3984_v48  ;;  %10765 = vmatprep.subr.bf16.mxu1 %v10764_v56 }
 0x3c3   : > { %10180 = vmatprep.mubr.msk.f32.mxu1 %vm4414_vm4, %v4543_v52 }
 0x3c6   : > { %10181 = vmatmul.mubr.msk.f32.vlgmr.msra.gmra.mrb[16].mxu1 %vm4414_vm4, %v4544_v53 }
 0x3c7   : > { %10767 = vmatpush3.bf16.msra.mxu1 %v10764_v56 }
 0x3c8   : > { %10769 = vmatprep.subr.bf16.mxu1 %v10768_v59 }
 0x3cb   : > { %10771 = vmatpush3.bf16.msra.mxu1 %v10768_v59 }
 0x3cc   : > { %10773 = vmatprep.subr.bf16.mxu1 %v10772_v20 }
 0x3cf   : > { %10775 = vmatpush3.bf16.msra.mxu1 %v10772_v20 }
 0x3d0   : > { %10777 = vmatprep.subr.bf16.mxu1 %v10776_v23 }
 0x3d3   : > { %10779 = vmatpush3.bf16.msra.mxu1 %v10776_v23 }
 0x3d4   : > { %10781 = vmatprep.subr.bf16.mxu1 %v13037_v0 }
 0x459   : > { %v10118_v63 = vpop.f32.mrb[32].mxu0 }
 0x45a   : > { %v4165_v27 = vadd.f32 %v10118_v63, %v13040_v26  ;;  %v4159_v36 = vpop.f32.mrb[33].mxu0 }
 0x45b   : > { %v4160_v37 = vadd.f32 %v13040_v26, %v4159_v36 }
 0x45c   : > { %vm4319_vm6 = vcmp.ge.f32.partialorder %v4165_v27, 0.0  ;;  %v4351_v38 = vmul.f32 0.25, %v4165_v27 }
 0x45d   : > { %vm4318_vm7 = vcmp.ge.f32.partialorder %v4160_v37, 0.0  ;;  %v4350_v39 = vmul.f32 0.25, %v4160_v37  ;;  %v10121_v43 = vpop.f32.mrb[34].mxu0 }
 0x45e   : > { %v4383_v3 = vsel %vm4319_vm6, %v4165_v27, %v4351_v38  ;;  %v4175_v4 = vadd.f32 %v10121_v43, %v13040_v26  ;;  %v4169_v40 = vpop.f32.mrb[35].mxu0 }
 0x45f   : > { %4472 = vst.msk [vmem:[#allocation3 + $0x21] sm:$0xff] %vm4414_vm4, %v4383_v3  ;;  %v4382_v42 = vsel %vm4318_vm7, %v4160_v37, %v4350_v39  ;;  %v4170_v6 = vadd.f32 %v13040_v26, %v4169_v40 }
 0x460   : > { %4471 = vst.msk [vmem:[#allocation3 + $0x19] sm:$0xff] %vm4414_vm4, %v4382_v42  ;;  %vm4321_vm8 = vcmp.ge.f32.partialorder %v4175_v4, 0.0  ;;  %v4353_v2 = vmul.f32 0.25, %v4175_v4 }
 0x461   : > { %vm4320_vm9 = vcmp.ge.f32.partialorder %v4170_v6, 0.0  ;;  %v4352_v5 = vmul.f32 0.25, %v4170_v6  ;;  %v10124_v28 = vpop.f32.mrb[36].mxu0 }
 0x462   : > { %v4385_v29 = vsel %vm4321_vm8, %v4175_v4, %v4353_v2  ;;  %v4185_v31 = vadd.f32 %v10124_v28, %v13040_v26  ;;  %v4179_v32 = vpop.f32.mrb[37].mxu0 }
 0x463   : > { %4474 = vst.msk [vmem:[#allocation3 + $0x39] sm:$0xff] %vm4414_vm4, %v4385_v29  ;;  %v4384_v33 = vsel %vm4320_vm9, %v4170_v6, %v4352_v5  ;;  %v4180_v1 = vadd.f32 %v13040_v26, %v4179_v32 }
 0x464   : > { %4473 = vst.msk [vmem:[#allocation3 + $0x31] sm:$0xff] %vm4414_vm4, %v4384_v33  ;;  %vm4323_vm10 = vcmp.ge.f32.partialorder %v4185_v31, 0.0  ;;  %v4355_v34 = vmul.f32 0.25, %v4185_v31 }
 0x465   : > { %vm4322_vm11 = vcmp.ge.f32.partialorder %v4180_v1, 0.0  ;;  %v4354_v25 = vmul.f32 0.25, %v4180_v1  ;;  %v10127_v7 = vpop.f32.mrb[38].mxu0 }
 0x466   : > { %v4387_v8 = vsel %vm4323_vm10, %v4185_v31, %v4355_v34  ;;  %v4195_v9 = vadd.f32 %v10127_v7, %v13040_v26  ;;  %v4189_v10 = vpop.f32.mrb[39].mxu0  ;;  %v13060_v15 = vld [vmem:[#allocation3 + $0x21] sm:$0xff] }
 0x467   : > { %4476 = vst.msk [vmem:[#allocation3 + $0x51] sm:$0xff] %vm4414_vm4, %v4387_v8  ;;  %v4386_v11 = vsel %vm4322_vm11, %v4180_v1, %v4354_v25  ;;  %v4190_v12 = vadd.f32 %v13040_v26, %v4189_v10  ;;  %v13055_v13 = vld [vmem:[#allocation3 + $0x19] sm:$0xff] }
 0x468   : > { %4475 = vst.msk [vmem:[#allocation3 + $0x49] sm:$0xff] %vm4414_vm4, %v4386_v11  ;;  %vm4325_vm12 = vcmp.ge.f32.partialorder %v4195_v9, 0.0  ;;  %v4357_v14 = vmul.f32 0.25, %v4195_v9  ;;  %10183 = vmatprep.mubr.msk.f32.mxu1 %vm4414_vm4, %v13055_v13 }
 0x469   : > { %vm4324_vm13 = vcmp.ge.f32.partialorder %v4190_v12, 0.0  ;;  %v4356_v16 = vmul.f32 0.25, %v4190_v12  ;;  %v10130_v17 = vpop.f32.mrb[40].mxu0  ;;  %10184 = vmatmul.mubr.msk.f32.gmra.mrb[18].mxu1 %vm4414_vm4, %v13060_v15 }
 0x46a   : > { %v4389_v18 = vsel %vm4325_vm12, %v4195_v9, %v4357_v14  ;;  %v4205_v19 = vadd.f32 %v10130_v17, %v13040_v26  ;;  %v4199_v35 = vpop.f32.mrb[41].mxu0  ;;  %v13072_v47 = vld [vmem:[#allocation3 + $0x39] sm:$0xff] }
 0x46b   : > { %4478 = vst.msk [vmem:[#allocation3 + $0x69] sm:$0xff] %vm4414_vm4, %v4389_v18  ;;  %v4388_v41 = vsel %vm4324_vm13, %v4190_v12, %v4356_v16  ;;  %v4200_v44 = vadd.f32 %v13040_v26, %v4199_v35  ;;  %v13067_v45 = vld [vmem:[#allocation3 + $0x31] sm:$0xff] }
 0x46c   : > { %4477 = vst.msk [vmem:[#allocation3 + $0x61] sm:$0xff] %vm4414_vm4, %v4388_v41  ;;  %vm4327_vm14 = vcmp.ge.f32.partialorder %v4205_v19, 0.0  ;;  %v4359_v46 = vmul.f32 0.25, %v4205_v19  ;;  %10186 = vmatprep.mubr.msk.f32.mxu1 %vm4414_vm4, %v13067_v45 }
 0x46d   : > { %vm4326_vm15 = vcmp.ge.f32.partialorder %v4200_v44, 0.0  ;;  %v4358_v48 = vmul.f32 0.25, %v4200_v44  ;;  %v10133_v49 = vpop.f32.mrb[42].mxu0  ;;  %10187 = vmatmul.mubr.msk.f32.gmra.mrb[20].mxu1 %vm4414_vm4, %v13072_v47 }
 0x46e   : > { %v4391_v30 = vsel %vm4327_vm14, %v4205_v19, %v4359_v46  ;;  %v4215_v50 = vadd.f32 %v10133_v49, %v13040_v26  ;;  %v4209_v51 = vpop.f32.mrb[43].mxu0  ;;  %v13084_v56 = vld [vmem:[#allocation3 + $0x51] sm:$0xff] }
 0x46f   : > { %4480 = vst.msk [vmem:[#allocation3 + $0x81] sm:$0xff] %vm4414_vm4, %v4391_v30  ;;  %v4390_v52 = vsel %vm4326_vm15, %v4200_v44, %v4358_v48  ;;  %v4210_v53 = vadd.f32 %v13040_v26, %v4209_v51  ;;  %v13079_v54 = vld [vmem:[#allocation3 + $0x49] sm:$0xff] }
 0x470   : > { %4479 = vst.msk [vmem:[#allocation3 + $0x79] sm:$0xff] %vm4414_vm4, %v4390_v52  ;;  %vm4329_vm0 = vcmp.ge.f32.partialorder %v4215_v50, 0.0  ;;  %v4361_v55 = vmul.f32 0.25, %v4215_v50  ;;  %10189 = vmatprep.mubr.msk.f32.mxu1 %vm4414_vm4, %v13079_v54 }
 0x471   : > { %vm4328_vm1 = vcmp.ge.f32.partialorder %v4210_v53, 0.0  ;;  %v4360_v57 = vmul.f32 0.25, %v4210_v53  ;;  %v10136_v58 = vpop.f32.mrb[44].mxu0  ;;  %10190 = vmatmul.mubr.msk.f32.gmra.mrb[22].mxu1 %vm4414_vm4, %v13084_v56 }
 0x472   : > { %v4393_v59 = vsel %vm4329_vm0, %v4215_v50, %v4361_v55  ;;  %v4225_v60 = vadd.f32 %v10136_v58, %v13040_v26  ;;  %v4219_v61 = vpop.f32.mrb[45].mxu0  ;;  %v13096_v24 = vld [vmem:[#allocation3 + $0x69] sm:$0xff] }
 0x473   : > { %4482 = vst.msk [vmem:[#allocation3 + $0x99] sm:$0xff] %vm4414_vm4, %v4393_v59  ;;  %v4392_v20 = vsel %vm4328_vm1, %v4210_v53, %v4360_v57  ;;  %v4220_v21 = vadd.f32 %v13040_v26, %v4219_v61  ;;  %v13091_v22 = vld [vmem:[#allocation3 + $0x61] sm:$0xff] }
 0x474   : > { %4481 = vst.msk [vmem:[#allocation3 + $0x91] sm:$0xff] %vm4414_vm4, %v4392_v20  ;;  %vm4331_vm2 = vcmp.ge.f32.partialorder %v4225_v60, 0.0  ;;  %v4363_v23 = vmul.f32 0.25, %v4225_v60  ;;  %10192 = vmatprep.mubr.msk.f32.mxu1 %vm4414_vm4, %v13091_v22 }
 0x475   : > { %vm4330_vm3 = vcmp.ge.f32.partialorder %v4220_v21, 0.0  ;;  %v4362_v62 = vmul.f32 0.25, %v4220_v21  ;;  %v10139_v63 = vpop.f32.mrb[46].mxu0  ;;  %10193 = vmatmul.mubr.msk.f32.gmra.mrb[24].mxu1 %vm4414_vm4, %v13096_v24 }
 0x476   : > { %v4395_v27 = vsel %vm4331_vm2, %v4225_v60, %v4363_v23  ;;  %v4235_v36 = vadd.f32 %v10139_v63, %v13040_v26  ;;  %v4229_v37 = vpop.f32.mrb[47].mxu0  ;;  %v13108_v4 = vld [vmem:[#allocation3 + $0x81] sm:$0xff] }
 0x477   : > { %4484 = vst.msk [vmem:[#allocation3 + $0xb1] sm:$0xff] %vm4414_vm4, %v4395_v27  ;;  %v4394_v38 = vsel %vm4330_vm3, %v4220_v21, %v4362_v62  ;;  %v4230_v39 = vadd.f32 %v13040_v26, %v4229_v37  ;;  %v13103_v43 = vld [vmem:[#allocation3 + $0x79] sm:$0xff] }
 0x478   : > { %4483 = vst.msk [vmem:[#allocation3 + $0xa9] sm:$0xff] %vm4414_vm4, %v4394_v38  ;;  %vm4333_vm5 = vcmp.ge.f32.partialorder %v4235_v36, 0.0  ;;  %v4365_v3 = vmul.f32 0.25, %v4235_v36  ;;  %10195 = vmatprep.mubr.msk.f32.mxu1 %vm4414_vm4, %v13103_v43 }
 0x479   : > { %vm4332_vm6 = vcmp.ge.f32.partialorder %v4230_v39, 0.0  ;;  %v4364_v40 = vmul.f32 0.25, %v4230_v39  ;;  %v10142_v42 = vpop.f32.mrb[0].mxu1  ;;  %10196 = vmatmul.mubr.msk.f32.gmra.mrb[26].mxu1 %vm4414_vm4, %v13108_v4 }
 0x47a   : > { %v4397_v6 = vsel %vm4333_vm5, %v4235_v36, %v4365_v3  ;;  %v4245_v2 = vadd.f32 %v10142_v42, %v13040_v26  ;;  %v4239_v5 = vpop.f32.mrb[1].mxu1  ;;  %v13120_v33 = vld [vmem:[#allocation3 + $0x99] sm:$0xff] }
 0x47b   : > { %4486 = vst.msk [vmem:[#allocation3 + $0xc9] sm:$0xff] %vm4414_vm4, %v4397_v6  ;;  %v4396_v28 = vsel %vm4332_vm6, %v4230_v39, %v4364_v40  ;;  %v4240_v29 = vadd.f32 %v13040_v26, %v4239_v5  ;;  %v13115_v31 = vld [vmem:[#allocation3 + $0x91] sm:$0xff] }
 0x47c   : > { %4485 = vst.msk [vmem:[#allocation3 + $0xc1] sm:$0xff] %vm4414_vm4, %v4396_v28  ;;  %vm4335_vm7 = vcmp.ge.f32.partialorder %v4245_v2, 0.0  ;;  %v4367_v32 = vmul.f32 0.25, %v4245_v2  ;;  %10198 = vmatprep.mubr.msk.f32.mxu1 %vm4414_vm4, %v13115_v31 }
 0x47d   : > { %vm4334_vm8 = vcmp.ge.f32.partialorder %v4240_v29, 0.0  ;;  %v4366_v1 = vmul.f32 0.25, %v4240_v29  ;;  %v10145_v34 = vpop.f32.mrb[2].mxu1  ;;  %10199 = vmatmul.mubr.msk.f32.gmra.mrb[28].mxu1 %vm4414_vm4, %v13120_v33 }
 0x47e   : > { %v4399_v25 = vsel %vm4335_vm7, %v4245_v2, %v4367_v32  ;;  %v4255_v7 = vadd.f32 %v10145_v34, %v13040_v26  ;;  %v4249_v8 = vpop.f32.mrb[3].mxu1  ;;  %v13132_v14 = vld [vmem:[#allocation3 + $0xb1] sm:$0xff] }
 0x47f   : > { %4488 = vst.msk [vmem:[#allocation3 + $0xe1] sm:$0xff] %vm4414_vm4, %v4399_v25  ;;  %v4398_v9 = vsel %vm4334_vm8, %v4240_v29, %v4366_v1  ;;  %v4250_v10 = vadd.f32 %v13040_v26, %v4249_v8  ;;  %v13127_v11 = vld [vmem:[#allocation3 + $0xa9] sm:$0xff] }
 0x480   : > { %4487 = vst.msk [vmem:[#allocation3 + $0xd9] sm:$0xff] %vm4414_vm4, %v4398_v9  ;;  %vm4337_vm9 = vcmp.ge.f32.partialorder %v4255_v7, 0.0  ;;  %v4369_v12 = vmul.f32 0.25, %v4255_v7  ;;  %10201 = vmatprep.mubr.msk.f32.mxu1 %vm4414_vm4, %v13127_v11 }
 0x481   : > { %vm4336_vm10 = vcmp.ge.f32.partialorder %v4250_v10, 0.0  ;;  %v4368_v16 = vmul.f32 0.25, %v4250_v10  ;;  %v10148_v17 = vpop.f32.mrb[4].mxu1  ;;  %10202 = vmatmul.mubr.msk.f32.gmra.mrb[30].mxu1 %vm4414_vm4, %v13132_v14 }
 0x482   : > { %v4401_v18 = vsel %vm4337_vm9, %v4255_v7, %v4369_v12  ;;  %v4265_v19 = vadd.f32 %v10148_v17, %v13040_v26  ;;  %v4259_v35 = vpop.f32.mrb[5].mxu1  ;;  %v13144_v49 = vld [vmem:[#allocation3 + $0xc9] sm:$0xff]  ;;  %vm8120_vm9 = vcmask 97280  }
 0x483   : > { %4490 = vst.msk [vmem:[#allocation3 + $0xf9] sm:$0xff] %vm4414_vm4, %v4401_v18  ;;  %v4400_v41 = vsel %vm4336_vm10, %v4250_v10, %v4368_v16  ;;  %v4260_v44 = vadd.f32 %v13040_v26, %v4259_v35  ;;  %v13139_v46 = vld [vmem:[#allocation3 + $0xc1] sm:$0xff] }
 0x484   : > { %4489 = vst.msk [vmem:[#allocation3 + $0xf1] sm:$0xff] %vm4414_vm4, %v4400_v41  ;;  %vm4339_vm11 = vcmp.ge.f32.partialorder %v4265_v19, 0.0  ;;  %v4371_v48 = vmul.f32 0.25, %v4265_v19  ;;  %10204 = vmatprep.mubr.msk.f32.mxu1 %vm4414_vm4, %v13139_v46 }
 0x485   : > { %vm4338_vm12 = vcmp.ge.f32.partialorder %v4260_v44, 0.0  ;;  %v4370_v30 = vmul.f32 0.25, %v4260_v44  ;;  %v10151_v50 = vpop.f32.mrb[6].mxu1  ;;  %10205 = vmatmul.mubr.msk.f32.gmra.mrb[32].mxu1 %vm4414_vm4, %v13144_v49 }
 0x486   : > { %v4403_v51 = vsel %vm4339_vm11, %v4265_v19, %v4371_v48  ;;  %v4275_v52 = vadd.f32 %v10151_v50, %v13040_v26  ;;  %v4269_v53 = vpop.f32.mrb[7].mxu1  ;;  %v13156_v60 = vld [vmem:[#allocation3 + $0xe1] sm:$0xff] }
 0x487   : > { %4492 = vst.msk [vmem:[#allocation3 + $0x111] sm:$0xff] %vm4414_vm4, %v4403_v51  ;;  %v4402_v55 = vsel %vm4338_vm12, %v4260_v44, %v4370_v30  ;;  %v4270_v57 = vadd.f32 %v13040_v26, %v4269_v53  ;;  %v13151_v58 = vld [vmem:[#allocation3 + $0xd9] sm:$0xff] }
 0x488   : > { %4491 = vst.msk [vmem:[#allocation3 + $0x109] sm:$0xff] %vm4414_vm4, %v4402_v55  ;;  %vm4341_vm13 = vcmp.ge.f32.partialorder %v4275_v52, 0.0  ;;  %v4373_v59 = vmul.f32 0.25, %v4275_v52  ;;  %10207 = vmatprep.mubr.msk.f32.mxu1 %vm4414_vm4, %v13151_v58 }
 0x489   : > { %vm4340_vm14 = vcmp.ge.f32.partialorder %v4270_v57, 0.0  ;;  %v4372_v61 = vmul.f32 0.25, %v4270_v57  ;;  %v10154_v20 = vpop.f32.mrb[8].mxu1  ;;  %10208 = vmatmul.mubr.msk.f32.gmra.mrb[34].mxu1 %vm4414_vm4, %v13156_v60 }
 0x48a   : > { %v4405_v21 = vsel %vm4341_vm13, %v4275_v52, %v4373_v59  ;;  %v4285_v23 = vadd.f32 %v10154_v20, %v13040_v26  ;;  %v4279_v62 = vpop.f32.mrb[9].mxu1  ;;  %v13168_v38 = vld [vmem:[#allocation3 + $0xf9] sm:$0xff] }
 0x48b   : > { %4494 = vst.msk [vmem:[#allocation3 + $0x129] sm:$0xff] %vm4414_vm4, %v4405_v21  ;;  %v4404_v63 = vsel %vm4340_vm14, %v4270_v57, %v4372_v61  ;;  %v4280_v27 = vadd.f32 %v13040_v26, %v4279_v62  ;;  %v13163_v36 = vld [vmem:[#allocation3 + $0xf1] sm:$0xff]  ;;  %v4503_v20 = vld [vmem:[#allocation3] sm:$0xff]  ;;  %v8683_v62 = vld [vmem:[%s14108_s5 + $0x98] sm:$0xff] }
 0x48c   : > { %4493 = vst.msk [vmem:[#allocation3 + $0x121] sm:$0xff] %vm4414_vm4, %v4404_v63  ;;  %vm4343_vm15 = vcmp.ge.f32.partialorder %v4285_v23, 0.0  ;;  %v4375_v37 = vmul.f32 0.25, %v4285_v23  ;;  %10210 = vmatprep.mubr.msk.f32.mxu1 %vm4414_vm4, %v13163_v36  ;;  %v4504_v63 = vld [vmem:[#allocation3 + $0x8] sm:$0xff] }
 0x48d   : > { %vm4342_vm0 = vcmp.ge.f32.partialorder %v4280_v27, 0.0  ;;  %v4374_v39 = vmul.f32 0.25, %v4280_v27  ;;  %v10157_v3 = vpop.f32.mrb[10].mxu1  ;;  %10211 = vmatmul.mubr.msk.f32.gmra.mrb[36].mxu1 %vm4414_vm4, %v13168_v38 }
 0x48e   : > { %v4407_v40 = vsel %vm4343_vm15, %v4285_v23, %v4375_v37  ;;  %v4295_v42 = vadd.f32 %v10157_v3, %v13040_v26  ;;  %v4289_v6 = vpop.f32.mrb[11].mxu1  ;;  %v13180_v32 = vld [vmem:[#allocation3 + $0x111] sm:$0xff]  ;;  %v8682_v23 = vld [vmem:[%s14108_s5 + $0x90] sm:$0xff] }
 0x48f   : > { %4496 = vst.msk [vmem:[#allocation3 + $0x141] sm:$0xff] %vm4414_vm4, %v4407_v40  ;;  %v4406_v2 = vsel %vm4342_vm0, %v4280_v27, %v4374_v39  ;;  %v4290_v5 = vadd.f32 %v13040_v26, %v4289_v6  ;;  %v13175_v28 = vld [vmem:[#allocation3 + $0x109] sm:$0xff]  ;;  %v10784_v27 = vpack.c.bf16 %v8683_v62, %v8682_v23  ;;  %v8685_v39 = vld [vmem:[%s14108_s5 + $0xa8] sm:$0xff]  ;;  %v8686_v6 = vld [vmem:[%s14108_s5 + $0xb0] sm:$0xff] }
 0x490   : > { %4495 = vst.msk [vmem:[#allocation3 + $0x139] sm:$0xff] %vm4414_vm4, %v4406_v2  ;;  %vm4345_vm1 = vcmp.ge.f32.partialorder %v4295_v42, 0.0  ;;  %v4377_v29 = vmul.f32 0.25, %v4295_v42  ;;  %10213 = vmatprep.mubr.msk.f32.mxu1 %vm4414_vm4, %v13175_v28  ;;  %v8684_v37 = vld [vmem:[%s14108_s5 + $0xa0] sm:$0xff]  ;;  %v13240_v3 = vld [vmem:[#allocation3 + $0x18] sm:$0xff]  ;;  %v8687_v2 = vld [vmem:[%s14108_s5 + $0xb8] sm:$0xff] }
 0x491   : > { %vm4344_vm2 = vcmp.ge.f32.partialorder %v4290_v5, 0.0  ;;  %v4376_v1 = vmul.f32 0.25, %v4290_v5  ;;  %v10160_v34 = vpop.f32.mrb[12].mxu1  ;;  %10214 = vmatmul.mubr.msk.f32.gmra.mrb[38].mxu1 %vm4414_vm4, %v13180_v32  ;;  %v10788_v40 = vpack.c.bf16 %v8685_v39, %v8684_v37  ;;  %v13337_v23 = vld [vmem:[#allocation3 + $0x110] sm:$0xff] }
 0x492   : > { %v4409_v25 = vsel %vm4345_vm1, %v4295_v42, %v4377_v29  ;;  %v4305_v7 = vadd.f32 %v10160_v34, %v13040_v26  ;;  %v4299_v8 = vpop.f32.mrb[13].mxu1  ;;  %v13192_v17 = vld [vmem:[#allocation3 + $0x129] sm:$0xff]  ;;  %v13245_v42 = vld [vmem:[#allocation3 + $0x20] sm:$0xff]  ;;  %v13259_v29 = vld [vmem:[#allocation3 + $0x38] sm:$0xff] }
 0x493   : > { %4498 = vst.msk [vmem:[#allocation3 + $0x159] sm:$0xff] %vm4414_vm4, %v4409_v25  ;;  %v4408_v9 = vsel %vm4344_vm2, %v4290_v5, %v4376_v1  ;;  %v4300_v10 = vadd.f32 %v13040_v26, %v4299_v8  ;;  %v13187_v12 = vld [vmem:[#allocation3 + $0x121] sm:$0xff]  ;;  %v13255_v5 = vld [vmem:[#allocation3 + $0x30] sm:$0xff]  ;;  %v8721_v34 = vld [vmem:[%s14108_s5 + $0xc8] sm:$0xff] }
 0x494   : > { %4497 = vst.msk [vmem:[#allocation3 + $0x151] sm:$0xff] %vm4414_vm4, %v4408_v9  ;;  %vm4347_vm3 = vcmp.ge.f32.partialorder %v4305_v7, 0.0  ;;  %v4379_v16 = vmul.f32 0.25, %v4305_v7  ;;  %10216 = vmatprep.mubr.msk.f32.mxu1 %vm4414_vm4, %v13187_v12  ;;  %v8720_v1 = vld [vmem:[%s14108_s5 + $0xc0] sm:$0xff]  ;;  %v13269_v25 = vld [vmem:[#allocation3 + $0x48] sm:$0xff]  ;;  %v13277_v9 = vld [vmem:[#allocation3 + $0x60] sm:$0xff] }
 0x495   : > { %vm4346_vm5 = vcmp.ge.f32.partialorder %v4300_v10, 0.0  ;;  %v4378_v18 = vmul.f32 0.25, %v4300_v10  ;;  %v10163_v19 = vpop.f32.mrb[14].mxu1  ;;  %10217 = vmatmul.mubr.msk.f32.gmra.mrb[40].mxu1 %vm4414_vm4, %v13192_v17  ;;  %v13273_v8 = vld [vmem:[#allocation3 + $0x50] sm:$0xff]  ;;  %v13341_v62 = vld [vmem:[#allocation3 + $0x120] sm:$0xff] }
 0x496   : > { %v4411_v35 = vsel %vm4347_vm3, %v4305_v7, %v4379_v16  ;;  %v4315_v41 = vadd.f32 %v10163_v19, %v13040_v26  ;;  %v4309_v44 = vpop.f32.mrb[15].mxu1  ;;  %v13204_v52 = vld [vmem:[#allocation3 + $0x141] sm:$0xff]  ;;  %v10796_v7 = vpack.c.bf16 %v8721_v34, %v8720_v1  ;;  %v13285_v16 = vld [vmem:[#allocation3 + $0x78] sm:$0xff]  ;;  %v13293_v19 = vld [vmem:[#allocation3 + $0x90] sm:$0xff] }
 0x497   : > { %4500 = vst.msk [vmem:[#allocation3 + $0x171] sm:$0xff] %vm4414_vm4, %v4411_v35  ;;  %v4410_v48 = vsel %vm4346_vm5, %v4300_v10, %v4378_v18  ;;  %v4310_v30 = vadd.f32 %v13040_v26, %v4309_v44  ;;  %v13199_v50 = vld [vmem:[#allocation3 + $0x139] sm:$0xff]  ;;  %14329 = vst [vmem:[#allocation20_spill] sm:$0xff] %v13204_v52  ;;  %v13281_v10 = vld [vmem:[#allocation3 + $0x68] sm:$0xff] }
 0x498   : > { %14328 = vst [vmem:[#allocation19_spill] sm:$0xff] %v13199_v50  ;;  %4499 = vst.msk [vmem:[#allocation3 + $0x169] sm:$0xff] %vm4414_vm4, %v4410_v48  ;;  %vm4349_vm6 = vcmp.ge.f32.partialorder %v4315_v41, 0.0  ;;  %v4381_v51 = vmul.f32 0.25, %v4315_v41  ;;  %10219 = vmatprep.mubr.msk.f32.mxu1 %vm4414_vm4, %v13199_v50  ;;  %v13289_v18 = vld [vmem:[#allocation3 + $0x80] sm:$0xff]  ;;  %v13297_v35 = vld [vmem:[#allocation3 + $0x98] sm:$0xff] }
 0x499   : > { %vm4348_vm7 = vcmp.ge.f32.partialorder %v4310_v30, 0.0  ;;  %v4380_v53 = vmul.f32 0.25, %v4310_v30  ;;  %10220 = vmatmul.mubr.msk.f32.gmra.mrb[42].mxu1 %vm4414_vm4, %v13204_v52  ;;  %v13305_v44 = vld [vmem:[#allocation3 + $0xb0] sm:$0xff]  ;;  %v13309_v48 = vld [vmem:[#allocation3 + $0xc0] sm:$0xff]  ;;  %v8723_v34 = vld [vmem:[%s14108_s5 + $0xd8] sm:$0xff] }
 0x49a   : > { %v4413_v55 = vsel %vm4349_vm6, %v4315_v41, %v4381_v51  ;;  %v13214_v59 = vld [vmem:[#allocation3 + $0x159] sm:$0xff]  ;;  %v13301_v41 = vld [vmem:[#allocation3 + $0xa8] sm:$0xff] }
 0x49b   : > { %4502 = vst.msk [vmem:[#allocation3 + $0x189] sm:$0xff] %vm4414_vm4, %v4413_v55  ;;  %v4412_v26 = vsel %vm4348_vm7, %v4310_v30, %v4380_v53  ;;  %v13209_v57 = vld [vmem:[#allocation3 + $0x151] sm:$0xff]  ;;  %14331 = vst [vmem:[#allocation37_spill] sm:$0xff] %v13214_v59  ;;  %v13313_v30 = vld [vmem:[#allocation3 + $0xc8] sm:$0xff] }
 0x49c   : > { %14330 = vst [vmem:[#allocation34_spill] sm:$0xff] %v13209_v57  ;;  %4501 = vst.msk [vmem:[#allocation3 + $0x181] sm:$0xff] %vm4414_vm4, %v4412_v26  ;;  %10222 = vmatprep.mubr.msk.f32.mxu1 %vm4414_vm4, %v13209_v57  ;;  %v13317_v51 = vld [vmem:[#allocation3 + $0xd8] sm:$0xff]  ;;  %v13321_v53 = vld [vmem:[#allocation3 + $0xe0] sm:$0xff] }
 0x49d   : > { %10223 = vmatmul.mubr.msk.f32.gmra.mrb[44].mxu1 %vm4414_vm4, %v13214_v59  ;;  %v13325_v55 = vld [vmem:[#allocation3 + $0xf0] sm:$0xff]  ;;  %v13329_v26 = vld [vmem:[#allocation3 + $0xf8] sm:$0xff]  ;;  %v13353_v37 = vld [vmem:[#allocation3 + $0x140] sm:$0xff] }
 0x49e   : > { %v13222_v21 = vld [vmem:[#allocation3 + $0x171] sm:$0xff]  ;;  %v8722_v1 = vld [vmem:[%s14108_s5 + $0xd0] sm:$0xff] }
 0x49f   : > { %v13218_v61 = vld [vmem:[#allocation3 + $0x169] sm:$0xff]  ;;  %14333 = vst [vmem:[#allocation39_spill] sm:$0xff] %v13222_v21  ;;  %v8725_v57 = vld [vmem:[%s14108_s5 + $0xe8] sm:$0xff] }
 0x4a0   : > { %14332 = vst [vmem:[#allocation38_spill] sm:$0xff] %v13218_v61  ;;  %10225 = vmatprep.mubr.msk.f32.mxu1 %vm4414_vm4, %v13218_v61  ;;  %v13357_v39 = vld [vmem:[#allocation3 + $0x150] sm:$0xff]  ;;  %v10800_v61 = vpack.c.bf16 %v8723_v34, %v8722_v1  ;;  %v13387_v52 = vld [vmem:[#allocation3 + $0x1a] sm:$0xff]  ;;  %v13391_v50 = vld [vmem:[#allocation3 + $0x22] sm:$0xff] }
 0x4a1   : > { %10226 = vmatmul.mubr.msk.f32.gmra.mrb[46].mxu1 %vm4414_vm4, %v13222_v21  ;;  %v5227_v21 = vld [vmem:[#allocation3 + $0xa] sm:$0xff]  ;;  %14334 = vst [vmem:[#allocation41_spill] sm:$0xff] %v13387_v52  ;;  %14335 = vst [vmem:[#allocation43_spill] sm:$0xff] %v13391_v50  ;;  %v8726_v1 = vld [vmem:[%s14108_s5 + $0xf0] sm:$0xff] }
 0x4a2   : > { %10244 = vmatprep.mubr.msk.f32.mxu1 %vm4414_vm4, %v4503_v20  ;;  %v13333_v20 = vld [vmem:[#allocation3 + $0x108] sm:$0xff]  ;;  %v8724_v59 = vld [vmem:[%s14108_s5 + $0xe0] sm:$0xff] }
 0x4a3   : > { %v8727_v34 = vld [vmem:[%s14108_s5 + $0xf8] sm:$0xff] }
 0x4a5   : > { %10245 = vmatmul.mubr.msk.f32.vlgmr.msra.gmra.mrb[16].mxu1 %vm4414_vm4, %v4504_v63  ;;  %v13345_v63 = vld [vmem:[#allocation3 + $0x128] sm:$0xff] }
 0x4a6   : > { %10783 = vmatpush3.bf16.msra.mxu1 %v13037_v0  ;;  %10247 = vmatprep.mubr.msk.f32.mxu1 %vm4414_vm4, %v13240_v3  ;;  %v10792_v0 = vpack.c.bf16 %v8687_v2, %v8686_v6  ;;  %v13365_v6 = vld [vmem:[#allocation3 + $0x168] sm:$0xff] }
 0x4a7   : > { %10785 = vmatprep.subr.bf16.mxu1 %v10784_v27  ;;  %v5226_v2 = vld [vmem:[#allocation3 + $0x2] sm:$0xff] }
 0x4a9   : > { %10248 = vmatmul.mubr.msk.f32.gmra.mrb[18].mxu1 %vm4414_vm4, %v13245_v42 }
 0x4aa   : > { %10250 = vmatprep.mubr.msk.f32.mxu1 %vm4414_vm4, %v13255_v5  ;;  %10787 = vmatpush3.bf16.msra.mxu1 %v10784_v27  ;;  %v13349_v27 = vld [vmem:[#allocation3 + $0x138] sm:$0xff] }
 0x4ab   : > { %10789 = vmatprep.subr.bf16.mxu1 %v10788_v40 }
 0x4ad   : > { %10251 = vmatmul.mubr.msk.f32.gmra.mrb[20].mxu1 %vm4414_vm4, %v13259_v29 }
 0x4ae   : > { %10253 = vmatprep.mubr.msk.f32.mxu1 %vm4414_vm4, %v13269_v25  ;;  %10791 = vmatpush3.bf16.msra.mxu1 %v10788_v40  ;;  %v13361_v40 = vld [vmem:[#allocation3 + $0x158] sm:$0xff] }
 0x4af   : > { %10793 = vmatprep.subr.bf16.mxu1 %v10792_v0 }
 0x4b1   : > { %10254 = vmatmul.mubr.msk.f32.gmra.mrb[22].mxu1 %vm4414_vm4, %v13273_v8 }
 0x4b2   : > { %10256 = vmatprep.mubr.msk.f32.mxu1 %vm4414_vm4, %v13277_v9  ;;  %10795 = vmatpush3.bf16.msra.mxu1 %v10792_v0  ;;  %v13369_v0 = vld [vmem:[#allocation3 + $0x170] sm:$0xff] }
 0x4b3   : > { %10797 = vmatprep.subr.bf16.mxu1 %v10796_v7 }
 0x4b5   : > { %10257 = vmatmul.mubr.msk.f32.gmra.mrb[24].mxu1 %vm4414_vm4, %v13281_v10 }
 0x4b6   : > { %10259 = vmatprep.mubr.msk.f32.mxu1 %vm4414_vm4, %v13285_v16 }
 0x4b9   : > { %10260 = vmatmul.mubr.msk.f32.gmra.mrb[26].mxu1 %vm4414_vm4, %v13289_v18 }
 0x4ba   : > { %10262 = vmatprep.mubr.msk.f32.mxu1 %vm4414_vm4, %v13293_v19 }
 0x4bd   : > { %10263 = vmatmul.mubr.msk.f32.gmra.mrb[28].mxu1 %vm4414_vm4, %v13297_v35 }
 0x4be   : > { %10265 = vmatprep.mubr.msk.f32.mxu1 %vm4414_vm4, %v13301_v41 }
 0x4c1   : > { %10266 = vmatmul.mubr.msk.f32.gmra.mrb[30].mxu1 %vm4414_vm4, %v13305_v44 }
 0x4c2   : > { %10268 = vmatprep.mubr.msk.f32.mxu1 %vm4414_vm4, %v13309_v48 }
 0x4c5   : > { %10269 = vmatmul.mubr.msk.f32.gmra.mrb[32].mxu1 %vm4414_vm4, %v13313_v30 }
 0x4c6   : > { %10271 = vmatprep.mubr.msk.f32.mxu1 %vm4414_vm4, %v13317_v51 }
 0x4c9   : > { %10272 = vmatmul.mubr.msk.f32.gmra.mrb[34].mxu1 %vm4414_vm4, %v13321_v53 }
 0x4ca   : > { %10274 = vmatprep.mubr.msk.f32.mxu1 %vm4414_vm4, %v13325_v55 }
 0x4cd   : > { %10275 = vmatmul.mubr.msk.f32.gmra.mrb[36].mxu1 %vm4414_vm4, %v13329_v26 }
 0x4ce   : > { %10277 = vmatprep.mubr.msk.f32.mxu1 %vm4414_vm4, %v13333_v20 }
 0x4d1   : > { %10278 = vmatmul.mubr.msk.f32.gmra.mrb[38].mxu1 %vm4414_vm4, %v13337_v23 }
 0x4d2   : > { %10280 = vmatprep.mubr.msk.f32.mxu1 %vm4414_vm4, %v13341_v62 }
 0x4d5   : > { %10281 = vmatmul.mubr.msk.f32.gmra.mrb[40].mxu1 %vm4414_vm4, %v13345_v63 }
 0x4d6   : > { %10283 = vmatprep.mubr.msk.f32.mxu1 %vm4414_vm4, %v13349_v27 }
 0x4d9   : > { %10284 = vmatmul.mubr.msk.f32.gmra.mrb[42].mxu1 %vm4414_vm4, %v13353_v37 }
 0x4da   : > { %10286 = vmatprep.mubr.msk.f32.mxu1 %vm4414_vm4, %v13357_v39 }
 0x4dd   : > { %10287 = vmatmul.mubr.msk.f32.gmra.mrb[44].mxu1 %vm4414_vm4, %v13361_v40 }
 0x4de   : > { %10289 = vmatprep.mubr.msk.f32.mxu1 %vm4414_vm4, %v13365_v6 }
 0x4e1   : > { %10290 = vmatmul.mubr.msk.f32.gmra.mrb[46].mxu1 %vm4414_vm4, %v13369_v0 }
 0x4e2   : > { %10308 = vmatprep.mubr.msk.f32.mxu1 %vm4414_vm4, %v5226_v2  ;;  %v10804_v2 = vpack.c.bf16 %v8725_v57, %v8724_v59  ;;  %v10808_v57 = vpack.c.bf16 %v8727_v34, %v8726_v1  ;;  %v13405_v59 = vld [vmem:[#allocation3 + $0x3a] sm:$0xff]  ;;  %v13419_v1 = vld [vmem:[#allocation3 + $0x52] sm:$0xff]  ;;  %v13423_v34 = vld [vmem:[#allocation3 + $0x62] sm:$0xff] }
 0x4e3   : > { %14336 = vst [vmem:[#allocation15_spill] sm:$0xff] %v13405_v59  ;;  %14337 = vst [vmem:[#allocation16_spill] sm:$0xff] %v13423_v34 }
 0x4e5   : > { %10309 = vmatmul.mubr.msk.f32.vlgmr.msra.gmra.mrb[16].mxu1 %vm4414_vm4, %v5227_v21  ;;  %v13401_v21 = vld [vmem:[#allocation3 + $0x32] sm:$0xff] }
 0x4e6   : > { %10799 = vmatpush3.bf16.msra.mxu1 %v10796_v7  ;;  %10311 = vmatprep.mubr.msk.f32.mxu1 %vm4414_vm4, %v13387_v52  ;;  %v8760_v7 = vld [vmem:[%s14108_s5 + $0x100] sm:$0xff]  ;;  %v8761_v52 = vld [vmem:[%s14108_s5 + $0x108] sm:$0xff] }
 0x4e7   : > { %10801 = vmatprep.subr.bf16.mxu1 %v10800_v61 }
 0x4e9   : > { %10312 = vmatmul.mubr.msk.f32.gmra.mrb[18].mxu1 %vm4414_vm4, %v13391_v50  ;;  %v13415_v50 = vld [vmem:[#allocation3 + $0x4a] sm:$0xff] }
 0x4ea   : > { %10314 = vmatprep.mubr.msk.f32.mxu1 %vm4414_vm4, %v13401_v21  ;;  %10803 = vmatpush3.bf16.msra.mxu1 %v10800_v61  ;;  %v10812_v61 = vpack.c.bf16 %v8761_v52, %v8760_v7  ;;  %v13435_v52 = vld [vmem:[#allocation3 + $0x82] sm:$0xff]  ;;  %v13439_v7 = vld [vmem:[#allocation3 + $0x92] sm:$0xff] }
 0x4eb   : > { %10805 = vmatprep.subr.bf16.mxu1 %v10804_v2  ;;  %14340 = vst [vmem:[#allocation45_spill] sm:$0xff] %v13435_v52  ;;  %14341 = vst [vmem:[#allocation46_spill] sm:$0xff] %v13439_v7 }
 0x4ed   : > { %10315 = vmatmul.mubr.msk.f32.gmra.mrb[20].mxu1 %vm4414_vm4, %v13405_v59  ;;  %v13427_v59 = vld [vmem:[#allocation3 + $0x6a] sm:$0xff] }
 0x4ee   : > { %10317 = vmatprep.mubr.msk.f32.mxu1 %vm4414_vm4, %v13415_v50  ;;  %10807 = vmatpush3.bf16.msra.mxu1 %v10804_v2  ;;  %14338 = vst [vmem:[#allocation17_spill] sm:$0xff] %v13427_v59  ;;  %v13431_v2 = vld [vmem:[#allocation3 + $0x7a] sm:$0xff] }
 0x4ef   : > { %10809 = vmatprep.subr.bf16.mxu1 %v10808_v57  ;;  %14339 = vst [vmem:[#allocation18_spill] sm:$0xff] %v13431_v2 }
 0x4f1   : > { %10318 = vmatmul.mubr.msk.f32.gmra.mrb[22].mxu1 %vm4414_vm4, %v13419_v1 }
 0x4f2   : > { %10320 = vmatprep.mubr.msk.f32.mxu1 %vm4414_vm4, %v13423_v34  ;;  %10811 = vmatpush3.bf16.msra.mxu1 %v10808_v57  ;;  %v13443_v57 = vld [vmem:[#allocation3 + $0x9a] sm:$0xff] }
 0x4f3   : > { %10813 = vmatprep.subr.bf16.mxu1 %v10812_v61  ;;  %14342 = vst [vmem:[#allocation21_spill] sm:$0xff] %v13443_v57  ;;  %v8765_v34 = vld [vmem:[%s14108_s5 + $0x128] sm:$0xff] }
 0x4f5   : > { %10321 = vmatmul.mubr.msk.f32.gmra.mrb[24].mxu1 %vm4414_vm4, %v13427_v59  ;;  %v13447_v59 = vld [vmem:[#allocation3 + $0xaa] sm:$0xff] }
 0x4f6   : > { %10323 = vmatprep.mubr.msk.f32.mxu1 %vm4414_vm4, %v13431_v2  ;;  %14343 = vst [vmem:[#allocation22_spill] sm:$0xff] %v13447_v59  ;;  %v13451_v2 = vld [vmem:[#allocation3 + $0xb2] sm:$0xff] }
 0x4f7   : > { %14344 = vst [vmem:[#allocation23_spill] sm:$0xff] %v13451_v2 }
 0x4f9   : > { %10324 = vmatmul.mubr.msk.f32.gmra.mrb[26].mxu1 %vm4414_vm4, %v13435_v52  ;;  %v13455_v52 = vld [vmem:[#allocation3 + $0xc2] sm:$0xff] }
 0x4fa   : > { %10326 = vmatprep.mubr.msk.f32.mxu1 %vm4414_vm4, %v13439_v7  ;;  %14345 = vst [vmem:[#allocation24_spill] sm:$0xff] %v13455_v52  ;;  %v13459_v7 = vld [vmem:[#allocation3 + $0xca] sm:$0xff] }
 0x4fb   : > { %14346 = vst [vmem:[#allocation25_spill] sm:$0xff] %v13459_v7 }
 0x4fd   : > { %10327 = vmatmul.mubr.msk.f32.gmra.mrb[28].mxu1 %vm4414_vm4, %v13443_v57  ;;  %v13463_v57 = vld [vmem:[#allocation3 + $0xda] sm:$0xff] }
 0x4fe   : > { %10329 = vmatprep.mubr.msk.f32.mxu1 %vm4414_vm4, %v13447_v59  ;;  %14347 = vst [vmem:[#allocation26_spill] sm:$0xff] %v13463_v57  ;;  %v13467_v59 = vld [vmem:[#allocation3 + $0xe2] sm:$0xff] }
 0x4ff   : > { %14348 = vst [vmem:[#allocation27_spill] sm:$0xff] %v13467_v59 }
 0x501   : > { %10330 = vmatmul.mubr.msk.f32.gmra.mrb[30].mxu1 %vm4414_vm4, %v13451_v2  ;;  %v13471_v2 = vld [vmem:[#allocation3 + $0xf2] sm:$0xff] }
 0x502   : > { %10332 = vmatprep.mubr.msk.f32.mxu1 %vm4414_vm4, %v13455_v52  ;;  %14349 = vst [vmem:[#allocation28_spill] sm:$0xff] %v13471_v2  ;;  %v13475_v52 = vld [vmem:[#allocation3 + $0xfa] sm:$0xff] }
 0x503   : > { %14350 = vst [vmem:[#allocation29_spill] sm:$0xff] %v13475_v52 }
 0x505   : > { %10333 = vmatmul.mubr.msk.f32.gmra.mrb[32].mxu1 %vm4414_vm4, %v13459_v7  ;;  %v13479_v7 = vld [vmem:[#allocation3 + $0x10a] sm:$0xff] }
 0x506   : > { %10335 = vmatprep.mubr.msk.f32.mxu1 %vm4414_vm4, %v13463_v57  ;;  %14351 = vst [vmem:[#allocation30_spill] sm:$0xff] %v13479_v7  ;;  %v13483_v57 = vld [vmem:[#allocation3 + $0x112] sm:$0xff] }
 0x507   : > { %14352 = vst [vmem:[#allocation31_spill] sm:$0xff] %v13483_v57 }
 0x509   : > { %10336 = vmatmul.mubr.msk.f32.gmra.mrb[34].mxu1 %vm4414_vm4, %v13467_v59  ;;  %v13487_v59 = vld [vmem:[#allocation3 + $0x122] sm:$0xff] }
 0x50a   : > { %10338 = vmatprep.mubr.msk.f32.mxu1 %vm4414_vm4, %v13471_v2  ;;  %14353 = vst [vmem:[#allocation32_spill] sm:$0xff] %v13487_v59  ;;  %v13491_v2 = vld [vmem:[#allocation3 + $0x12a] sm:$0xff] }
 0x50b   : > { %14354 = vst [vmem:[#allocation33_spill] sm:$0xff] %v13491_v2 }
 0x50d   : > { %10339 = vmatmul.mubr.msk.f32.gmra.mrb[36].mxu1 %vm4414_vm4, %v13475_v52  ;;  %v13495_v52 = vld [vmem:[#allocation3 + $0x13a] sm:$0xff] }
 0x50e   : > { %10341 = vmatprep.mubr.msk.f32.mxu1 %vm4414_vm4, %v13479_v7  ;;  %14355 = vst [vmem:[#allocation35_spill] sm:$0xff] %v13495_v52  ;;  %v13499_v7 = vld [vmem:[#allocation3 + $0x142] sm:$0xff] }
 0x50f   : > { %14356 = vst [vmem:[#allocation36_spill] sm:$0xff] %v13499_v7 }
 0x511   : > { %10342 = vmatmul.mubr.msk.f32.gmra.mrb[38].mxu1 %vm4414_vm4, %v13483_v57  ;;  %v13503_v57 = vld [vmem:[#allocation3 + $0x152] sm:$0xff] }
 0x512   : > { %10344 = vmatprep.mubr.msk.f32.mxu1 %vm4414_vm4, %v13487_v59  ;;  %14357 = vst [vmem:[#allocation40_spill] sm:$0xff] %v13503_v57  ;;  %v13507_v59 = vld [vmem:[#allocation3 + $0x15a] sm:$0xff] }
 0x513   : > { %14358 = vst [vmem:[#allocation42_spill] sm:$0xff] %v13507_v59 }
 0x515   : > { %10345 = vmatmul.mubr.msk.f32.gmra.mrb[40].mxu1 %vm4414_vm4, %v13491_v2  ;;  %v13511_v2 = vld [vmem:[#allocation3 + $0x16a] sm:$0xff] }
 0x516   : > { %10347 = vmatprep.mubr.msk.f32.mxu1 %vm4414_vm4, %v13495_v52  ;;  %14359 = vst [vmem:[#allocation44_spill] sm:$0xff] %v13511_v2  ;;  %v13515_v52 = vld [vmem:[#allocation3 + $0x172] sm:$0xff] }
 0x517   : > { %14360 = vst [vmem:[#allocation47_spill] sm:$0xff] %v13515_v52 }
 0x519   : > { %10348 = vmatmul.mubr.msk.f32.gmra.mrb[42].mxu1 %vm4414_vm4, %v13499_v7  ;;  %v8762_v7 = vld [vmem:[%s14108_s5 + $0x110] sm:$0xff] }
 0x51a   : > { %10350 = vmatprep.mubr.msk.f32.mxu1 %vm4414_vm4, %v13503_v57  ;;  %v8763_v57 = vld [vmem:[%s14108_s5 + $0x118] sm:$0xff] }
 0x51d   : > { %10351 = vmatmul.mubr.msk.f32.gmra.mrb[44].mxu1 %vm4414_vm4, %v13507_v59  ;;  %v10816_v59 = vpack.c.bf16 %v8763_v57, %v8762_v7  ;;  %v8767_v7 = vld [vmem:[%s14108_s5 + $0x138] sm:$0xff]  ;;  %v8802_v57 = vld [vmem:[%s14108_s5 + $0x150] sm:$0xff] }
 0x51e   : > { %10353 = vmatprep.mubr.msk.f32.mxu1 %vm4414_vm4, %v13511_v2  ;;  %v8764_v2 = vld [vmem:[%s14108_s5 + $0x120] sm:$0xff] }
 0x521   : > { %10354 = vmatmul.mubr.msk.f32.gmra.mrb[46].mxu1 %vm4414_vm4, %v13515_v52  ;;  %v10820_v52 = vpack.c.bf16 %v8765_v34, %v8764_v2  ;;  %v8801_v34 = vld [vmem:[%s14108_s5 + $0x148] sm:$0xff] }
 0x522   : > { %10372 = vmatprep.mubr.msk.f32.mxu1 %vm4414_vm4, %v13240_v3  ;;  %v8766_v3 = vld [vmem:[%s14108_s5 + $0x130] sm:$0xff] }
 0x525   : > { %10373 = vmatmul.mubr.msk.f32.vlgmr.msra.gmra.mrb[16].mxu1 %vm4414_vm4, %v13245_v42  ;;  %v10824_v42 = vpack.c.bf16 %v8767_v7, %v8766_v3  ;;  %v8803_v3 = vld [vmem:[%s14108_s5 + $0x158] sm:$0xff] }
 0x526   : > { %10815 = vmatpush3.bf16.msra.mxu1 %v10812_v61  ;;  %10375 = vmatprep.mubr.msk.f32.mxu1 %vm4414_vm4, %v13255_v5  ;;  %v8800_v61 = vld [vmem:[%s14108_s5 + $0x140] sm:$0xff]  ;;  %v10832_v7 = vpack.c.bf16 %v8803_v3, %v8802_v57  ;;  %v8807_v57 = vld [vmem:[%s14108_s5 + $0x178] sm:$0xff] }
 0x527   : > { %10817 = vmatprep.subr.bf16.mxu1 %v10816_v59  ;;  %v10828_v2 = vpack.c.bf16 %v8801_v34, %v8800_v61  ;;  %v8805_v61 = vld [vmem:[%s14108_s5 + $0x168] sm:$0xff]  ;;  %v8880_v3 = vld [vmem:[%s14108_s5 + $0x1c0] sm:$0xff] }
 0x529   : > { %10376 = vmatmul.mubr.msk.f32.gmra.mrb[18].mxu1 %vm4414_vm4, %v13259_v29 }
 0x52a   : > { %10378 = vmatprep.mubr.msk.f32.mxu1 %vm4414_vm4, %v13269_v25  ;;  %10819 = vmatpush3.bf16.msra.mxu1 %v10816_v59  ;;  %v13603_v59 = vld [vmem:[#allocation3 + $0x180] sm:$0xff] }
 0x52b   : > { %10821 = vmatprep.subr.bf16.mxu1 %v10820_v52 }
 0x52d   : > { %10379 = vmatmul.mubr.msk.f32.gmra.mrb[20].mxu1 %vm4414_vm4, %v13273_v8 }
 0x52e   : > { %10381 = vmatprep.mubr.msk.f32.mxu1 %vm4414_vm4, %v13277_v9  ;;  %10823 = vmatpush3.bf16.msra.mxu1 %v10820_v52  ;;  %v13607_v52 = vld [vmem:[#allocation3 + $0x188] sm:$0xff] }
 0x52f   : > { %10825 = vmatprep.subr.bf16.mxu1 %v10824_v42 }
 0x531   : > { %10382 = vmatmul.mubr.msk.f32.gmra.mrb[22].mxu1 %vm4414_vm4, %v13281_v10 }
 0x532   : > { %10384 = vmatprep.mubr.msk.f32.mxu1 %vm4414_vm4, %v13285_v16  ;;  %10827 = vmatpush3.bf16.msra.mxu1 %v10824_v42  ;;  %v8804_v42 = vld [vmem:[%s14108_s5 + $0x160] sm:$0xff] }
 0x533   : > { %10829 = vmatprep.subr.bf16.mxu1 %v10828_v2  ;;  %v10836_v34 = vpack.c.bf16 %v8805_v61, %v8804_v42  ;;  %v14370_v42 = vld [vmem:[#allocation16_spill] sm:$0xff] }
 0x535   : > { %10385 = vmatmul.mubr.msk.f32.gmra.mrb[24].mxu1 %vm4414_vm4, %v13289_v18 }
 0x536   : > { %10387 = vmatprep.mubr.msk.f32.mxu1 %vm4414_vm4, %v13293_v19 }
 0x539   : > { %10388 = vmatmul.mubr.msk.f32.gmra.mrb[26].mxu1 %vm4414_vm4, %v13297_v35 }
 0x53a   : > { %10390 = vmatprep.mubr.msk.f32.mxu1 %vm4414_vm4, %v13301_v41 }
 0x53d   : > { %10391 = vmatmul.mubr.msk.f32.gmra.mrb[28].mxu1 %vm4414_vm4, %v13305_v44 }
 0x53e   : > { %10393 = vmatprep.mubr.msk.f32.mxu1 %vm4414_vm4, %v13309_v48 }
 0x541   : > { %10394 = vmatmul.mubr.msk.f32.gmra.mrb[30].mxu1 %vm4414_vm4, %v13313_v30 }
 0x542   : > { %10396 = vmatprep.mubr.msk.f32.mxu1 %vm4414_vm4, %v13317_v51 }
 0x545   : > { %10397 = vmatmul.mubr.msk.f32.gmra.mrb[32].mxu1 %vm4414_vm4, %v13321_v53 }
 0x546   : > { %10399 = vmatprep.mubr.msk.f32.mxu1 %vm4414_vm4, %v13325_v55 }
 0x549   : > { %10400 = vmatmul.mubr.msk.f32.gmra.mrb[34].mxu1 %vm4414_vm4, %v13329_v26 }
 0x54a   : > { %10402 = vmatprep.mubr.msk.f32.mxu1 %vm4414_vm4, %v13333_v20 }
 0x54d   : > { %10403 = vmatmul.mubr.msk.f32.gmra.mrb[36].mxu1 %vm4414_vm4, %v13337_v23 }
 0x54e   : > { %10405 = vmatprep.mubr.msk.f32.mxu1 %vm4414_vm4, %v13341_v62 }
 0x551   : > { %10406 = vmatmul.mubr.msk.f32.gmra.mrb[38].mxu1 %vm4414_vm4, %v13345_v63 }
 0x552   : > { %10408 = vmatprep.mubr.msk.f32.mxu1 %vm4414_vm4, %v13349_v27 }
 0x555   : > { %10409 = vmatmul.mubr.msk.f32.gmra.mrb[40].mxu1 %vm4414_vm4, %v13353_v37 }
 0x556   : > { %10411 = vmatprep.mubr.msk.f32.mxu1 %vm4414_vm4, %v13357_v39 }
 0x559   : > { %10412 = vmatmul.mubr.msk.f32.gmra.mrb[42].mxu1 %vm4414_vm4, %v13361_v40 }
 0x55a   : > { %10414 = vmatprep.mubr.msk.f32.mxu1 %vm4414_vm4, %v13365_v6 }
 0x55d   : > { %10415 = vmatmul.mubr.msk.f32.gmra.mrb[44].mxu1 %vm4414_vm4, %v13369_v0 }
 0x55e   : > { %10417 = vmatprep.mubr.msk.f32.mxu1 %vm4414_vm4, %v13603_v59 }
 0x561   : > { %10418 = vmatmul.mubr.msk.f32.gmra.mrb[46].mxu1 %vm4414_vm4, %v13607_v52 }
 0x562   : > { %10436 = vmatprep.mubr.msk.f32.mxu1 %vm4414_vm4, %v13055_v13  ;;  %v8806_v13 = vld [vmem:[%s14108_s5 + $0x170] sm:$0xff] }
 0x565   : > { %10437 = vmatmul.mubr.msk.f32.vlgmr.msra.gmra.mrb[16].mxu1 %vm4414_vm4, %v13060_v15  ;;  %v10840_v15 = vpack.c.bf16 %v8807_v57, %v8806_v13  ;;  %v14372_v13 = vld [vmem:[#allocation18_spill] sm:$0xff]  ;;  %v14373_v57 = vld [vmem:[#allocation45_spill] sm:$0xff] }
 0x566   : > { %10831 = vmatpush3.bf16.msra.mxu1 %v10828_v2  ;;  %10439 = vmatprep.mubr.msk.f32.mxu1 %vm4414_vm4, %v13067_v45  ;;  %v8840_v45 = vld [vmem:[%s14108_s5 + $0x180] sm:$0xff]  ;;  %v8841_v2 = vld [vmem:[%s14108_s5 + $0x188] sm:$0xff] }
 0x567   : > { %10833 = vmatprep.subr.bf16.mxu1 %v10832_v7 }
 0x569   : > { %10440 = vmatmul.mubr.msk.f32.gmra.mrb[18].mxu1 %vm4414_vm4, %v13072_v47  ;;  %v10844_v47 = vpack.c.bf16 %v8841_v2, %v8840_v45  ;;  %v14375_v45 = vld [vmem:[#allocation21_spill] sm:$0xff]  ;;  %v14376_v2 = vld [vmem:[#allocation22_spill] sm:$0xff] }
 0x56a   : > { %10442 = vmatprep.mubr.msk.f32.mxu1 %vm4414_vm4, %v13079_v54  ;;  %10835 = vmatpush3.bf16.msra.mxu1 %v10832_v7  ;;  %v14361_v54 = vld [vmem:[#allocation19_spill] sm:$0xff] }
 0x56b   : > { %10837 = vmatprep.subr.bf16.mxu1 %v10836_v34  ;;  %v8881_v7 = vld [vmem:[%s14108_s5 + $0x1c8] sm:$0xff] }
 0x56c   : > { %v10860_v61 = vpack.c.bf16 %v8881_v7, %v8880_v3  ;;  %v13791_v3 = vld [vmem:[#allocation3 + $0x18a] sm:$0xff]  ;;  %v8882_v7 = vld [vmem:[%s14108_s5 + $0x1d0] sm:$0xff] }
 0x56d   : > { %10443 = vmatmul.mubr.msk.f32.gmra.mrb[20].mxu1 %vm4414_vm4, %v13084_v56  ;;  %v14362_v56 = vld [vmem:[#allocation20_spill] sm:$0xff] }
 0x56e   : > { %10445 = vmatprep.mubr.msk.f32.mxu1 %vm4414_vm4, %v13091_v22  ;;  %10839 = vmatpush3.bf16.msra.mxu1 %v10836_v34  ;;  %v14363_v22 = vld [vmem:[#allocation34_spill] sm:$0xff]  ;;  %v14371_v34 = vld [vmem:[#allocation17_spill] sm:$0xff]  ;;  %14395 = vst [vmem:[#allocation20_spill] sm:$0xff] %v13791_v3 }
 0x56f   : > { %10841 = vmatprep.subr.bf16.mxu1 %v10840_v15 }
 0x571   : > { %10446 = vmatmul.mubr.msk.f32.gmra.mrb[22].mxu1 %vm4414_vm4, %v13096_v24  ;;  %v14364_v24 = vld [vmem:[#allocation37_spill] sm:$0xff] }
 0x572   : > { %10448 = vmatprep.mubr.msk.f32.mxu1 %vm4414_vm4, %v13103_v43  ;;  %10843 = vmatpush3.bf16.msra.mxu1 %v10840_v15  ;;  %v14365_v43 = vld [vmem:[#allocation38_spill] sm:$0xff] }
 0x573   : > { %10845 = vmatprep.subr.bf16.mxu1 %v10844_v47  ;;  %v14374_v15 = vld [vmem:[#allocation46_spill] sm:$0xff] }
 0x575   : > { %10449 = vmatmul.mubr.msk.f32.gmra.mrb[24].mxu1 %vm4414_vm4, %v13108_v4  ;;  %v14366_v4 = vld [vmem:[#allocation39_spill] sm:$0xff] }
 0x576   : > { %10451 = vmatprep.mubr.msk.f32.mxu1 %vm4414_vm4, %v13115_v31  ;;  %v13695_v31 = vld [vmem:[#allocation3 + $0x181] sm:$0xff] }
 0x579   : > { %10452 = vmatmul.mubr.msk.f32.gmra.mrb[26].mxu1 %vm4414_vm4, %v13120_v33  ;;  %v13699_v33 = vld [vmem:[#allocation3 + $0x189] sm:$0xff] }
 0x57a   : > { %10454 = vmatprep.mubr.msk.f32.mxu1 %vm4414_vm4, %v13127_v11  ;;  %v8842_v11 = vld [vmem:[%s14108_s5 + $0x190] sm:$0xff] }
 0x57d   : > { %10455 = vmatmul.mubr.msk.f32.gmra.mrb[28].mxu1 %vm4414_vm4, %v13132_v14  ;;  %v8843_v14 = vld [vmem:[%s14108_s5 + $0x198] sm:$0xff] }
 0x57e   : > { %10457 = vmatprep.mubr.msk.f32.mxu1 %vm4414_vm4, %v13139_v46  ;;  %v14367_v46 = vld [vmem:[#allocation41_spill] sm:$0xff] }
 0x581   : > { %10458 = vmatmul.mubr.msk.f32.gmra.mrb[30].mxu1 %vm4414_vm4, %v13144_v49  ;;  %v10848_v49 = vpack.c.bf16 %v8843_v14, %v8842_v11  ;;  %v14384_v11 = vld [vmem:[#allocation30_spill] sm:$0xff]  ;;  %v14385_v14 = vld [vmem:[#allocation31_spill] sm:$0xff] }
 0x582   : > { %10460 = vmatprep.mubr.msk.f32.mxu1 %vm4414_vm4, %v13151_v58  ;;  %v8844_v58 = vld [vmem:[%s14108_s5 + $0x1a0] sm:$0xff] }
 0x585   : > { %10461 = vmatmul.mubr.msk.f32.gmra.mrb[32].mxu1 %vm4414_vm4, %v13156_v60  ;;  %v8845_v60 = vld [vmem:[%s14108_s5 + $0x1a8] sm:$0xff] }
 0x586   : > { %10463 = vmatprep.mubr.msk.f32.mxu1 %vm4414_vm4, %v13163_v36  ;;  %v14368_v36 = vld [vmem:[#allocation43_spill] sm:$0xff] }
 0x589   : > { %10464 = vmatmul.mubr.msk.f32.gmra.mrb[34].mxu1 %vm4414_vm4, %v13168_v38  ;;  %v10852_v38 = vpack.c.bf16 %v8845_v60, %v8844_v58  ;;  %v14388_v58 = vld [vmem:[#allocation35_spill] sm:$0xff]  ;;  %v14389_v60 = vld [vmem:[#allocation36_spill] sm:$0xff] }
 0x58a   : > { %10466 = vmatprep.mubr.msk.f32.mxu1 %vm4414_vm4, %v13175_v28  ;;  %v8846_v28 = vld [vmem:[%s14108_s5 + $0x1b0] sm:$0xff] }
 0x58d   : > { %10467 = vmatmul.mubr.msk.f32.gmra.mrb[36].mxu1 %vm4414_vm4, %v13180_v32  ;;  %v8847_v32 = vld [vmem:[%s14108_s5 + $0x1b8] sm:$0xff] }
 0x58e   : > { %10469 = vmatprep.mubr.msk.f32.mxu1 %vm4414_vm4, %v13187_v12  ;;  %v14369_v12 = vld [vmem:[#allocation15_spill] sm:$0xff] }
 0x591   : > { %10470 = vmatmul.mubr.msk.f32.gmra.mrb[38].mxu1 %vm4414_vm4, %v13192_v17  ;;  %v10856_v17 = vpack.c.bf16 %v8847_v32, %v8846_v28  ;;  %v14392_v28 = vld [vmem:[#allocation44_spill] sm:$0xff]  ;;  %v14393_v32 = vld [vmem:[#allocation47_spill] sm:$0xff] }
 0x592   : > { %10472 = vmatprep.mubr.msk.f32.mxu1 %vm4414_vm4, %v14361_v54  ;;  %v14378_v54 = vld [vmem:[#allocation24_spill] sm:$0xff] }
 0x595   : > { %10473 = vmatmul.mubr.msk.f32.gmra.mrb[40].mxu1 %vm4414_vm4, %v14362_v56  ;;  %v14379_v56 = vld [vmem:[#allocation25_spill] sm:$0xff] }
 0x596   : > { %10475 = vmatprep.mubr.msk.f32.mxu1 %vm4414_vm4, %v14363_v22  ;;  %v14380_v22 = vld [vmem:[#allocation26_spill] sm:$0xff] }
 0x599   : > { %10476 = vmatmul.mubr.msk.f32.gmra.mrb[42].mxu1 %vm4414_vm4, %v14364_v24  ;;  %v14381_v24 = vld [vmem:[#allocation27_spill] sm:$0xff] }
 0x59a   : > { %10478 = vmatprep.mubr.msk.f32.mxu1 %vm4414_vm4, %v14365_v43  ;;  %v14382_v43 = vld [vmem:[#allocation28_spill] sm:$0xff] }
 0x59d   : > { %10479 = vmatmul.mubr.msk.f32.gmra.mrb[44].mxu1 %vm4414_vm4, %v14366_v4  ;;  %v14383_v4 = vld [vmem:[#allocation29_spill] sm:$0xff] }
 0x59e   : > { %10481 = vmatprep.mubr.msk.f32.mxu1 %vm4414_vm4, %v13695_v31 }
 0x5a1   : > { %10482 = vmatmul.mubr.msk.f32.gmra.mrb[46].mxu1 %vm4414_vm4, %v13699_v33 }
 0x5a2   : > { %10500 = vmatprep.mubr.msk.f32.mxu1 %vm4414_vm4, %v14367_v46  ;;  %v14386_v46 = vld [vmem:[#allocation32_spill] sm:$0xff] }
 0x5a5   : > { %10501 = vmatmul.mubr.msk.f32.vlgmr.msra.gmra.mrb[16].mxu1 %vm4414_vm4, %v14368_v36  ;;  %v14390_v36 = vld [vmem:[#allocation40_spill] sm:$0xff] }
 0x5a6   : > { %10847 = vmatpush3.bf16.msra.mxu1 %v10844_v47  ;;  %10503 = vmatprep.mubr.msk.f32.mxu1 %vm4414_vm4, %v13401_v21  ;;  %v14377_v47 = vld [vmem:[#allocation23_spill] sm:$0xff] }
 0x5a7   : > { %10849 = vmatprep.subr.bf16.mxu1 %v10848_v49 }
 0x5a9   : > { %10504 = vmatmul.mubr.msk.f32.gmra.mrb[18].mxu1 %vm4414_vm4, %v14369_v12 }
 0x5aa   : > { %10506 = vmatprep.mubr.msk.f32.mxu1 %vm4414_vm4, %v13415_v50  ;;  %10851 = vmatpush3.bf16.msra.mxu1 %v10848_v49  ;;  %v14387_v49 = vld [vmem:[#allocation33_spill] sm:$0xff] }
 0x5ab   : > { %10853 = vmatprep.subr.bf16.mxu1 %v10852_v38 }
 0x5ad   : > { %10507 = vmatmul.mubr.msk.f32.gmra.mrb[20].mxu1 %vm4414_vm4, %v13419_v1 }
 0x5ae   : > { %10509 = vmatprep.mubr.msk.f32.mxu1 %vm4414_vm4, %v14370_v42  ;;  %10855 = vmatpush3.bf16.msra.mxu1 %v10852_v38  ;;  %v14391_v38 = vld [vmem:[#allocation42_spill] sm:$0xff] }
 0x5af   : > { %10857 = vmatprep.subr.bf16.mxu1 %v10856_v17 }
 0x5b1   : > { %10510 = vmatmul.mubr.msk.f32.gmra.mrb[22].mxu1 %vm4414_vm4, %v14371_v34 }
 0x5b2   : > { %10512 = vmatprep.mubr.msk.f32.mxu1 %vm4414_vm4, %v14372_v13  ;;  %10859 = vmatpush3.bf16.msra.mxu1 %v10856_v17  ;;  %v13787_v17 = vld [vmem:[#allocation3 + $0x182] sm:$0xff] }
 0x5b3   : > { %10861 = vmatprep.subr.bf16.mxu1 %v10860_v61  ;;  %14394 = vst [vmem:[#allocation19_spill] sm:$0xff] %v13787_v17 }
 0x5b5   : > { %10513 = vmatmul.mubr.msk.f32.gmra.mrb[24].mxu1 %vm4414_vm4, %v14373_v57 }
 0x5b6   : > { %10515 = vmatprep.mubr.msk.f32.mxu1 %vm4414_vm4, %v14374_v15 }
 0x5b9   : > { %10516 = vmatmul.mubr.msk.f32.gmra.mrb[26].mxu1 %vm4414_vm4, %v14375_v45 }
 0x5ba   : > { %10518 = vmatprep.mubr.msk.f32.mxu1 %vm4414_vm4, %v14376_v2 }
 0x5bd   : > { %10519 = vmatmul.mubr.msk.f32.gmra.mrb[28].mxu1 %vm4414_vm4, %v14377_v47 }
 0x5be   : > { %10521 = vmatprep.mubr.msk.f32.mxu1 %vm4414_vm4, %v14378_v54 }
 0x5c1   : > { %10522 = vmatmul.mubr.msk.f32.gmra.mrb[30].mxu1 %vm4414_vm4, %v14379_v56 }
 0x5c2   : > { %10524 = vmatprep.mubr.msk.f32.mxu1 %vm4414_vm4, %v14380_v22 }
 0x5c5   : > { %10525 = vmatmul.mubr.msk.f32.gmra.mrb[32].mxu1 %vm4414_vm4, %v14381_v24 }
 0x5c6   : > { %10527 = vmatprep.mubr.msk.f32.mxu1 %vm4414_vm4, %v14382_v43 }
 0x5c9   : > { %10528 = vmatmul.mubr.msk.f32.gmra.mrb[34].mxu1 %vm4414_vm4, %v14383_v4 }
 0x5ca   : > { %10530 = vmatprep.mubr.msk.f32.mxu1 %vm4414_vm4, %v14384_v11 }
 0x5cd   : > { %10531 = vmatmul.mubr.msk.f32.gmra.mrb[36].mxu1 %vm4414_vm4, %v14385_v14 }
 0x5ce   : > { %10533 = vmatprep.mubr.msk.f32.mxu1 %vm4414_vm4, %v14386_v46 }
 0x5d1   : > { %10534 = vmatmul.mubr.msk.f32.gmra.mrb[38].mxu1 %vm4414_vm4, %v14387_v49 }
 0x5d2   : > { %10536 = vmatprep.mubr.msk.f32.mxu1 %vm4414_vm4, %v14388_v58 }
 0x5d5   : > { %10537 = vmatmul.mubr.msk.f32.gmra.mrb[40].mxu1 %vm4414_vm4, %v14389_v60 }
 0x5d6   : > { %10539 = vmatprep.mubr.msk.f32.mxu1 %vm4414_vm4, %v14390_v36 }
 0x5d9   : > { %10540 = vmatmul.mubr.msk.f32.gmra.mrb[42].mxu1 %vm4414_vm4, %v14391_v38  ;;  %v8883_v38 = vld [vmem:[%s14108_s5 + $0x1d8] sm:$0xff] }
 0x5da   : > { %10542 = vmatprep.mubr.msk.f32.mxu1 %vm4414_vm4, %v14392_v28  ;;  %v8885_v28 = vld [vmem:[%s14108_s5 + $0x1e8] sm:$0xff] }
 0x5dd   : > { %10543 = vmatmul.mubr.msk.f32.gmra.mrb[44].mxu1 %vm4414_vm4, %v14393_v32  ;;  %v10864_v32 = vpack.c.bf16 %v8883_v38, %v8882_v7  ;;  %v8887_v38 = vld [vmem:[%s14108_s5 + $0x1f8] sm:$0xff]  ;;  %v7216_v7 = vld [vmem:[#allocation3 + $0x111] sm:$0xff] }
 0x5de   : > { %10545 = vmatprep.mubr.msk.f32.mxu1 %vm4414_vm4, %v13787_v17  ;;  %v8884_v17 = vld [vmem:[%s14108_s5 + $0x1e0] sm:$0xff] }
 0x5e1   : > { %10546 = vmatmul.mubr.msk.f32.gmra.mrb[46].mxu1 %vm4414_vm4, %v13791_v3  ;;  %v10868_v3 = vpack.c.bf16 %v8885_v28, %v8884_v17  ;;  %v7212_v28 = vld [vmem:[#allocation3 + $0xe1] sm:$0xff]  ;;  %v7214_v17 = vld [vmem:[#allocation3 + $0xf9] sm:$0xff] }
 0x5e2   : > { %10564 = vmatprep.mubr.msk.f32.mxu1 %vm4414_vm4, %v13255_v5  ;;  %v8886_v5 = vld [vmem:[%s14108_s5 + $0x1f0] sm:$0xff] }
 0x5e5   : > { %10565 = vmatmul.mubr.msk.f32.vlgmr.msra.gmra.mrb[16].mxu1 %vm4414_vm4, %v13259_v29  ;;  %v10872_v29 = vpack.c.bf16 %v8887_v38, %v8886_v5  ;;  %v7217_v5 = vld [vmem:[#allocation3 + $0x121] sm:$0xff]  ;;  %v7218_v38 = vld [vmem:[#allocation3 + $0x129] sm:$0xff] }
 0x5e6   : > { %10863 = vmatpush3.bf16.msra.mxu1 %v10860_v61  ;;  %10567 = vmatprep.mubr.msk.f32.mxu1 %vm4414_vm4, %v13269_v25  ;;  %v8920_v25 = vld [vmem:[%s14108_s5 + $0x200] sm:$0xff]  ;;  %v8921_v61 = vld [vmem:[%s14108_s5 + $0x208] sm:$0xff] }
 0x5e7   : > { %10865 = vmatprep.subr.bf16.mxu1 %v10864_v32 }
 0x5e9   : > { %10568 = vmatmul.mubr.msk.f32.gmra.mrb[18].mxu1 %vm4414_vm4, %v13273_v8  ;;  %v10876_v8 = vpack.c.bf16 %v8921_v61, %v8920_v25  ;;  %v7220_v25 = vld [vmem:[#allocation3 + $0x141] sm:$0xff]  ;;  %v7221_v61 = vld [vmem:[#allocation3 + $0x151] sm:$0xff] }
 0x5ea   : > { %10570 = vmatprep.mubr.msk.f32.mxu1 %vm4414_vm4, %v13277_v9  ;;  %10867 = vmatpush3.bf16.msra.mxu1 %v10864_v32  ;;  %v6833_v9 = vld [vmem:[#allocation3 + $0x198] sm:$0xff] }
 0x5eb   : > { %10869 = vmatprep.subr.bf16.mxu1 %v10868_v3  ;;  %v7213_v32 = vld [vmem:[#allocation3 + $0xf1] sm:$0xff] }
 0x5ed   : > { %10571 = vmatmul.mubr.msk.f32.gmra.mrb[20].mxu1 %vm4414_vm4, %v13281_v10  ;;  %v6834_v10 = vld [vmem:[#allocation3 + $0x1a0] sm:$0xff] }
 0x5ee   : > { %10573 = vmatprep.mubr.msk.f32.mxu1 %vm4414_vm4, %v13285_v16  ;;  %10871 = vmatpush3.bf16.msra.mxu1 %v10868_v3  ;;  %v8922_v16 = vld [vmem:[%s14108_s5 + $0x210] sm:$0xff]  ;;  %v7215_v3 = vld [vmem:[#allocation3 + $0x109] sm:$0xff] }
 0x5ef   : > { %10873 = vmatprep.subr.bf16.mxu1 %v10872_v29 }
 0x5f1   : > { %10574 = vmatmul.mubr.msk.f32.gmra.mrb[22].mxu1 %vm4414_vm4, %v13289_v18  ;;  %v8923_v18 = vld [vmem:[%s14108_s5 + $0x218] sm:$0xff] }
 0x5f2   : > { %10576 = vmatprep.mubr.msk.f32.mxu1 %vm4414_vm4, %v13293_v19  ;;  %10875 = vmatpush3.bf16.msra.mxu1 %v10872_v29  ;;  %v7197_v19 = vld [vmem:[#allocation3 + $0x31] sm:$0xff]  ;;  %v7219_v29 = vld [vmem:[#allocation3 + $0x139] sm:$0xff] }
 0x5f3   : > { %10877 = vmatprep.subr.bf16.mxu1 %v10876_v8 }
 0x5f5   : > { %10577 = vmatmul.mubr.msk.f32.gmra.mrb[24].mxu1 %vm4414_vm4, %v13297_v35  ;;  %v10880_v35 = vpack.c.bf16 %v8923_v18, %v8922_v16  ;;  %v7227_v16 = vld [vmem:[#allocation3 + $0x199] sm:$0xff]  ;;  %v7228_v18 = vld [vmem:[#allocation3 + $0x1a1] sm:$0xff] }
 0x5f6   : > { %10579 = vmatprep.mubr.msk.f32.mxu1 %vm4414_vm4, %v13301_v41  ;;  %v7198_v41 = vld [vmem:[#allocation3 + $0x39] sm:$0xff] }
 0x5f9   : > { %10580 = vmatmul.mubr.msk.f32.gmra.mrb[26].mxu1 %vm4414_vm4, %v13305_v44  ;;  %v8924_v44 = vld [vmem:[%s14108_s5 + $0x220] sm:$0xff] }
 0x5fa   : > { %10582 = vmatprep.mubr.msk.f32.mxu1 %vm4414_vm4, %v13309_v48  ;;  %v8925_v48 = vld [vmem:[%s14108_s5 + $0x228] sm:$0xff] }
 0x5fd   : > { %10583 = vmatmul.mubr.msk.f32.gmra.mrb[28].mxu1 %vm4414_vm4, %v13313_v30  ;;  %v7199_v30 = vld [vmem:[#allocation3 + $0x49] sm:$0xff] }
 0x5fe   : > { %10585 = vmatprep.mubr.msk.f32.mxu1 %vm4414_vm4, %v13317_v51  ;;  %v10884_v51 = vpack.c.bf16 %v8925_v48, %v8924_v44 }
 0x601   : > { %10586 = vmatmul.mubr.msk.f32.gmra.mrb[30].mxu1 %vm4414_vm4, %v13321_v53  ;;  %v7200_v53 = vld [vmem:[#allocation3 + $0x51] sm:$0xff] }
 0x602   : > { %10588 = vmatprep.mubr.msk.f32.mxu1 %vm4414_vm4, %v13325_v55  ;;  %v8926_v55 = vld [vmem:[%s14108_s5 + $0x230] sm:$0xff] }
 0x605   : > { %10589 = vmatmul.mubr.msk.f32.gmra.mrb[32].mxu1 %vm4414_vm4, %v13329_v26  ;;  %v8927_v26 = vld [vmem:[%s14108_s5 + $0x238] sm:$0xff] }
 0x606   : > { %10591 = vmatprep.mubr.msk.f32.mxu1 %vm4414_vm4, %v13333_v20  ;;  %v7201_v20 = vld [vmem:[#allocation3 + $0x61] sm:$0xff] }
 0x609   : > { %10592 = vmatmul.mubr.msk.f32.gmra.mrb[34].mxu1 %vm4414_vm4, %v13337_v23  ;;  %v10888_v23 = vpack.c.bf16 %v8927_v26, %v8926_v55 }
 0x60a   : > { %10594 = vmatprep.mubr.msk.f32.mxu1 %vm4414_vm4, %v13341_v62  ;;  %v7202_v62 = vld [vmem:[#allocation3 + $0x69] sm:$0xff] }
 0x60d   : > { %10595 = vmatmul.mubr.msk.f32.gmra.mrb[36].mxu1 %vm4414_vm4, %v13345_v63  ;;  %v7203_v63 = vld [vmem:[#allocation3 + $0x79] sm:$0xff] }
 0x60e   : > { %10597 = vmatprep.mubr.msk.f32.mxu1 %vm4414_vm4, %v13349_v27  ;;  %v7204_v27 = vld [vmem:[#allocation3 + $0x81] sm:$0xff] }
 0x611   : > { %10598 = vmatmul.mubr.msk.f32.gmra.mrb[38].mxu1 %vm4414_vm4, %v13353_v37  ;;  %v7205_v37 = vld [vmem:[#allocation3 + $0x91] sm:$0xff] }
 0x612   : > { %10600 = vmatprep.mubr.msk.f32.mxu1 %vm4414_vm4, %v13357_v39  ;;  %v7206_v39 = vld [vmem:[#allocation3 + $0x99] sm:$0xff] }
 0x615   : > { %10601 = vmatmul.mubr.msk.f32.gmra.mrb[40].mxu1 %vm4414_vm4, %v13361_v40  ;;  %v7207_v40 = vld [vmem:[#allocation3 + $0xa9] sm:$0xff] }
 0x616   : > { %10603 = vmatprep.mubr.msk.f32.mxu1 %vm4414_vm4, %v13365_v6  ;;  %v7208_v6 = vld [vmem:[#allocation3 + $0xb1] sm:$0xff] }
 0x619   : > { %10604 = vmatmul.mubr.msk.f32.gmra.mrb[42].mxu1 %vm4414_vm4, %v13369_v0  ;;  %v7209_v0 = vld [vmem:[#allocation3 + $0xc1] sm:$0xff] }
 0x61a   : > { %10606 = vmatprep.mubr.msk.f32.mxu1 %vm4414_vm4, %v13603_v59  ;;  %v7210_v59 = vld [vmem:[#allocation3 + $0xc9] sm:$0xff] }
 0x61d   : > { %10607 = vmatmul.mubr.msk.f32.gmra.mrb[44].mxu1 %vm4414_vm4, %v13607_v52  ;;  %v7211_v52 = vld [vmem:[#allocation3 + $0xd9] sm:$0xff] }
 0x61e   : > { %10609 = vmatprep.mubr.msk.f32.mxu1 %vm4414_vm4, %v6833_v9  ;;  %v7223_v9 = vld [vmem:[#allocation3 + $0x169] sm:$0xff] }
 0x621   : > { %10610 = vmatmul.mubr.msk.f32.gmra.mrb[46].mxu1 %vm4414_vm4, %v6834_v10  ;;  %v7224_v10 = vld [vmem:[#allocation3 + $0x171] sm:$0xff] }
 0x622   : > { %10628 = vmatprep.mubr.msk.f32.mxu1 %vm4414_vm4, %v7197_v19 }
 0x625   : > { %10629 = vmatmul.mubr.msk.f32.vlgmr.msra.gmra.mrb[16].mxu1 %vm4414_vm4, %v7198_v41 }
 0x626   : > { %10879 = vmatpush3.bf16.msra.mxu1 %v10876_v8  ;;  %10631 = vmatprep.mubr.msk.f32.mxu1 %vm4414_vm4, %v7199_v30  ;;  %v7222_v8 = vld [vmem:[#allocation3 + $0x159] sm:$0xff] }
 0x627   : > { %10881 = vmatprep.subr.bf16.mxu1 %v10880_v35 }
 0x629   : > { %10632 = vmatmul.mubr.msk.f32.gmra.mrb[18].mxu1 %vm4414_vm4, %v7200_v53 }
 0x62a   : > { %10634 = vmatprep.mubr.msk.f32.mxu1 %vm4414_vm4, %v7201_v20  ;;  %10883 = vmatpush3.bf16.msra.mxu1 %v10880_v35 }
 0x62b   : > { %10885 = vmatprep.subr.bf16.mxu1 %v10884_v51 }
 0x62d   : > { %10635 = vmatmul.mubr.msk.f32.gmra.mrb[20].mxu1 %vm4414_vm4, %v7202_v62 }
 0x62e   : > { %10637 = vmatprep.mubr.msk.f32.mxu1 %vm4414_vm4, %v7203_v63  ;;  %10887 = vmatpush3.bf16.msra.mxu1 %v10884_v51 }
 0x62f   : > { %10889 = vmatprep.subr.bf16.mxu1 %v10888_v23 }
 0x631   : > { %10638 = vmatmul.mubr.msk.f32.gmra.mrb[22].mxu1 %vm4414_vm4, %v7204_v27 }
 0x632   : > { %10640 = vmatprep.mubr.msk.f32.mxu1 %vm4414_vm4, %v7205_v37  ;;  %10891 = vmatpush3.bf16.msra.mxu1 %v10888_v23 }
 0x635   : > { %10641 = vmatmul.mubr.msk.f32.gmra.mrb[24].mxu1 %vm4414_vm4, %v7206_v39 }
 0x636   : > { %10643 = vmatprep.mubr.msk.f32.mxu1 %vm4414_vm4, %v7207_v40 }
 0x639   : > { %10644 = vmatmul.mubr.msk.f32.gmra.mrb[26].mxu1 %vm4414_vm4, %v7208_v6 }
 0x63a   : > { %10646 = vmatprep.mubr.msk.f32.mxu1 %vm4414_vm4, %v7209_v0 }
 0x63d   : > { %10647 = vmatmul.mubr.msk.f32.gmra.mrb[28].mxu1 %vm4414_vm4, %v7210_v59 }
 0x63e   : > { %10649 = vmatprep.mubr.msk.f32.mxu1 %vm4414_vm4, %v7211_v52 }
 0x641   : > { %10650 = vmatmul.mubr.msk.f32.gmra.mrb[30].mxu1 %vm4414_vm4, %v7212_v28 }
 0x642   : > { %10652 = vmatprep.mubr.msk.f32.mxu1 %vm4414_vm4, %v7213_v32 }
 0x645   : > { %10653 = vmatmul.mubr.msk.f32.gmra.mrb[32].mxu1 %vm4414_vm4, %v7214_v17 }
 0x646   : > { %10655 = vmatprep.mubr.msk.f32.mxu1 %vm4414_vm4, %v7215_v3 }
 0x649   : > { %10656 = vmatmul.mubr.msk.f32.gmra.mrb[34].mxu1 %vm4414_vm4, %v7216_v7 }
 0x64a   : > { %10658 = vmatprep.mubr.msk.f32.mxu1 %vm4414_vm4, %v7217_v5 }
 0x64d   : > { %10659 = vmatmul.mubr.msk.f32.gmra.mrb[36].mxu1 %vm4414_vm4, %v7218_v38 }
 0x64e   : > { %10661 = vmatprep.mubr.msk.f32.mxu1 %vm4414_vm4, %v7219_v29 }
 0x651   : > { %10662 = vmatmul.mubr.msk.f32.gmra.mrb[38].mxu1 %vm4414_vm4, %v7220_v25 }
 0x652   : > { %10664 = vmatprep.mubr.msk.f32.mxu1 %vm4414_vm4, %v7221_v61 }
 0x655   : > { %10665 = vmatmul.mubr.msk.f32.gmra.mrb[40].mxu1 %vm4414_vm4, %v7222_v8 }
 0x656   : > { %10667 = vmatprep.mubr.msk.f32.mxu1 %vm4414_vm4, %v7223_v9 }
 0x659   : > { %10668 = vmatmul.mubr.msk.f32.gmra.mrb[42].mxu1 %vm4414_vm4, %v7224_v10 }
 0x65a   : > { %10670 = vmatprep.mubr.msk.f32.mxu1 %vm4414_vm4, %v13695_v31  ;;  %v14399_v31 = vld [vmem:[#allocation19_spill] sm:$0xff] }
 0x65d   : > { %10671 = vmatmul.mubr.msk.f32.gmra.mrb[44].mxu1 %vm4414_vm4, %v13699_v33  ;;  %v7621_v33 = vld [vmem:[#allocation3 + $0x19a] sm:$0xff] }
 0x65e   : > { %10673 = vmatprep.mubr.msk.f32.mxu1 %vm4414_vm4, %v7227_v16 }
 0x661   : > { %10674 = vmatmul.mubr.msk.f32.gmra.mrb[46].mxu1 %vm4414_vm4, %v7228_v18 }
 0x662   : > { %10692 = vmatprep.mubr.msk.f32.mxu1 %vm4414_vm4, %v13401_v21  ;;  %v14397_v21 = vld [vmem:[#allocation44_spill] sm:$0xff] }
 0x665   : > { %10693 = vmatmul.mubr.msk.f32.vlgmr.msra.gmra.mrb[16].mxu1 %vm4414_vm4, %v14369_v12  ;;  %v14400_v12 = vld [vmem:[#allocation20_spill] sm:$0xff] }
 0x666   : > { %10695 = vmatprep.mubr.msk.f32.mxu1 %vm4414_vm4, %v13415_v50  ;;  %v14396_v50 = vld [vmem:[#allocation42_spill] sm:$0xff] }
 0x669   : > { %10696 = vmatmul.mubr.msk.f32.gmra.mrb[18].mxu1 %vm4414_vm4, %v13419_v1  ;;  %v14398_v1 = vld [vmem:[#allocation47_spill] sm:$0xff] }
 0x66a   : > { %10698 = vmatprep.mubr.msk.f32.mxu1 %vm4414_vm4, %v14370_v42  ;;  %v7622_v42 = vld [vmem:[#allocation3 + $0x1a2] sm:$0xff] }
 0x66d   : > { %10699 = vmatmul.mubr.msk.f32.gmra.mrb[20].mxu1 %vm4414_vm4, %v14371_v34  ;;  %v13995_v34 = vld [vmem:[#allocation11] ss:$0 sm:$0xff] }
 0x66e   : > { %10701 = vmatprep.mubr.msk.f32.mxu1 %vm4414_vm4, %v14372_v13 }
 0x671   : > { %10702 = vmatmul.mubr.msk.f32.gmra.mrb[22].mxu1 %vm4414_vm4, %v14373_v57 }
 0x672   : > { %10704 = vmatprep.mubr.msk.f32.mxu1 %vm4414_vm4, %v14374_v15 }
 0x675   : > { %10705 = vmatmul.mubr.msk.f32.gmra.mrb[24].mxu1 %vm4414_vm4, %v14375_v45 }
 0x676   : > { %10707 = vmatprep.mubr.msk.f32.mxu1 %vm4414_vm4, %v14376_v2 }
 0x679   : > { %10708 = vmatmul.mubr.msk.f32.gmra.mrb[26].mxu1 %vm4414_vm4, %v14377_v47 }
 0x67a   : > { %10710 = vmatprep.mubr.msk.f32.mxu1 %vm4414_vm4, %v14378_v54 }
 0x67d   : > { %10711 = vmatmul.mubr.msk.f32.gmra.mrb[28].mxu1 %vm4414_vm4, %v14379_v56 }
 0x67e   : > { %10713 = vmatprep.mubr.msk.f32.mxu1 %vm4414_vm4, %v14380_v22 }
 0x681   : > { %10714 = vmatmul.mubr.msk.f32.gmra.mrb[30].mxu1 %vm4414_vm4, %v14381_v24 }
 0x682   : > { %10716 = vmatprep.mubr.msk.f32.mxu1 %vm4414_vm4, %v14382_v43 }
 0x685   : > { %10717 = vmatmul.mubr.msk.f32.gmra.mrb[32].mxu1 %vm4414_vm4, %v14383_v4 }
 0x686   : > { %10719 = vmatprep.mubr.msk.f32.mxu1 %vm4414_vm4, %v14384_v11 }
 0x689   : > { %10720 = vmatmul.mubr.msk.f32.gmra.mrb[34].mxu1 %vm4414_vm4, %v14385_v14 }
 0x68a   : > { %10722 = vmatprep.mubr.msk.f32.mxu1 %vm4414_vm4, %v14386_v46 }
 0x68d   : > { %10723 = vmatmul.mubr.msk.f32.gmra.mrb[36].mxu1 %vm4414_vm4, %v14387_v49 }
 0x68e   : > { %10725 = vmatprep.mubr.msk.f32.mxu1 %vm4414_vm4, %v14388_v58 }
 0x691   : > { %10726 = vmatmul.mubr.msk.f32.gmra.mrb[38].mxu1 %vm4414_vm4, %v14389_v60 }
 0x692   : > { %10728 = vmatprep.mubr.msk.f32.mxu1 %vm4414_vm4, %v14390_v36 }
 0x695   : > { %10729 = vmatmul.mubr.msk.f32.gmra.mrb[40].mxu1 %vm4414_vm4, %v14396_v50 }
 0x696   : > { %10731 = vmatprep.mubr.msk.f32.mxu1 %vm4414_vm4, %v14397_v21 }
 0x699   : > { %10732 = vmatmul.mubr.msk.f32.gmra.mrb[42].mxu1 %vm4414_vm4, %v14398_v1 }
 0x69a   : > { %10734 = vmatprep.mubr.msk.f32.mxu1 %vm4414_vm4, %v14399_v31 }
 0x69d   : > { %10735 = vmatmul.mubr.msk.f32.gmra.mrb[44].mxu1 %vm4414_vm4, %v14400_v12 }
 0x69e   : > { %10737 = vmatprep.mubr.msk.f32.mxu1 %vm4414_vm4, %v7621_v33 }
 0x6a1   : > { %10738 = vmatmul.mubr.msk.f32.gmra.mrb[46].mxu1 %vm4414_vm4, %v7622_v42 }
 0x738   : > { %v10694_v13 = vpop.f32.mrb[16].mxu1 }
 0x739   : > { %v7993_v57 = vadd.f32 %v10694_v13, %v13995_v34  ;;  %v7794_v15 = vpop.f32.mrb[17].mxu1 }
 0x73a   : > { %v7992_v45 = vadd.f32 %v13995_v34, %v7794_v15 }
 0x73b   : > { %vm8025_vm8 = vcmp.ge.f32.partialorder %v7993_v57, 0.0  ;;  %v8057_v2 = vmul.f32 0.25, %v7993_v57 }
 0x73c   : > { %vm8024_vm4 = vcmp.ge.f32.partialorder %v7992_v45, 0.0  ;;  %v8056_v47 = vmul.f32 0.25, %v7992_v45  ;;  %v10697_v54 = vpop.f32.mrb[18].mxu1 }
 0x73d   : > { %v8089_v56 = vsel %vm8025_vm8, %v7993_v57, %v8057_v2  ;;  %v7995_v22 = vadd.f32 %v10697_v54, %v13995_v34  ;;  %v7804_v24 = vpop.f32.mrb[19].mxu1 }
 0x73e   : > { %8122 = vst.msk [vmem:[%s14004_s14 + $0x8] sm:$0xff] %vm8120_vm9, %v8089_v56  ;;  %v8088_v43 = vsel %vm8024_vm4, %v7992_v45, %v8056_v47  ;;  %v7994_v4 = vadd.f32 %v13995_v34, %v7804_v24 }
 0x73f   : > { %8121 = vst.msk [vmem:[%s14004_s14] sm:$0xff] %vm8120_vm9, %v8088_v43  ;;  %vm8027_vm10 = vcmp.ge.f32.partialorder %v7995_v22, 0.0  ;;  %v8059_v11 = vmul.f32 0.25, %v7995_v22 }
 0x740   : > { %vm8026_vm11 = vcmp.ge.f32.partialorder %v7994_v4, 0.0  ;;  %v8058_v14 = vmul.f32 0.25, %v7994_v4  ;;  %v10700_v46 = vpop.f32.mrb[20].mxu1 }
 0x741   : > { %v8091_v49 = vsel %vm8027_vm10, %v7995_v22, %v8059_v11  ;;  %v7997_v58 = vadd.f32 %v10700_v46, %v13995_v34  ;;  %v7814_v60 = vpop.f32.mrb[21].mxu1 }
 0x742   : > { %8124 = vst.msk [vmem:[%s14004_s14 + $0x18] sm:$0xff] %vm8120_vm9, %v8091_v49  ;;  %v8090_v36 = vsel %vm8026_vm11, %v7994_v4, %v8058_v14  ;;  %v7996_v19 = vadd.f32 %v13995_v34, %v7814_v60 }
 0x743   : > { %8123 = vst.msk [vmem:[%s14004_s14 + $0x10] sm:$0xff] %vm8120_vm9, %v8090_v36  ;;  %vm8029_vm12 = vcmp.ge.f32.partialorder %v7997_v58, 0.0  ;;  %v8061_v35 = vmul.f32 0.25, %v7997_v58 }
 0x744   : > { %vm8028_vm13 = vcmp.ge.f32.partialorder %v7996_v19, 0.0  ;;  %v8060_v41 = vmul.f32 0.25, %v7996_v19  ;;  %v10703_v44 = vpop.f32.mrb[22].mxu1 }
 0x745   : > { %v8093_v48 = vsel %vm8029_vm12, %v7997_v58, %v8061_v35  ;;  %v7999_v30 = vadd.f32 %v10703_v44, %v13995_v34  ;;  %v7824_v51 = vpop.f32.mrb[23].mxu1 }
 0x746   : > { %8126 = vst.msk [vmem:[%s14004_s14 + $0x28] sm:$0xff] %vm8120_vm9, %v8093_v48  ;;  %v8092_v53 = vsel %vm8028_vm13, %v7996_v19, %v8060_v41  ;;  %v7998_v55 = vadd.f32 %v13995_v34, %v7824_v51 }
 0x747   : > { %8125 = vst.msk [vmem:[%s14004_s14 + $0x20] sm:$0xff] %vm8120_vm9, %v8092_v53  ;;  %vm8031_vm14 = vcmp.ge.f32.partialorder %v7999_v30, 0.0  ;;  %v8063_v26 = vmul.f32 0.25, %v7999_v30 }
 0x748   : > { %vm8030_vm15 = vcmp.ge.f32.partialorder %v7998_v55, 0.0  ;;  %v8062_v20 = vmul.f32 0.25, %v7998_v55  ;;  %v10706_v23 = vpop.f32.mrb[24].mxu1 }
 0x749   : > { %v8095_v62 = vsel %vm8031_vm14, %v7999_v30, %v8063_v26  ;;  %v8001_v63 = vadd.f32 %v10706_v23, %v13995_v34  ;;  %v7834_v27 = vpop.f32.mrb[25].mxu1 }
 0x74a   : > { %8128 = vst.msk [vmem:[%s14004_s14 + $0x38] sm:$0xff] %vm8120_vm9, %v8095_v62  ;;  %v8094_v37 = vsel %vm8030_vm15, %v7998_v55, %v8062_v20  ;;  %v8000_v39 = vadd.f32 %v13995_v34, %v7834_v27 }
 0x74b   : > { %8127 = vst.msk [vmem:[%s14004_s14 + $0x30] sm:$0xff] %vm8120_vm9, %v8094_v37  ;;  %vm8033_vm0 = vcmp.ge.f32.partialorder %v8001_v63, 0.0  ;;  %v8065_v40 = vmul.f32 0.25, %v8001_v63 }
 0x74c   : > { %vm8032_vm1 = vcmp.ge.f32.partialorder %v8000_v39, 0.0  ;;  %v8064_v6 = vmul.f32 0.25, %v8000_v39  ;;  %v10709_v0 = vpop.f32.mrb[26].mxu1 }
 0x74d   : > { %v8097_v59 = vsel %vm8033_vm0, %v8001_v63, %v8065_v40  ;;  %v8003_v52 = vadd.f32 %v10709_v0, %v13995_v34  ;;  %v7844_v28 = vpop.f32.mrb[27].mxu1 }
 0x74e   : > { %8130 = vst.msk [vmem:[%s14004_s14 + $0x48] sm:$0xff] %vm8120_vm9, %v8097_v59  ;;  %v8096_v32 = vsel %vm8032_vm1, %v8000_v39, %v8064_v6  ;;  %v8002_v17 = vadd.f32 %v13995_v34, %v7844_v28 }
 0x74f   : > { %8129 = vst.msk [vmem:[%s14004_s14 + $0x40] sm:$0xff] %vm8120_vm9, %v8096_v32  ;;  %vm8035_vm2 = vcmp.ge.f32.partialorder %v8003_v52, 0.0  ;;  %v8067_v3 = vmul.f32 0.25, %v8003_v52 }
 0x750   : > { %vm8034_vm3 = vcmp.ge.f32.partialorder %v8002_v17, 0.0  ;;  %v8066_v7 = vmul.f32 0.25, %v8002_v17  ;;  %v10712_v5 = vpop.f32.mrb[28].mxu1 }
 0x751   : > { %v8099_v38 = vsel %vm8035_vm2, %v8003_v52, %v8067_v3  ;;  %v8005_v29 = vadd.f32 %v10712_v5, %v13995_v34  ;;  %v7854_v25 = vpop.f32.mrb[29].mxu1 }
 0x752   : > { %8132 = vst.msk [vmem:[%s14004_s14 + $0x58] sm:$0xff] %vm8120_vm9, %v8099_v38  ;;  %v8098_v61 = vsel %vm8034_vm3, %v8002_v17, %v8066_v7  ;;  %v8004_v8 = vadd.f32 %v13995_v34, %v7854_v25 }
 0x753   : > { %8131 = vst.msk [vmem:[%s14004_s14 + $0x50] sm:$0xff] %vm8120_vm9, %v8098_v61  ;;  %vm8037_vm5 = vcmp.ge.f32.partialorder %v8005_v29, 0.0  ;;  %v8069_v9 = vmul.f32 0.25, %v8005_v29 }
 0x754   : > { %vm8036_vm6 = vcmp.ge.f32.partialorder %v8004_v8, 0.0  ;;  %v8068_v10 = vmul.f32 0.25, %v8004_v8  ;;  %v10715_v16 = vpop.f32.mrb[30].mxu1 }
 0x755   : > { %v8101_v18 = vsel %vm8037_vm5, %v8005_v29, %v8069_v9  ;;  %v8007_v50 = vadd.f32 %v10715_v16, %v13995_v34  ;;  %v7864_v21 = vpop.f32.mrb[31].mxu1 }
 0x756   : > { %8134 = vst.msk [vmem:[%s14004_s14 + $0x68] sm:$0xff] %vm8120_vm9, %v8101_v18  ;;  %v8100_v1 = vsel %vm8036_vm6, %v8004_v8, %v8068_v10  ;;  %v8006_v31 = vadd.f32 %v13995_v34, %v7864_v21 }
 0x757   : > { %8133 = vst.msk [vmem:[%s14004_s14 + $0x60] sm:$0xff] %vm8120_vm9, %v8100_v1  ;;  %vm8039_vm7 = vcmp.ge.f32.partialorder %v8007_v50, 0.0  ;;  %v8071_v33 = vmul.f32 0.25, %v8007_v50 }
 0x758   : > { %vm8038_vm8 = vcmp.ge.f32.partialorder %v8006_v31, 0.0  ;;  %v8070_v12 = vmul.f32 0.25, %v8006_v31  ;;  %v10718_v42 = vpop.f32.mrb[32].mxu1 }
 0x759   : > { %v8103_v13 = vsel %vm8039_vm7, %v8007_v50, %v8071_v33  ;;  %v8009_v57 = vadd.f32 %v10718_v42, %v13995_v34  ;;  %v7874_v15 = vpop.f32.mrb[33].mxu1 }
 0x75a   : > { %8136 = vst.msk [vmem:[%s14004_s14 + $0x78] sm:$0xff] %vm8120_vm9, %v8103_v13  ;;  %v8102_v45 = vsel %vm8038_vm8, %v8006_v31, %v8070_v12  ;;  %v8008_v2 = vadd.f32 %v13995_v34, %v7874_v15 }
 0x75b   : > { %8135 = vst.msk [vmem:[%s14004_s14 + $0x70] sm:$0xff] %vm8120_vm9, %v8102_v45  ;;  %vm8041_vm4 = vcmp.ge.f32.partialorder %v8009_v57, 0.0  ;;  %v8073_v47 = vmul.f32 0.25, %v8009_v57 }
 0x75c   : > { %vm8040_vm10 = vcmp.ge.f32.partialorder %v8008_v2, 0.0  ;;  %v8072_v54 = vmul.f32 0.25, %v8008_v2  ;;  %v10721_v56 = vpop.f32.mrb[34].mxu1 }
 0x75d   : > { %v8105_v22 = vsel %vm8041_vm4, %v8009_v57, %v8073_v47  ;;  %v8011_v24 = vadd.f32 %v10721_v56, %v13995_v34  ;;  %v7884_v43 = vpop.f32.mrb[35].mxu1 }
 0x75e   : > { %8138 = vst.msk [vmem:[%s14004_s14 + $0x88] sm:$0xff] %vm8120_vm9, %v8105_v22  ;;  %v8104_v4 = vsel %vm8040_vm10, %v8008_v2, %v8072_v54  ;;  %v8010_v11 = vadd.f32 %v13995_v34, %v7884_v43 }
 0x75f   : > { %8137 = vst.msk [vmem:[%s14004_s14 + $0x80] sm:$0xff] %vm8120_vm9, %v8104_v4  ;;  %vm8043_vm11 = vcmp.ge.f32.partialorder %v8011_v24, 0.0  ;;  %v8075_v14 = vmul.f32 0.25, %v8011_v24 }
 0x760   : > { %vm8042_vm12 = vcmp.ge.f32.partialorder %v8010_v11, 0.0  ;;  %v8074_v46 = vmul.f32 0.25, %v8010_v11  ;;  %v10724_v49 = vpop.f32.mrb[36].mxu1 }
 0x761   : > { %v8107_v58 = vsel %vm8043_vm11, %v8011_v24, %v8075_v14  ;;  %v8013_v60 = vadd.f32 %v10724_v49, %v13995_v34  ;;  %v7894_v36 = vpop.f32.mrb[37].mxu1 }
 0x762   : > { %8140 = vst.msk [vmem:[%s14004_s14 + $0x98] sm:$0xff] %vm8120_vm9, %v8107_v58  ;;  %v8106_v19 = vsel %vm8042_vm12, %v8010_v11, %v8074_v46  ;;  %v8012_v35 = vadd.f32 %v13995_v34, %v7894_v36 }
 0x763   : > { %8139 = vst.msk [vmem:[%s14004_s14 + $0x90] sm:$0xff] %vm8120_vm9, %v8106_v19  ;;  %vm8045_vm13 = vcmp.ge.f32.partialorder %v8013_v60, 0.0  ;;  %v8077_v41 = vmul.f32 0.25, %v8013_v60 }
 0x764   : > { %vm8044_vm14 = vcmp.ge.f32.partialorder %v8012_v35, 0.0  ;;  %v8076_v44 = vmul.f32 0.25, %v8012_v35  ;;  %v10727_v48 = vpop.f32.mrb[38].mxu1 }
 0x765   : > { %v8109_v30 = vsel %vm8045_vm13, %v8013_v60, %v8077_v41  ;;  %v8015_v51 = vadd.f32 %v10727_v48, %v13995_v34  ;;  %v7904_v53 = vpop.f32.mrb[39].mxu1 }
 0x766   : > { %8142 = vst.msk [vmem:[%s14004_s14 + $0xa8] sm:$0xff] %vm8120_vm9, %v8109_v30  ;;  %v8108_v55 = vsel %vm8044_vm14, %v8012_v35, %v8076_v44  ;;  %v8014_v26 = vadd.f32 %v13995_v34, %v7904_v53 }
 0x767   : > { %8141 = vst.msk [vmem:[%s14004_s14 + $0xa0] sm:$0xff] %vm8120_vm9, %v8108_v55  ;;  %vm8047_vm15 = vcmp.ge.f32.partialorder %v8015_v51, 0.0  ;;  %v8079_v20 = vmul.f32 0.25, %v8015_v51 }
 0x768   : > { %vm8046_vm0 = vcmp.ge.f32.partialorder %v8014_v26, 0.0  ;;  %v8078_v23 = vmul.f32 0.25, %v8014_v26  ;;  %v10730_v62 = vpop.f32.mrb[40].mxu1 }
 0x769   : > { %v8111_v63 = vsel %vm8047_vm15, %v8015_v51, %v8079_v20  ;;  %v8017_v27 = vadd.f32 %v10730_v62, %v13995_v34  ;;  %v7914_v37 = vpop.f32.mrb[41].mxu1 }
 0x76a   : > { %8144 = vst.msk [vmem:[%s14004_s14 + $0xb8] sm:$0xff] %vm8120_vm9, %v8111_v63  ;;  %v8110_v39 = vsel %vm8046_vm0, %v8014_v26, %v8078_v23  ;;  %v8016_v40 = vadd.f32 %v13995_v34, %v7914_v37 }
 0x76b   : > { %8143 = vst.msk [vmem:[%s14004_s14 + $0xb0] sm:$0xff] %vm8120_vm9, %v8110_v39  ;;  %vm8049_vm1 = vcmp.ge.f32.partialorder %v8017_v27, 0.0  ;;  %v8081_v6 = vmul.f32 0.25, %v8017_v27 }
 0x76c   : > { %vm8048_vm2 = vcmp.ge.f32.partialorder %v8016_v40, 0.0  ;;  %v8080_v0 = vmul.f32 0.25, %v8016_v40  ;;  %v10733_v59 = vpop.f32.mrb[42].mxu1 }
 0x76d   : > { %v8113_v52 = vsel %vm8049_vm1, %v8017_v27, %v8081_v6  ;;  %v8019_v28 = vadd.f32 %v10733_v59, %v13995_v34  ;;  %v7924_v32 = vpop.f32.mrb[43].mxu1 }
 0x76e   : > { %8146 = vst.msk [vmem:[%s14004_s14 + $0xc8] sm:$0xff] %vm8120_vm9, %v8113_v52  ;;  %v8112_v17 = vsel %vm8048_vm2, %v8016_v40, %v8080_v0  ;;  %v8018_v3 = vadd.f32 %v13995_v34, %v7924_v32 }
 0x76f   : > { %8145 = vst.msk [vmem:[%s14004_s14 + $0xc0] sm:$0xff] %vm8120_vm9, %v8112_v17  ;;  %vm8051_vm3 = vcmp.ge.f32.partialorder %v8019_v28, 0.0  ;;  %v8083_v7 = vmul.f32 0.25, %v8019_v28 }
 0x770   : > { %vm8050_vm5 = vcmp.ge.f32.partialorder %v8018_v3, 0.0  ;;  %v8082_v5 = vmul.f32 0.25, %v8018_v3  ;;  %v10736_v38 = vpop.f32.mrb[44].mxu1 }
 0x771   : > { %v8115_v29 = vsel %vm8051_vm3, %v8019_v28, %v8083_v7  ;;  %v8021_v25 = vadd.f32 %v10736_v38, %v13995_v34  ;;  %v7934_v61 = vpop.f32.mrb[45].mxu1 }
 0x772   : > { %8148 = vst.msk [vmem:[%s14004_s14 + $0xd8] sm:$0xff] %vm8120_vm9, %v8115_v29  ;;  %v8114_v8 = vsel %vm8050_vm5, %v8018_v3, %v8082_v5  ;;  %v8020_v9 = vadd.f32 %v13995_v34, %v7934_v61 }
 0x773   : > { %8147 = vst.msk [vmem:[%s14004_s14 + $0xd0] sm:$0xff] %vm8120_vm9, %v8114_v8  ;;  %vm8053_vm6 = vcmp.ge.f32.partialorder %v8021_v25, 0.0  ;;  %v8085_v10 = vmul.f32 0.25, %v8021_v25 }
 0x774   : > { %vm8052_vm7 = vcmp.ge.f32.partialorder %v8020_v9, 0.0  ;;  %v8084_v16 = vmul.f32 0.25, %v8020_v9  ;;  %v10739_v18 = vpop.f32.mrb[46].mxu1 }
 0x775   : > { %v8117_v50 = vsel %vm8053_vm6, %v8021_v25, %v8085_v10  ;;  %v8023_v21 = vadd.f32 %v10739_v18, %v13995_v34  ;;  %v7944_v1 = vpop.f32.mrb[47].mxu1 }
 0x776   : > { %8150 = vst.msk [vmem:[%s14004_s14 + $0xe8] sm:$0xff] %vm8120_vm9, %v8117_v50  ;;  %v8116_v31 = vsel %vm8052_vm7, %v8020_v9, %v8084_v16  ;;  %v8022_v33 = vadd.f32 %v13995_v34, %v7944_v1 }
 0x777   : > { %8149 = vst.msk [vmem:[%s14004_s14 + $0xe0] sm:$0xff] %vm8120_vm9, %v8116_v31  ;;  %vm8055_vm8 = vcmp.ge.f32.partialorder %v8023_v21, 0.0  ;;  %v8087_v12 = vmul.f32 0.25, %v8023_v21 }
 0x778   : > { %vm8054_vm4 = vcmp.ge.f32.partialorder %v8022_v33, 0.0  ;;  %v8086_v42 = vmul.f32 0.25, %v8022_v33 }
 0x779   : > { %v8119_v13 = vsel %vm8055_vm8, %v8023_v21, %v8087_v12 }
 0x77a   : > { %8152 = vst.msk [vmem:[%s14004_s14 + $0xf8] sm:$0xff] %vm8120_vm9, %v8119_v13  ;;  %v8118_v57 = vsel %vm8054_vm4, %v8022_v33, %v8086_v42 }
 0x77b   : > { %8151 = vst.msk [vmem:[%s14004_s14 + $0xf0] sm:$0xff] %vm8120_vm9, %v8118_v57 }
 0x77c PF: > { %s20_s24 = sadd.s32 1, %s11630_s24  }
 0x77d   : > { %p17_p6 = scmp.ge.s32.totalorder %s20_s24, 4  }
 0x77f   :  { %19 = sbr.rel (!%p17_p6) target bundleno = 3 (0x3), region = 119 }
 0x786   :  { %8174 = vsyncpa [#allocation5], 1 }
 0x787   :  { %8176 = vsyncpa [#allocation5 + $0x1], 1 }
 0x788   :  { %8177 = vsyncpa [#allocation7], 1 }
 0x789   :  { %8178 = vsyncpa [#allocation10], 1 }

</bundles_post_ra>
